<compile_context>
chip_gen: v6e
topology: v6e:2x2x1
jax: 0.10.0
libtpu: 0.0.40
codegen_flags: <defaults>
</compile_context>

<pallas_src>
import math

import jax
import jax.numpy as jnp
from jax.experimental import pallas as pl
from jax.experimental.pallas import tpu as pltpu

HID_DIM = 128
N_HEADS = 4
HEAD_DIM = HID_DIM // N_HEADS
PF_DIM = 256
VOCAB = 32          # shared src/trg vocab size for this synthetic setup
MAX_LEN = 16
SRC_PAD_IDX = 0
TRG_PAD_IDX = 0
LOGIT_PAD = 128     # lane-dense padding for fc_out / style_labeler outputs
N_DEC = 2           # humor / non-humor decoders stacked on a leading axis


# -----------------------------------------------------------------------------
# In-kernel helpers (traced inside the Pallas kernels)
# -----------------------------------------------------------------------------
def _mm(x_f32, w_bf16):
    """bf16 x bf16 matmul with f32 accumulation (MXU-friendly)."""
    return jnp.dot(x_f32.astype(jnp.bfloat16), w_bf16,
                   preferred_element_type=jnp.float32)


def _layer_norm(x, g, b):
    mean = jnp.mean(x, axis=-1, keepdims=True)
    c = x - mean
    var = jnp.mean(c * c, axis=-1, keepdims=True)
    return c * jax.lax.rsqrt(var + 1e-5) * g + b


def _ffn(x, w1, b1, w2, b2):
    h = jnp.maximum(_mm(x, w1) + b1, 0.0)
    return _mm(h, w2) + b2


def _mha_core(q, k, v, keep):
    """q:(Lq,H) k,v:(Lk,H) f32; keep:(Lq,Lk) bool. Heads sliced in-lane."""
    scale = 1.0 / math.sqrt(HEAD_DIM)
    qb = q.astype(jnp.bfloat16)
    kb = k.astype(jnp.bfloat16)
    vb = v.astype(jnp.bfloat16)
    ctx, attn = [], []
    for h in range(N_HEADS):
        lo = h * HEAD_DIM
        hi = lo + HEAD_DIM
        e = jax.lax.dot_general(
            qb[:, lo:hi], kb[:, lo:hi],
            (((1,), (1,)), ((), ())),
            preferred_element_type=jnp.float32) * scale
        e = jnp.where(keep, e, -1e10)            # masked_fill semantics
        e = e - jnp.max(e, axis=-1, keepdims=True)
        p = jnp.exp(e)
        p = p / jnp.sum(p, axis=-1, keepdims=True)
        attn.append(p)
        ctx.append(jnp.dot(p.astype(jnp.bfloat16), vb[:, lo:hi],
                           preferred_element_type=jnp.float32))
    return jnp.concatenate(ctx, axis=-1), attn


def _self_attention(x, keep, wqkv, bqkv, wo, bo):
    qkv = _mm(x, wqkv) + bqkv                    # (L, 3H) fused QKV projection
    q = qkv[:, :HID_DIM]
    k = qkv[:, HID_DIM:2 * HID_DIM]
    v = qkv[:, 2 * HID_DIM:]
    ctx, _ = _mha_core(q, k, v, keep)            # attn weights never hit HBM
    return _mm(ctx, wo) + bo


def _cross_attention(x, enc, keep, wq, bq, wkv, bkv, wo, bo):
    q = _mm(x, wq) + bq                          # (Lt, H)
    kv = _mm(enc, wkv) + bkv                     # (Ls, 2H) fused KV projection
    k = kv[:, :HID_DIM]
    v = kv[:, HID_DIM:]
    ctx, attns = _mha_core(q, k, v, keep)
    return _mm(ctx, wo) + bo, attns


# -----------------------------------------------------------------------------
# Kernel 1: fused encoder layer (grid over batch)
# -----------------------------------------------------------------------------
def _encoder_layer_kernel(x_ref, m_ref,
                          wqkv_ref, bqkv_ref, wo_ref, bo_ref, ln1g_ref, ln1b_ref,
                          wf1_ref, bf1_ref, wf2_ref, bf2_ref, ln2g_ref, ln2b_ref,
                          o_ref):
    x = x_ref[0]                     # (Ls, H) f32
    keep = m_ref[0] > 0.0            # (Ls, Ls) bool
    sa = _self_attention(x, keep, wqkv_ref[...], bqkv_ref[...],
                         wo_ref[...], bo_ref[...])
    x = _layer_norm(x + sa, ln1g_ref[...], ln1b_ref[...])
    ff = _ffn(x, wf1_ref[...], bf1_ref[...], wf2_ref[...], bf2_ref[...])
    x = _layer_norm(x + ff, ln2g_ref[...], ln2b_ref[...])
    o_ref[0] = x


def encoder_layer(fe, x, mask):
    B, Ls, H = x.shape
    full = lambda b: (0, 0)
    names = ['wqkv', 'bqkv', 'wo', 'bo', 'ln1g', 'ln1b',
             'wff1', 'bff1', 'wff2', 'bff2', 'ln2g', 'ln2b']
    return pl.pallas_call(
        _encoder_layer_kernel,
        out_shape=jax.ShapeDtypeStruct((B, Ls, H), jnp.float32),
        grid=(B,),
        in_specs=[pl.BlockSpec((1, Ls, H), lambda b: (b, 0, 0)),
                  pl.BlockSpec((1, Ls, Ls), lambda b: (b, 0, 0))]
                 + [pl.BlockSpec(fe[n].shape, full) for n in names],
        out_specs=pl.BlockSpec((1, Ls, H), lambda b: (b, 0, 0)),
        compiler_params=pltpu.CompilerParams(dimension_semantics=("parallel",)),
    )(x, mask, *[fe[n] for n in names])


# -----------------------------------------------------------------------------
# Kernel 2: fused style head (style/content projections + labeler, grid=(1,))
# -----------------------------------------------------------------------------
def _style_head_kernel(enc_ref, w3_ref, b3_ref, wlab_ref, blab_ref,
                       sh_ref, snh_ref, c_ref, eh_ref, enh_ref, ps_ref):
    enc = enc_ref[...]                               # (B, Ls, H)
    B, Ls, H = enc.shape
    x2 = enc.reshape(B * Ls, H)
    proj = _mm(x2, w3_ref[...]) + b3_ref[...]        # (B*Ls, 3H) fused trio
    sh = proj[:, :H]
    snh = proj[:, H:2 * H]
    cc = proj[:, 2 * H:]
    sh3 = sh.reshape(B, Ls, H)
    sh_ref[...] = sh3
    snh_ref[...] = snh.reshape(B, Ls, H)
    c_ref[...] = cc.reshape(B, Ls, H)
    eh_ref[...] = (sh + cc).reshape(B, Ls, H)
    enh_ref[...] = (snh + cc).reshape(B, Ls, H)
    mean_h = jnp.mean(sh3, axis=1)                   # (B, H)
    ps_ref[...] = _mm(mean_h, wlab_ref[...]) + blab_ref[...]


def style_head(fs, enc_src):
    B, Ls, H = enc_src.shape
    spec3 = pl.BlockSpec((B, Ls, H), lambda i: (0, 0, 0))
    full = lambda i: (0, 0)
    out_shape = (jax.ShapeDtypeStruct((B, Ls, H), jnp.float32),) * 5 + \
                (jax.ShapeDtypeStruct((B, LOGIT_PAD), jnp.float32),)
    return pl.pallas_call(
        _style_head_kernel,
        out_shape=out_shape,
        grid=(1,),
        in_specs=[spec3,
                  pl.BlockSpec(fs['w3'].shape, full),
                  pl.BlockSpec(fs['b3'].shape, full),
                  pl.BlockSpec(fs['wlab'].shape, full),
                  pl.BlockSpec(fs['blab'].shape, full)],
        out_specs=(spec3, spec3, spec3, spec3, spec3,
                   pl.BlockSpec((B, LOGIT_PAD), full)),
        compiler_params=pltpu.CompilerParams(dimension_semantics=("arbitrary",)),
    )(enc_src, fs['w3'], fs['b3'], fs['wlab'], fs['blab'])


# -----------------------------------------------------------------------------
# Kernel 3: fused dual decoder layer (grid=(N_DEC, B), both axes "parallel")
# -----------------------------------------------------------------------------
_DEC_PARAM_NAMES = ['wqkv', 'bqkv', 'wo1', 'bo1', 'ln1g', 'ln1b',
                    'wq', 'bq', 'wkv', 'bkv', 'wo2', 'bo2', 'ln2g', 'ln2b',
                    'wf1', 'bf1', 'wf2', 'bf2', 'ln3g', 'ln3b',
                    'wfc', 'bfc']


def _dual_decoder_kernel(x_ref, enc_ref, tm_ref, sm_ref,
                         wqkv_ref, bqkv_ref, wo1_ref, bo1_ref, ln1g_ref, ln1b_ref,
                         wq_ref, bq_ref, wkv_ref, bkv_ref, wo2_ref, bo2_ref,
                         ln2g_ref, ln2b_ref,
                         wf1_ref, bf1_ref, wf2_ref, bf2_ref, ln3g_ref, ln3b_ref,
                         wfc_ref, bfc_ref,
                         out_ref, attn_ref):
    x = x_ref[0, 0]                      # (Lt, H)
    enc = enc_ref[0, 0]                  # (Ls, H)
    keep_t = tm_ref[0] > 0.0             # (Lt, Lt)
    keep_s = sm_ref[0] > 0.0             # (Lt, Ls)

    sa = _self_attention(x, keep_t, wqkv_ref[0], bqkv_ref[0],
                         wo1_ref[0], bo1_ref[0])
    x = _layer_norm(x + sa, ln1g_ref[0], ln1b_ref[0])

    ca, attns = _cross_attention(x, enc, keep_s, wq_ref[0], bq_ref[0],
                                 wkv_ref[0], bkv_ref[0], wo2_ref[0], bo2_ref[0])
    x = _layer_norm(x + ca, ln2g_ref[0], ln2b_ref[0])

    ff = _ffn(x, wf1_ref[0], bf1_ref[0], wf2_ref[0], bf2_ref[0])
    x = _layer_norm(x + ff, ln3g_ref[0], ln3b_ref[0])

    out_ref[0, 0] = _mm(x, wfc_ref[0]) + bfc_ref[0]     # lane-dense (Lt, 128)
    for h in range(N_HEADS):
        attn_ref[0, 0, h] = attns[h]


def dual_decoder(fd, x, enc, trg_mask, cross_mask):
    ND, B, Lt, H = x.shape
    Ls = enc.shape[2]
    dmap = lambda d, b: (d, 0, 0)
    param_specs = [pl.BlockSpec((1,) + fd[n].shape[1:], dmap)
                   for n in _DEC_PARAM_NAMES]
    out_shape = (
        jax.ShapeDtypeStruct((ND, B, Lt, LOGIT_PAD), jnp.float32),
        jax.ShapeDtypeStruct((ND, B, N_HEADS, Lt, Ls), jnp.float32),
    )
    return pl.pallas_call(
        _dual_decoder_kernel,
        out_shape=out_shape,
        grid=(ND, B),
        in_specs=[pl.BlockSpec((1, 1, Lt, H), lambda d, b: (d, b, 0, 0)),
                  pl.BlockSpec((1, 1, Ls, H), lambda d, b: (d, b, 0, 0)),
                  pl.BlockSpec((1, Lt, Lt), lambda d, b: (b, 0, 0)),
                  pl.BlockSpec((1, Lt, Ls), lambda d, b: (b, 0, 0))]
                 + param_specs,
        out_specs=(pl.BlockSpec((1, 1, Lt, LOGIT_PAD), lambda d, b: (d, b, 0, 0)),
                   pl.BlockSpec((1, 1, N_HEADS, Lt, Ls),
                                lambda d, b: (d, b, 0, 0, 0))),
        compiler_params=pltpu.CompilerParams(
            dimension_semantics=("parallel", "parallel")),
    )(x, enc, trg_mask, cross_mask, *[fd[n] for n in _DEC_PARAM_NAMES])


# -----------------------------------------------------------------------------
# Parameter packing: fuse / pad / bf16-cast / stack ONCE, outside jit
# -----------------------------------------------------------------------------
def prepare_params(p):
    f32, bf16 = jnp.float32, jnp.bfloat16

    def row(v):
        return v.reshape(1, -1).astype(f32)

    def fuse_qkv(a):
        w = jnp.concatenate([a['q']['w'], a['k']['w'], a['v']['w']],
                            axis=1).astype(bf16)
        b = row(jnp.concatenate([a['q']['b'], a['k']['b'], a['v']['b']]))
        return w, b

    def enc_pack(e):
        wqkv, bqkv = fuse_qkv(e['self_attn'])
        return {'tok': e['tok'].astype(f32), 'pos': e['pos'].astype(f32),
                'wqkv': wqkv, 'bqkv': bqkv,
                'wo': e['self_attn']['o']['w'].astype(bf16),
                'bo': row(e['self_attn']['o']['b']),
                'ln1g': row(e['ln1']['g']), 'ln1b': row(e['ln1']['b']),
                'wff1': e['ff1']['w'].astype(bf16), 'bff1': row(e['ff1']['b']),
                'wff2': e['ff2']['w'].astype(bf16), 'bff2': row(e['ff2']['b']),
                'ln2g': row(e['ln2']['g']), 'ln2b': row(e['ln2']['b'])}

    def dec_pack(d):
        wqkv, bqkv = fuse_qkv(d['self_attn'])
        ea = d['enc_attn']
        wkv = jnp.concatenate([ea['k']['w'], ea['v']['w']], axis=1).astype(bf16)
        bkv = row(jnp.concatenate([ea['k']['b'], ea['v']['b']]))
        wfc = jnp.pad(d['fc_out']['w'],
                      ((0, 0), (0, LOGIT_PAD - VOCAB))).astype(bf16)
        bfc = row(jnp.pad(d['fc_out']['b'], (0, LOGIT_PAD - VOCAB)))
        return {'tok': d['tok'].astype(f32), 'pos': d['pos'].astype(f32),
                'wqkv': wqkv, 'bqkv': bqkv,
                'wo1': d['self_attn']['o']['w'].astype(bf16),
                'bo1': row(d['self_attn']['o']['b']),
                'ln1g': row(d['ln1']['g']), 'ln1b': row(d['ln1']['b']),
                'wq': ea['q']['w'].astype(bf16), 'bq': row(ea['q']['b']),
                'wkv': wkv, 'bkv': bkv,
                'wo2': ea['o']['w'].astype(bf16), 'bo2': row(ea['o']['b']),
                'ln2g': row(d['ln2']['g']), 'ln2b': row(d['ln2']['b']),
                'wf1': d['ff1']['w'].astype(bf16), 'bf1': row(d['ff1']['b']),
                'wf2': d['ff2']['w'].astype(bf16), 'bf2': row(d['ff2']['b']),
                'ln3g': row(d['ln3']['g']), 'ln3b': row(d['ln3']['b']),
                'wfc': wfc, 'bfc': bfc}

    dh = dec_pack(p['decoder_humor'])
    dn = dec_pack(p['decoder_nonhumor'])
    dec = {k: jnp.stack([dh[k], dn[k]], axis=0) for k in dh}

    w3 = jnp.concatenate([p['style_proj_h']['w'], p['style_proj_nh']['w'],
                          p['content_proj']['w']], axis=1).astype(bf16)
    b3 = row(jnp.concatenate([p['style_proj_h']['b'], p['style_proj_nh']['b'],
                              p['content_proj']['b']]))
    wlab = jnp.pad(p['style_labeler']['w'],
                   ((0, 0), (0, LOGIT_PAD - 2))).astype(bf16)
    blab = row(jnp.pad(p['style_labeler']['b'], (0, LOGIT_PAD - 2)))

    return {'encoder': enc_pack(p['encoder']),
            'decoder': dec,
            'style': {'w3': w3, 'b3': b3, 'wlab': wlab, 'blab': blab}}


# -----------------------------------------------------------------------------
# Seq2Seq forward (mirrors the PyTorch module)
# -----------------------------------------------------------------------------
def seq2seq_forward(fp, src, trg):
    B, Ls = src.shape
    Lt = trg.shape[1]
    scale = math.sqrt(HID_DIM)
    f32 = jnp.float32

    # masks (kept compact; no per-head broadcast to HBM)
    src_keep = (src != SRC_PAD_IDX)
    trg_keep = (trg != TRG_PAD_IDX)
    enc_mask = jnp.broadcast_to(src_keep[:, None, :], (B, Ls, Ls)).astype(f32)
    cross_mask = jnp.broadcast_to(src_keep[:, None, :], (B, Lt, Ls)).astype(f32)
    causal = jnp.tril(jnp.ones((Lt, Lt), dtype=bool))
    trg_mask = (trg_keep[:, None, :] & causal[None]).astype(f32)

    # encoder (embedding gather is JAX glue; dropout = identity)
    fe = fp['encoder']
    x_enc = fe['tok'][src] * scale + fe['pos'][:Ls][None]
    enc_src = encoder_layer(fe, x_enc, enc_mask)

    # fused style / content projections + labeler
    fs = fp['style']
    style_h, style_nh, content, enc_out_h, enc_out_nh, ps_pad = \
        style_head(fs, enc_src)
    pred_style = ps_pad[:, :2]

    # both decoders in one fused call (leading axis of size 2)
    fd = fp['decoder']
    x_dec = fd['tok'][:, trg] * scale + fd['pos'][:, None, :Lt, :]
    enc_stacked = jnp.stack([enc_out_h, enc_out_nh], axis=0)
    logits_pad, attn = dual_decoder(fd, x_dec, enc_stacked, trg_mask, cross_mask)

    output_h = logits_pad[0, :, :, :VOCAB]
    output_n = logits_pad[1, :, :, :VOCAB]
    attention_h = attn[0]
    attention_n = attn[1]
    mi_alpha = 0.0
    return (output_h, attention_h, output_n, attention_n,
            style_h, style_nh, content, pred_style, mi_alpha)


# -----------------------------------------------------------------------------
# Deterministic parameter init (shapes follow the reference module)
# -----------------------------------------------------------------------------
def _dense(key, fan_in, fan_out):
    w = jax.random.normal(key, (fan_in, fan_out), jnp.float32) * 0.02
    b = jnp.zeros((fan_out,), jnp.float32)
    return {'w': w, 'b': b}


def _ln():
    return {'g': jnp.ones((HID_DIM,), jnp.float32),
            'b': jnp.zeros((HID_DIM,), jnp.float32)}


def _mha(key):
    k = jax.random.split(key, 4)
    return {'q': _dense(k[0], HID_DIM, HID_DIM),
            'k': _dense(k[1], HID_DIM, HID_DIM),
            'v': _dense(k[2], HID_DIM, HID_DIM),
            'o': _dense(k[3], HID_DIM, HID_DIM)}


def _encoder_params(key):
    k = jax.random.split(key, 5)
    return {'tok': jax.random.normal(k[0], (VOCAB, HID_DIM), jnp.float32) * 0.02,
            'pos': jax.random.normal(k[1], (MAX_LEN, HID_DIM), jnp.float32) * 0.02,
            'self_attn': _mha(k[2]), 'ln1': _ln(),
            'ff1': _dense(k[3], HID_DIM, PF_DIM),
            'ff2': _dense(k[4], PF_DIM, HID_DIM), 'ln2': _ln()}


def _decoder_params(key):
    k = jax.random.split(key, 7)
    return {'tok': jax.random.normal(k[0], (VOCAB, HID_DIM), jnp.float32) * 0.02,
            'pos': jax.random.normal(k[1], (MAX_LEN, HID_DIM), jnp.float32) * 0.02,
            'self_attn': _mha(k[2]), 'ln1': _ln(),
            'enc_attn': _mha(k[3]), 'ln2': _ln(),
            'ff1': _dense(k[4], HID_DIM, PF_DIM),
            'ff2': _dense(k[5], PF_DIM, HID_DIM), 'ln3': _ln(),
            'fc_out': _dense(k[6], HID_DIM, VOCAB)}


def init_params(key):
    k = jax.random.split(key, 7)
    return {'encoder': _encoder_params(k[0]),
            'decoder_humor': _decoder_params(k[1]),
            'decoder_nonhumor': _decoder_params(k[2]),
            'style_proj_h': _dense(k[3], HID_DIM, HID_DIM),
            'style_proj_nh': _dense(k[4], HID_DIM, HID_DIM),
            'content_proj': _dense(k[5], HID_DIM, HID_DIM),
            'style_labeler': _dense(k[6], HID_DIM, 2)}


# -----------------------------------------------------------------------------
if __name__ == "__main__":
    key = jax.random.PRNGKey(0)
    kp, ks, kt = jax.random.split(key, 3)

    params = init_params(kp)
    fast_params = prepare_params(params)   # fuse / pad / bf16 / stack once

    B, SRC_LEN, TRG_LEN = 2, 8, 8
    src = jax.random.randint(ks, (B, SRC_LEN), 1, VOCAB, dtype=jnp.int32)
    trg = jax.random.randint(kt, (B, TRG_LEN), 1, VOCAB, dtype=jnp.int32)
    # add some padding tokens so the masks are exercised
    src = src.at[:, -1].set(SRC_PAD_IDX)
    trg = trg.at[:, -1].set(TRG_PAD_IDX)

    fwd = jax.jit(seq2seq_forward)
    out = fwd(fast_params, src, trg)
    jax.block_until_ready(out)

    (output_h, attention_h, output_n, attention_n,
     style_h, style_nh, content, pred_style, mi_alpha) = out

    assert output_h.shape == (B, TRG_LEN, VOCAB)
    assert attention_h.shape == (B, N_HEADS, TRG_LEN, SRC_LEN)
    assert output_n.shape == (B, TRG_LEN, VOCAB)
    assert attention_n.shape == (B, N_HEADS, TRG_LEN, SRC_LEN)
    assert style_h.shape == (B, SRC_LEN, HID_DIM)
    assert style_nh.shape == (B, SRC_LEN, HID_DIM)
    assert content.shape == (B, SRC_LEN, HID_DIM)
    assert pred_style.shape == (B, 2)
    assert mi_alpha == 0.0

    print("KERNEL_OK")
</pallas_src>

<mosaic_0001>
module attributes {stable_mosaic.version = 11 : i64} {
  func.func @_encoder_layer_kernel(%arg0: i32, %arg1: memref<1x8x128xf32, #tpu.memory_space<vmem>>, %arg2: memref<1x8x8xf32, #tpu.memory_space<vmem>>, %arg3: memref<128x384xbf16, #tpu.memory_space<vmem>>, %arg4: memref<1x384xf32, #tpu.memory_space<vmem>>, %arg5: memref<128x128xbf16, #tpu.memory_space<vmem>>, %arg6: memref<1x128xf32, #tpu.memory_space<vmem>>, %arg7: memref<1x128xf32, #tpu.memory_space<vmem>>, %arg8: memref<1x128xf32, #tpu.memory_space<vmem>>, %arg9: memref<128x256xbf16, #tpu.memory_space<vmem>>, %arg10: memref<1x256xf32, #tpu.memory_space<vmem>>, %arg11: memref<256x128xbf16, #tpu.memory_space<vmem>>, %arg12: memref<1x128xf32, #tpu.memory_space<vmem>>, %arg13: memref<1x128xf32, #tpu.memory_space<vmem>>, %arg14: memref<1x128xf32, #tpu.memory_space<vmem>>, %arg15: memref<1x8x128xf32, #tpu.memory_space<vmem>>) attributes {dimension_semantics = [#tpu.dimension_semantics<parallel>], iteration_bounds = array<i64: 2>, scalar_prefetch = 0 : i64, scratch_operands = 0 : i64, tpu.core_type = #tpu.core_type<tc>, window_params = [{transform_indices = @transform_0, window_bounds = array<i64: 1, 8, 128>}, {transform_indices = @transform_1, window_bounds = array<i64: 1, 8, 8>}, {pipeline_mode = #tpu.pipeline_mode<synchronous>, transform_indices = @transform_2, window_bounds = array<i64: 128, 384>}, {pipeline_mode = #tpu.pipeline_mode<synchronous>, transform_indices = @transform_3, window_bounds = array<i64: 1, 384>}, {pipeline_mode = #tpu.pipeline_mode<synchronous>, transform_indices = @transform_4, window_bounds = array<i64: 128, 128>}, {pipeline_mode = #tpu.pipeline_mode<synchronous>, transform_indices = @transform_5, window_bounds = array<i64: 1, 128>}, {pipeline_mode = #tpu.pipeline_mode<synchronous>, transform_indices = @transform_6, window_bounds = array<i64: 1, 128>}, {pipeline_mode = #tpu.pipeline_mode<synchronous>, transform_indices = @transform_7, window_bounds = array<i64: 1, 128>}, {pipeline_mode = #tpu.pipeline_mode<synchronous>, transform_indices = @transform_8, window_bounds = array<i64: 128, 256>}, {pipeline_mode = #tpu.pipeline_mode<synchronous>, transform_indices = @transform_9, window_bounds = array<i64: 1, 256>}, {pipeline_mode = #tpu.pipeline_mode<synchronous>, transform_indices = @transform_10, window_bounds = array<i64: 256, 128>}, {pipeline_mode = #tpu.pipeline_mode<synchronous>, transform_indices = @transform_11, window_bounds = array<i64: 1, 128>}, {pipeline_mode = #tpu.pipeline_mode<synchronous>, transform_indices = @transform_12, window_bounds = array<i64: 1, 128>}, {pipeline_mode = #tpu.pipeline_mode<synchronous>, transform_indices = @transform_13, window_bounds = array<i64: 1, 128>}, {transform_indices = @transform_14, window_bounds = array<i64: 1, 8, 128>}]} {
    %c0 = arith.constant 0 : index
    %c0_0 = arith.constant 0 : index
    %c0_1 = arith.constant 0 : index
    %0 = vector.load %arg1[%c0, %c0_0, %c0_1] : memref<1x8x128xf32, #tpu.memory_space<vmem>>, vector<1x8x128xf32>
    %1 = vector.shape_cast %0 : vector<1x8x128xf32> to vector<8x128xf32>
    %c0_2 = arith.constant 0 : index
    %c0_3 = arith.constant 0 : index
    %c0_4 = arith.constant 0 : index
    %2 = vector.load %arg2[%c0_2, %c0_3, %c0_4] : memref<1x8x8xf32, #tpu.memory_space<vmem>>, vector<1x8x8xf32>
    %3 = vector.shape_cast %2 : vector<1x8x8xf32> to vector<8x8xf32>
    %cst = arith.constant 0.000000e+00 : f32
    %4 = vector.broadcast %cst : f32 to vector<8x8xf32>
    %5 = arith.cmpf ogt, %3, %4 : vector<8x8xf32>
    %c0_5 = arith.constant 0 : index
    %c0_6 = arith.constant 0 : index
    %6 = vector.load %arg3[%c0_5, %c0_6] : memref<128x384xbf16, #tpu.memory_space<vmem>>, vector<128x384xbf16>
    %c0_7 = arith.constant 0 : index
    %c0_8 = arith.constant 0 : index
    %7 = vector.load %arg4[%c0_7, %c0_8] : memref<1x384xf32, #tpu.memory_space<vmem>>, vector<1x384xf32>
    %c0_9 = arith.constant 0 : index
    %c0_10 = arith.constant 0 : index
    %8 = vector.load %arg5[%c0_9, %c0_10] : memref<128x128xbf16, #tpu.memory_space<vmem>>, vector<128x128xbf16>
    %c0_11 = arith.constant 0 : index
    %c0_12 = arith.constant 0 : index
    %9 = vector.load %arg6[%c0_11, %c0_12] : memref<1x128xf32, #tpu.memory_space<vmem>>, vector<1x128xf32>
    %10 = arith.truncf %1 : vector<8x128xf32> to vector<8x128xbf16>
    %cst_13 = arith.constant dense<0.000000e+00> : vector<8x384xf32>
    %11 = tpu.matmul %10, %6, %cst_13 {dimension_numbers = #tpu.dot_dimension_numbers<[1], [0], [0], [1], [0, 0, 1, 1], [], []>} : vector<8x128xbf16>, vector<128x384xbf16>, vector<8x384xf32> -> vector<8x384xf32>
    %12 = vector.broadcast %7 : vector<1x384xf32> to vector<8x384xf32>
    %13 = arith.addf %11, %12 : vector<8x384xf32>
    %14 = vector.extract_strided_slice %13 {offsets = [0, 0], sizes = [8, 128], strides = [1, 1]} : vector<8x384xf32> to vector<8x128xf32>
    %15 = vector.extract_strided_slice %13 {offsets = [0, 128], sizes = [8, 128], strides = [1, 1]} : vector<8x384xf32> to vector<8x128xf32>
    %16 = vector.extract_strided_slice %13 {offsets = [0, 256], sizes = [8, 128], strides = [1, 1]} : vector<8x384xf32> to vector<8x128xf32>
    %17 = arith.truncf %14 : vector<8x128xf32> to vector<8x128xbf16>
    %18 = arith.truncf %15 : vector<8x128xf32> to vector<8x128xbf16>
    %19 = arith.truncf %16 : vector<8x128xf32> to vector<8x128xbf16>
    %20 = vector.extract_strided_slice %17 {offsets = [0, 0], sizes = [8, 32], strides = [1, 1]} : vector<8x128xbf16> to vector<8x32xbf16>
    %21 = vector.extract_strided_slice %18 {offsets = [0, 0], sizes = [8, 32], strides = [1, 1]} : vector<8x128xbf16> to vector<8x32xbf16>
    %cst_14 = arith.constant dense<0.000000e+00> : vector<8x8xf32>
    %22 = tpu.matmul %20, %21, %cst_14 {dimension_numbers = #tpu.dot_dimension_numbers<[1], [1], [0], [0], [0, 0, 1, 0], [], []>} : vector<8x32xbf16>, vector<8x32xbf16>, vector<8x8xf32> -> vector<8x8xf32>
    %cst_15 = arith.constant 0.176776692 : f32
    %23 = vector.broadcast %cst_15 : f32 to vector<8x8xf32>
    %24 = arith.mulf %22, %23 : vector<8x8xf32>
    %cst_16 = arith.constant -1.000000e+10 : f32
    %25 = vector.broadcast %cst_16 : f32 to vector<8x8xf32>
    %26 = arith.select %5, %24, %25 : vector<8x8xi1>, vector<8x8xf32>
    %cst_17 = arith.constant dense<0xFF800000> : vector<8xf32>
    %27 = vector.multi_reduction <maximumf>, %26, %cst_17 [1] : vector<8x8xf32> to vector<8xf32>
    %28 = vector.shape_cast %27 : vector<8xf32> to vector<8x1xf32>
    %29 = vector.broadcast %28 : vector<8x1xf32> to vector<8x8xf32>
    %30 = arith.subf %26, %29 : vector<8x8xf32>
    %31 = math.exp %30 : vector<8x8xf32>
    %cst_18 = arith.constant dense<0.000000e+00> : vector<8xf32>
    %32 = vector.multi_reduction <add>, %31, %cst_18 [1] : vector<8x8xf32> to vector<8xf32>
    %33 = vector.shape_cast %32 : vector<8xf32> to vector<8x1xf32>
    %34 = vector.broadcast %33 : vector<8x1xf32> to vector<8x8xf32>
    %35 = arith.divf %31, %34 : vector<8x8xf32>
    %36 = arith.truncf %35 : vector<8x8xf32> to vector<8x8xbf16>
    %37 = vector.extract_strided_slice %19 {offsets = [0, 0], sizes = [8, 32], strides = [1, 1]} : vector<8x128xbf16> to vector<8x32xbf16>
    %cst_19 = arith.constant dense<0.000000e+00> : vector<8x32xf32>
    %38 = tpu.matmul %36, %37, %cst_19 {dimension_numbers = #tpu.dot_dimension_numbers<[1], [0], [0], [1], [0, 0, 1, 1], [], []>} : vector<8x8xbf16>, vector<8x32xbf16>, vector<8x32xf32> -> vector<8x32xf32>
    %39 = vector.extract_strided_slice %17 {offsets = [0, 32], sizes = [8, 32], strides = [1, 1]} : vector<8x128xbf16> to vector<8x32xbf16>
    %40 = vector.extract_strided_slice %18 {offsets = [0, 32], sizes = [8, 32], strides = [1, 1]} : vector<8x128xbf16> to vector<8x32xbf16>
    %cst_20 = arith.constant dense<0.000000e+00> : vector<8x8xf32>
    %41 = tpu.matmul %39, %40, %cst_20 {dimension_numbers = #tpu.dot_dimension_numbers<[1], [1], [0], [0], [0, 0, 1, 0], [], []>} : vector<8x32xbf16>, vector<8x32xbf16>, vector<8x8xf32> -> vector<8x8xf32>
    %cst_21 = arith.constant 0.176776692 : f32
    %42 = vector.broadcast %cst_21 : f32 to vector<8x8xf32>
    %43 = arith.mulf %41, %42 : vector<8x8xf32>
    %cst_22 = arith.constant -1.000000e+10 : f32
    %44 = vector.broadcast %cst_22 : f32 to vector<8x8xf32>
    %45 = arith.select %5, %43, %44 : vector<8x8xi1>, vector<8x8xf32>
    %cst_23 = arith.constant dense<0xFF800000> : vector<8xf32>
    %46 = vector.multi_reduction <maximumf>, %45, %cst_23 [1] : vector<8x8xf32> to vector<8xf32>
    %47 = vector.shape_cast %46 : vector<8xf32> to vector<8x1xf32>
    %48 = vector.broadcast %47 : vector<8x1xf32> to vector<8x8xf32>
    %49 = arith.subf %45, %48 : vector<8x8xf32>
    %50 = math.exp %49 : vector<8x8xf32>
    %cst_24 = arith.constant dense<0.000000e+00> : vector<8xf32>
    %51 = vector.multi_reduction <add>, %50, %cst_24 [1] : vector<8x8xf32> to vector<8xf32>
    %52 = vector.shape_cast %51 : vector<8xf32> to vector<8x1xf32>
    %53 = vector.broadcast %52 : vector<8x1xf32> to vector<8x8xf32>
    %54 = arith.divf %50, %53 : vector<8x8xf32>
    %55 = arith.truncf %54 : vector<8x8xf32> to vector<8x8xbf16>
    %56 = vector.extract_strided_slice %19 {offsets = [0, 32], sizes = [8, 32], strides = [1, 1]} : vector<8x128xbf16> to vector<8x32xbf16>
    %cst_25 = arith.constant dense<0.000000e+00> : vector<8x32xf32>
    %57 = tpu.matmul %55, %56, %cst_25 {dimension_numbers = #tpu.dot_dimension_numbers<[1], [0], [0], [1], [0, 0, 1, 1], [], []>} : vector<8x8xbf16>, vector<8x32xbf16>, vector<8x32xf32> -> vector<8x32xf32>
    %58 = vector.extract_strided_slice %17 {offsets = [0, 64], sizes = [8, 32], strides = [1, 1]} : vector<8x128xbf16> to vector<8x32xbf16>
    %59 = vector.extract_strided_slice %18 {offsets = [0, 64], sizes = [8, 32], strides = [1, 1]} : vector<8x128xbf16> to vector<8x32xbf16>
    %cst_26 = arith.constant dense<0.000000e+00> : vector<8x8xf32>
    %60 = tpu.matmul %58, %59, %cst_26 {dimension_numbers = #tpu.dot_dimension_numbers<[1], [1], [0], [0], [0, 0, 1, 0], [], []>} : vector<8x32xbf16>, vector<8x32xbf16>, vector<8x8xf32> -> vector<8x8xf32>
    %cst_27 = arith.constant 0.176776692 : f32
    %61 = vector.broadcast %cst_27 : f32 to vector<8x8xf32>
    %62 = arith.mulf %60, %61 : vector<8x8xf32>
    %cst_28 = arith.constant -1.000000e+10 : f32
    %63 = vector.broadcast %cst_28 : f32 to vector<8x8xf32>
    %64 = arith.select %5, %62, %63 : vector<8x8xi1>, vector<8x8xf32>
    %cst_29 = arith.constant dense<0xFF800000> : vector<8xf32>
    %65 = vector.multi_reduction <maximumf>, %64, %cst_29 [1] : vector<8x8xf32> to vector<8xf32>
    %66 = vector.shape_cast %65 : vector<8xf32> to vector<8x1xf32>
    %67 = vector.broadcast %66 : vector<8x1xf32> to vector<8x8xf32>
    %68 = arith.subf %64, %67 : vector<8x8xf32>
    %69 = math.exp %68 : vector<8x8xf32>
    %cst_30 = arith.constant dense<0.000000e+00> : vector<8xf32>
    %70 = vector.multi_reduction <add>, %69, %cst_30 [1] : vector<8x8xf32> to vector<8xf32>
    %71 = vector.shape_cast %70 : vector<8xf32> to vector<8x1xf32>
    %72 = vector.broadcast %71 : vector<8x1xf32> to vector<8x8xf32>
    %73 = arith.divf %69, %72 : vector<8x8xf32>
    %74 = arith.truncf %73 : vector<8x8xf32> to vector<8x8xbf16>
    %75 = vector.extract_strided_slice %19 {offsets = [0, 64], sizes = [8, 32], strides = [1, 1]} : vector<8x128xbf16> to vector<8x32xbf16>
    %cst_31 = arith.constant dense<0.000000e+00> : vector<8x32xf32>
    %76 = tpu.matmul %74, %75, %cst_31 {dimension_numbers = #tpu.dot_dimension_numbers<[1], [0], [0], [1], [0, 0, 1, 1], [], []>} : vector<8x8xbf16>, vector<8x32xbf16>, vector<8x32xf32> -> vector<8x32xf32>
    %77 = vector.extract_strided_slice %17 {offsets = [0, 96], sizes = [8, 32], strides = [1, 1]} : vector<8x128xbf16> to vector<8x32xbf16>
    %78 = vector.extract_strided_slice %18 {offsets = [0, 96], sizes = [8, 32], strides = [1, 1]} : vector<8x128xbf16> to vector<8x32xbf16>
    %cst_32 = arith.constant dense<0.000000e+00> : vector<8x8xf32>
    %79 = tpu.matmul %77, %78, %cst_32 {dimension_numbers = #tpu.dot_dimension_numbers<[1], [1], [0], [0], [0, 0, 1, 0], [], []>} : vector<8x32xbf16>, vector<8x32xbf16>, vector<8x8xf32> -> vector<8x8xf32>
    %cst_33 = arith.constant 0.176776692 : f32
    %80 = vector.broadcast %cst_33 : f32 to vector<8x8xf32>
    %81 = arith.mulf %79, %80 : vector<8x8xf32>
    %cst_34 = arith.constant -1.000000e+10 : f32
    %82 = vector.broadcast %cst_34 : f32 to vector<8x8xf32>
    %83 = arith.select %5, %81, %82 : vector<8x8xi1>, vector<8x8xf32>
    %cst_35 = arith.constant dense<0xFF800000> : vector<8xf32>
    %84 = vector.multi_reduction <maximumf>, %83, %cst_35 [1] : vector<8x8xf32> to vector<8xf32>
    %85 = vector.shape_cast %84 : vector<8xf32> to vector<8x1xf32>
    %86 = vector.broadcast %85 : vector<8x1xf32> to vector<8x8xf32>
    %87 = arith.subf %83, %86 : vector<8x8xf32>
    %88 = math.exp %87 : vector<8x8xf32>
    %cst_36 = arith.constant dense<0.000000e+00> : vector<8xf32>
    %89 = vector.multi_reduction <add>, %88, %cst_36 [1] : vector<8x8xf32> to vector<8xf32>
    %90 = vector.shape_cast %89 : vector<8xf32> to vector<8x1xf32>
    %91 = vector.broadcast %90 : vector<8x1xf32> to vector<8x8xf32>
    %92 = arith.divf %88, %91 : vector<8x8xf32>
    %93 = arith.truncf %92 : vector<8x8xf32> to vector<8x8xbf16>
    %94 = vector.extract_strided_slice %19 {offsets = [0, 96], sizes = [8, 32], strides = [1, 1]} : vector<8x128xbf16> to vector<8x32xbf16>
    %cst_37 = arith.constant dense<0.000000e+00> : vector<8x32xf32>
    %95 = tpu.matmul %93, %94, %cst_37 {dimension_numbers = #tpu.dot_dimension_numbers<[1], [0], [0], [1], [0, 0, 1, 1], [], []>} : vector<8x8xbf16>, vector<8x32xbf16>, vector<8x32xf32> -> vector<8x32xf32>
    %96 = tpu.concatenate %38, %57, %76, %95 in 1 : vector<8x32xf32>, vector<8x32xf32>, vector<8x32xf32>, vector<8x32xf32> -> vector<8x128xf32>
    %97 = arith.truncf %96 : vector<8x128xf32> to vector<8x128xbf16>
    %cst_38 = arith.constant dense<0.000000e+00> : vector<8x128xf32>
    %98 = tpu.matmul %97, %8, %cst_38 {dimension_numbers = #tpu.dot_dimension_numbers<[1], [0], [0], [1], [0, 0, 1, 1], [], []>} : vector<8x128xbf16>, vector<128x128xbf16>, vector<8x128xf32> -> vector<8x128xf32>
    %99 = vector.broadcast %9 : vector<1x128xf32> to vector<8x128xf32>
    %100 = arith.addf %98, %99 : vector<8x128xf32>
    %101 = arith.addf %1, %100 : vector<8x128xf32>
    %c0_39 = arith.constant 0 : index
    %c0_40 = arith.constant 0 : index
    %102 = vector.load %arg7[%c0_39, %c0_40] : memref<1x128xf32, #tpu.memory_space<vmem>>, vector<1x128xf32>
    %c0_41 = arith.constant 0 : index
    %c0_42 = arith.constant 0 : index
    %103 = vector.load %arg8[%c0_41, %c0_42] : memref<1x128xf32, #tpu.memory_space<vmem>>, vector<1x128xf32>
    %cst_43 = arith.constant dense<0.000000e+00> : vector<8xf32>
    %104 = vector.multi_reduction <add>, %101, %cst_43 [1] : vector<8x128xf32> to vector<8xf32>
    %105 = vector.shape_cast %104 : vector<8xf32> to vector<8x1xf32>
    %cst_44 = arith.constant 1.280000e+02 : f32
    %106 = vector.broadcast %cst_44 : f32 to vector<8x1xf32>
    %107 = arith.divf %105, %106 : vector<8x1xf32>
    %108 = vector.broadcast %107 : vector<8x1xf32> to vector<8x128xf32>
    %109 = arith.subf %101, %108 : vector<8x128xf32>
    %110 = arith.mulf %109, %109 : vector<8x128xf32>
    %cst_45 = arith.constant dense<0.000000e+00> : vector<8xf32>
    %111 = vector.multi_reduction <add>, %110, %cst_45 [1] : vector<8x128xf32> to vector<8xf32>
    %112 = vector.shape_cast %111 : vector<8xf32> to vector<8x1xf32>
    %cst_46 = arith.constant 1.280000e+02 : f32
    %113 = vector.broadcast %cst_46 : f32 to vector<8x1xf32>
    %114 = arith.divf %112, %113 : vector<8x1xf32>
    %cst_47 = arith.constant 9.99999974E-6 : f32
    %115 = vector.broadcast %cst_47 : f32 to vector<8x1xf32>
    %116 = arith.addf %114, %115 : vector<8x1xf32>
    %117 = math.rsqrt %116 : vector<8x1xf32>
    %118 = vector.broadcast %117 : vector<8x1xf32> to vector<8x128xf32>
    %119 = arith.mulf %109, %118 : vector<8x128xf32>
    %120 = vector.broadcast %102 : vector<1x128xf32> to vector<8x128xf32>
    %121 = arith.mulf %119, %120 : vector<8x128xf32>
    %122 = vector.broadcast %103 : vector<1x128xf32> to vector<8x128xf32>
    %123 = arith.addf %121, %122 : vector<8x128xf32>
    %c0_48 = arith.constant 0 : index
    %c0_49 = arith.constant 0 : index
    %124 = vector.load %arg9[%c0_48, %c0_49] : memref<128x256xbf16, #tpu.memory_space<vmem>>, vector<128x256xbf16>
    %c0_50 = arith.constant 0 : index
    %c0_51 = arith.constant 0 : index
    %125 = vector.load %arg10[%c0_50, %c0_51] : memref<1x256xf32, #tpu.memory_space<vmem>>, vector<1x256xf32>
    %c0_52 = arith.constant 0 : index
    %c0_53 = arith.constant 0 : index
    %126 = vector.load %arg11[%c0_52, %c0_53] : memref<256x128xbf16, #tpu.memory_space<vmem>>, vector<256x128xbf16>
    %c0_54 = arith.constant 0 : index
    %c0_55 = arith.constant 0 : index
    %127 = vector.load %arg12[%c0_54, %c0_55] : memref<1x128xf32, #tpu.memory_space<vmem>>, vector<1x128xf32>
    %128 = arith.truncf %123 : vector<8x128xf32> to vector<8x128xbf16>
    %cst_56 = arith.constant dense<0.000000e+00> : vector<8x256xf32>
    %129 = tpu.matmul %128, %124, %cst_56 {dimension_numbers = #tpu.dot_dimension_numbers<[1], [0], [0], [1], [0, 0, 1, 1], [], []>} : vector<8x128xbf16>, vector<128x256xbf16>, vector<8x256xf32> -> vector<8x256xf32>
    %130 = vector.broadcast %125 : vector<1x256xf32> to vector<8x256xf32>
    %131 = arith.addf %129, %130 : vector<8x256xf32>
    %cst_57 = arith.constant 0.000000e+00 : f32
    %132 = vector.broadcast %cst_57 : f32 to vector<8x256xf32>
    %133 = arith.maximumf %131, %132 : vector<8x256xf32>
    %134 = arith.truncf %133 : vector<8x256xf32> to vector<8x256xbf16>
    %cst_58 = arith.constant dense<0.000000e+00> : vector<8x128xf32>
    %135 = tpu.matmul %134, %126, %cst_58 {dimension_numbers = #tpu.dot_dimension_numbers<[1], [0], [0], [1], [0, 0, 1, 1], [], []>} : vector<8x256xbf16>, vector<256x128xbf16>, vector<8x128xf32> -> vector<8x128xf32>
    %136 = vector.broadcast %127 : vector<1x128xf32> to vector<8x128xf32>
    %137 = arith.addf %135, %136 : vector<8x128xf32>
    %138 = arith.addf %123, %137 : vector<8x128xf32>
    %c0_59 = arith.constant 0 : index
    %c0_60 = arith.constant 0 : index
    %139 = vector.load %arg13[%c0_59, %c0_60] : memref<1x128xf32, #tpu.memory_space<vmem>>, vector<1x128xf32>
    %c0_61 = arith.constant 0 : index
    %c0_62 = arith.constant 0 : index
    %140 = vector.load %arg14[%c0_61, %c0_62] : memref<1x128xf32, #tpu.memory_space<vmem>>, vector<1x128xf32>
    %cst_63 = arith.constant dense<0.000000e+00> : vector<8xf32>
    %141 = vector.multi_reduction <add>, %138, %cst_63 [1] : vector<8x128xf32> to vector<8xf32>
    %142 = vector.shape_cast %141 : vector<8xf32> to vector<8x1xf32>
    %cst_64 = arith.constant 1.280000e+02 : f32
    %143 = vector.broadcast %cst_64 : f32 to vector<8x1xf32>
    %144 = arith.divf %142, %143 : vector<8x1xf32>
    %145 = vector.broadcast %144 : vector<8x1xf32> to vector<8x128xf32>
    %146 = arith.subf %138, %145 : vector<8x128xf32>
    %147 = arith.mulf %146, %146 : vector<8x128xf32>
    %cst_65 = arith.constant dense<0.000000e+00> : vector<8xf32>
    %148 = vector.multi_reduction <add>, %147, %cst_65 [1] : vector<8x128xf32> to vector<8xf32>
    %149 = vector.shape_cast %148 : vector<8xf32> to vector<8x1xf32>
    %cst_66 = arith.constant 1.280000e+02 : f32
    %150 = vector.broadcast %cst_66 : f32 to vector<8x1xf32>
    %151 = arith.divf %149, %150 : vector<8x1xf32>
    %cst_67 = arith.constant 9.99999974E-6 : f32
    %152 = vector.broadcast %cst_67 : f32 to vector<8x1xf32>
    %153 = arith.addf %151, %152 : vector<8x1xf32>
    %154 = math.rsqrt %153 : vector<8x1xf32>
    %155 = vector.broadcast %154 : vector<8x1xf32> to vector<8x128xf32>
    %156 = arith.mulf %146, %155 : vector<8x128xf32>
    %157 = vector.broadcast %139 : vector<1x128xf32> to vector<8x128xf32>
    %158 = arith.mulf %156, %157 : vector<8x128xf32>
    %159 = vector.broadcast %140 : vector<1x128xf32> to vector<8x128xf32>
    %160 = arith.addf %158, %159 : vector<8x128xf32>
    %c0_68 = arith.constant 0 : index
    %c0_69 = arith.constant 0 : index
    %c0_70 = arith.constant 0 : index
    %161 = vector.load %arg15[%c0_68, %c0_69, %c0_70] : memref<1x8x128xf32, #tpu.memory_space<vmem>>, vector<1x8x128xf32>
    %162 = vector.shape_cast %161 : vector<1x8x128xf32> to vector<8x128xf32>
    %163 = vector.shape_cast %160 : vector<8x128xf32> to vector<1x8x128xf32>
    tpu.vector_store %arg15[%c0_68, %c0_69, %c0_70], %163 {strides = array<i32>} : memref<1x8x128xf32, #tpu.memory_space<vmem>>, vector<1x8x128xf32>,
    return
  }
  func.func @transform_0(%arg0: i32) -> (i32, i32, i32) {
    %c0_i32 = arith.constant 0 : i32
    %c0_i32_0 = arith.constant 0 : i32
    %c0_i32_1 = arith.constant 0 : i32
    return %arg0, %c0_i32, %c0_i32_0 : i32, i32, i32
  }
  func.func @transform_1(%arg0: i32) -> (i32, i32, i32) {
    %c0_i32 = arith.constant 0 : i32
    %c0_i32_0 = arith.constant 0 : i32
    %c0_i32_1 = arith.constant 0 : i32
    return %arg0, %c0_i32, %c0_i32_0 : i32, i32, i32
  }
  func.func @transform_2(%arg0: i32) -> (i32, i32) {
    %c0_i32 = arith.constant 0 : i32
    %c0_i32_0 = arith.constant 0 : i32
    %c0_i32_1 = arith.constant 0 : i32
    return %c0_i32, %c0_i32_0 : i32, i32
  }
  func.func @transform_3(%arg0: i32) -> (i32, i32) {
    %c0_i32 = arith.constant 0 : i32
    %c0_i32_0 = arith.constant 0 : i32
    %c0_i32_1 = arith.constant 0 : i32
    return %c0_i32, %c0_i32_0 : i32, i32
  }
  func.func @transform_4(%arg0: i32) -> (i32, i32) {
    %c0_i32 = arith.constant 0 : i32
    %c0_i32_0 = arith.constant 0 : i32
    %c0_i32_1 = arith.constant 0 : i32
    return %c0_i32, %c0_i32_0 : i32, i32
  }
  func.func @transform_5(%arg0: i32) -> (i32, i32) {
    %c0_i32 = arith.constant 0 : i32
    %c0_i32_0 = arith.constant 0 : i32
    %c0_i32_1 = arith.constant 0 : i32
    return %c0_i32, %c0_i32_0 : i32, i32
  }
  func.func @transform_6(%arg0: i32) -> (i32, i32) {
    %c0_i32 = arith.constant 0 : i32
    %c0_i32_0 = arith.constant 0 : i32
    %c0_i32_1 = arith.constant 0 : i32
    return %c0_i32, %c0_i32_0 : i32, i32
  }
  func.func @transform_7(%arg0: i32) -> (i32, i32) {
    %c0_i32 = arith.constant 0 : i32
    %c0_i32_0 = arith.constant 0 : i32
    %c0_i32_1 = arith.constant 0 : i32
    return %c0_i32, %c0_i32_0 : i32, i32
  }
  func.func @transform_8(%arg0: i32) -> (i32, i32) {
    %c0_i32 = arith.constant 0 : i32
    %c0_i32_0 = arith.constant 0 : i32
    %c0_i32_1 = arith.constant 0 : i32
    return %c0_i32, %c0_i32_0 : i32, i32
  }
  func.func @transform_9(%arg0: i32) -> (i32, i32) {
    %c0_i32 = arith.constant 0 : i32
    %c0_i32_0 = arith.constant 0 : i32
    %c0_i32_1 = arith.constant 0 : i32
    return %c0_i32, %c0_i32_0 : i32, i32
  }
  func.func @transform_10(%arg0: i32) -> (i32, i32) {
    %c0_i32 = arith.constant 0 : i32
    %c0_i32_0 = arith.constant 0 : i32
    %c0_i32_1 = arith.constant 0 : i32
    return %c0_i32, %c0_i32_0 : i32, i32
  }
  func.func @transform_11(%arg0: i32) -> (i32, i32) {
    %c0_i32 = arith.constant 0 : i32
    %c0_i32_0 = arith.constant 0 : i32
    %c0_i32_1 = arith.constant 0 : i32
    return %c0_i32, %c0_i32_0 : i32, i32
  }
  func.func @transform_12(%arg0: i32) -> (i32, i32) {
    %c0_i32 = arith.constant 0 : i32
    %c0_i32_0 = arith.constant 0 : i32
    %c0_i32_1 = arith.constant 0 : i32
    return %c0_i32, %c0_i32_0 : i32, i32
  }
  func.func @transform_13(%arg0: i32) -> (i32, i32) {
    %c0_i32 = arith.constant 0 : i32
    %c0_i32_0 = arith.constant 0 : i32
    %c0_i32_1 = arith.constant 0 : i32
    return %c0_i32, %c0_i32_0 : i32, i32
  }
  func.func @transform_14(%arg0: i32) -> (i32, i32, i32) {
    %c0_i32 = arith.constant 0 : i32
    %c0_i32_0 = arith.constant 0 : i32
    %c0_i32_1 = arith.constant 0 : i32
    return %arg0, %c0_i32, %c0_i32_0 : i32, i32, i32
  }
}

module attributes {stable_mosaic.version = 11 : i64} {
  func.func @_style_head_kernel(%arg0: i32, %arg1: memref<2x8x128xf32, #tpu.memory_space<vmem>>, %arg2: memref<128x384xbf16, #tpu.memory_space<vmem>>, %arg3: memref<1x384xf32, #tpu.memory_space<vmem>>, %arg4: memref<128x128xbf16, #tpu.memory_space<vmem>>, %arg5: memref<1x128xf32, #tpu.memory_space<vmem>>, %arg6: memref<2x8x128xf32, #tpu.memory_space<vmem>>, %arg7: memref<2x8x128xf32, #tpu.memory_space<vmem>>, %arg8: memref<2x8x128xf32, #tpu.memory_space<vmem>>, %arg9: memref<2x8x128xf32, #tpu.memory_space<vmem>>, %arg10: memref<2x8x128xf32, #tpu.memory_space<vmem>>, %arg11: memref<2x128xf32, #tpu.memory_space<vmem>>) attributes {dimension_semantics = [#tpu.dimension_semantics<arbitrary>], iteration_bounds = array<i64: 1>, scalar_prefetch = 0 : i64, scratch_operands = 0 : i64, tpu.core_type = #tpu.core_type<tc>, window_params = [{pipeline_mode = #tpu.pipeline_mode<synchronous>, transform_indices = @transform_0, window_bounds = array<i64: 2, 8, 128>}, {pipeline_mode = #tpu.pipeline_mode<synchronous>, transform_indices = @transform_1, window_bounds = array<i64: 128, 384>}, {pipeline_mode = #tpu.pipeline_mode<synchronous>, transform_indices = @transform_2, window_bounds = array<i64: 1, 384>}, {pipeline_mode = #tpu.pipeline_mode<synchronous>, transform_indices = @transform_3, window_bounds = array<i64: 128, 128>}, {pipeline_mode = #tpu.pipeline_mode<synchronous>, transform_indices = @transform_4, window_bounds = array<i64: 1, 128>}, {pipeline_mode = #tpu.pipeline_mode<synchronous>, transform_indices = @transform_5, window_bounds = array<i64: 2, 8, 128>}, {pipeline_mode = #tpu.pipeline_mode<synchronous>, transform_indices = @transform_6, window_bounds = array<i64: 2, 8, 128>}, {pipeline_mode = #tpu.pipeline_mode<synchronous>, transform_indices = @transform_7, window_bounds = array<i64: 2, 8, 128>}, {pipeline_mode = #tpu.pipeline_mode<synchronous>, transform_indices = @transform_8, window_bounds = array<i64: 2, 8, 128>}, {pipeline_mode = #tpu.pipeline_mode<synchronous>, transform_indices = @transform_9, window_bounds = array<i64: 2, 8, 128>}, {pipeline_mode = #tpu.pipeline_mode<synchronous>, transform_indices = @transform_10, window_bounds = array<i64: 2, 128>}]} {
    %c0 = arith.constant 0 : index
    %c0_0 = arith.constant 0 : index
    %c0_1 = arith.constant 0 : index
    %0 = vector.load %arg1[%c0, %c0_0, %c0_1] : memref<2x8x128xf32, #tpu.memory_space<vmem>>, vector<2x8x128xf32>
    %1 = vector.shape_cast %0 : vector<2x8x128xf32> to vector<16x128xf32>
    %c0_2 = arith.constant 0 : index
    %c0_3 = arith.constant 0 : index
    %2 = vector.load %arg2[%c0_2, %c0_3] : memref<128x384xbf16, #tpu.memory_space<vmem>>, vector<128x384xbf16>
    %3 = arith.truncf %1 : vector<16x128xf32> to vector<16x128xbf16>
    %cst = arith.constant dense<0.000000e+00> : vector<16x384xf32>
    %4 = tpu.matmul %3, %2, %cst {dimension_numbers = #tpu.dot_dimension_numbers<[1], [0], [0], [1], [0, 0, 1, 1], [], []>} : vector<16x128xbf16>, vector<128x384xbf16>, vector<16x384xf32> -> vector<16x384xf32>
    %c0_4 = arith.constant 0 : index
    %c0_5 = arith.constant 0 : index
    %5 = vector.load %arg3[%c0_4, %c0_5] : memref<1x384xf32, #tpu.memory_space<vmem>>, vector<1x384xf32>
    %6 = vector.broadcast %5 : vector<1x384xf32> to vector<16x384xf32>
    %7 = arith.addf %4, %6 : vector<16x384xf32>
    %8 = vector.extract_strided_slice %7 {offsets = [0, 0], sizes = [16, 128], strides = [1, 1]} : vector<16x384xf32> to vector<16x128xf32>
    %9 = vector.extract_strided_slice %7 {offsets = [0, 128], sizes = [16, 128], strides = [1, 1]} : vector<16x384xf32> to vector<16x128xf32>
    %10 = vector.extract_strided_slice %7 {offsets = [0, 256], sizes = [16, 128], strides = [1, 1]} : vector<16x384xf32> to vector<16x128xf32>
    %11 = vector.shape_cast %8 : vector<16x128xf32> to vector<2x8x128xf32>
    %c0_6 = arith.constant 0 : index
    %c0_7 = arith.constant 0 : index
    %c0_8 = arith.constant 0 : index
    %12 = vector.load %arg6[%c0_6, %c0_7, %c0_8] : memref<2x8x128xf32, #tpu.memory_space<vmem>>, vector<2x8x128xf32>
    tpu.vector_store %arg6[%c0_6, %c0_7, %c0_8], %11 {strides = array<i32>} : memref<2x8x128xf32, #tpu.memory_space<vmem>>, vector<2x8x128xf32>,
    %13 = vector.shape_cast %9 : vector<16x128xf32> to vector<2x8x128xf32>
    %c0_9 = arith.constant 0 : index
    %c0_10 = arith.constant 0 : index
    %c0_11 = arith.constant 0 : index
    %14 = vector.load %arg7[%c0_9, %c0_10, %c0_11] : memref<2x8x128xf32, #tpu.memory_space<vmem>>, vector<2x8x128xf32>
    tpu.vector_store %arg7[%c0_9, %c0_10, %c0_11], %13 {strides = array<i32>} : memref<2x8x128xf32, #tpu.memory_space<vmem>>, vector<2x8x128xf32>,
    %15 = vector.shape_cast %10 : vector<16x128xf32> to vector<2x8x128xf32>
    %c0_12 = arith.constant 0 : index
    %c0_13 = arith.constant 0 : index
    %c0_14 = arith.constant 0 : index
    %16 = vector.load %arg8[%c0_12, %c0_13, %c0_14] : memref<2x8x128xf32, #tpu.memory_space<vmem>>, vector<2x8x128xf32>
    tpu.vector_store %arg8[%c0_12, %c0_13, %c0_14], %15 {strides = array<i32>} : memref<2x8x128xf32, #tpu.memory_space<vmem>>, vector<2x8x128xf32>,
    %17 = arith.addf %8, %10 : vector<16x128xf32>
    %18 = vector.shape_cast %17 : vector<16x128xf32> to vector<2x8x128xf32>
    %c0_15 = arith.constant 0 : index
    %c0_16 = arith.constant 0 : index
    %c0_17 = arith.constant 0 : index
    %19 = vector.load %arg9[%c0_15, %c0_16, %c0_17] : memref<2x8x128xf32, #tpu.memory_space<vmem>>, vector<2x8x128xf32>
    tpu.vector_store %arg9[%c0_15, %c0_16, %c0_17], %18 {strides = array<i32>} : memref<2x8x128xf32, #tpu.memory_space<vmem>>, vector<2x8x128xf32>,
    %20 = arith.addf %9, %10 : vector<16x128xf32>
    %21 = vector.shape_cast %20 : vector<16x128xf32> to vector<2x8x128xf32>
    %c0_18 = arith.constant 0 : index
    %c0_19 = arith.constant 0 : index
    %c0_20 = arith.constant 0 : index
    %22 = vector.load %arg10[%c0_18, %c0_19, %c0_20] : memref<2x8x128xf32, #tpu.memory_space<vmem>>, vector<2x8x128xf32>
    tpu.vector_store %arg10[%c0_18, %c0_19, %c0_20], %21 {strides = array<i32>} : memref<2x8x128xf32, #tpu.memory_space<vmem>>, vector<2x8x128xf32>,
    %cst_21 = arith.constant dense<0.000000e+00> : vector<2x128xf32>
    %23 = vector.multi_reduction <add>, %11, %cst_21 [1] : vector<2x8x128xf32> to vector<2x128xf32>
    %cst_22 = arith.constant 8.000000e+00 : f32
    %24 = vector.broadcast %cst_22 : f32 to vector<2x128xf32>
    %25 = arith.divf %23, %24 : vector<2x128xf32>
    %c0_23 = arith.constant 0 : index
    %c0_24 = arith.constant 0 : index
    %26 = vector.load %arg4[%c0_23, %c0_24] : memref<128x128xbf16, #tpu.memory_space<vmem>>, vector<128x128xbf16>
    %27 = arith.truncf %25 : vector<2x128xf32> to vector<2x128xbf16>
    %cst_25 = arith.constant dense<0.000000e+00> : vector<2x128xf32>
    %28 = tpu.matmul %27, %26, %cst_25 {dimension_numbers = #tpu.dot_dimension_numbers<[1], [0], [0], [1], [0, 0, 1, 1], [], []>} : vector<2x128xbf16>, vector<128x128xbf16>, vector<2x128xf32> -> vector<2x128xf32>
    %c0_26 = arith.constant 0 : index
    %c0_27 = arith.constant 0 : index
    %29 = vector.load %arg5[%c0_26, %c0_27] : memref<1x128xf32, #tpu.memory_space<vmem>>, vector<1x128xf32>
    %30 = vector.broadcast %29 : vector<1x128xf32> to vector<2x128xf32>
    %31 = arith.addf %28, %30 : vector<2x128xf32>
    %c0_28 = arith.constant 0 : index
    %c0_29 = arith.constant 0 : index
    %32 = vector.load %arg11[%c0_28, %c0_29] : memref<2x128xf32, #tpu.memory_space<vmem>>, vector<2x128xf32>
    tpu.vector_store %arg11[%c0_28, %c0_29], %31 {strides = array<i32>} : memref<2x128xf32, #tpu.memory_space<vmem>>, vector<2x128xf32>,
    return
  }
  func.func @transform_0(%arg0: i32) -> (i32, i32, i32) {
    %c0_i32 = arith.constant 0 : i32
    %c0_i32_0 = arith.constant 0 : i32
    %c0_i32_1 = arith.constant 0 : i32
    %c0_i32_2 = arith.constant 0 : i32
    return %c0_i32, %c0_i32_0, %c0_i32_1 : i32, i32, i32
  }
  func.func @transform_1(%arg0: i32) -> (i32, i32) {
    %c0_i32 = arith.constant 0 : i32
    %c0_i32_0 = arith.constant 0 : i32
    %c0_i32_1 = arith.constant 0 : i32
    return %c0_i32, %c0_i32_0 : i32, i32
  }
  func.func @transform_2(%arg0: i32) -> (i32, i32) {
    %c0_i32 = arith.constant 0 : i32
    %c0_i32_0 = arith.constant 0 : i32
    %c0_i32_1 = arith.constant 0 : i32
    return %c0_i32, %c0_i32_0 : i32, i32
  }
  func.func @transform_3(%arg0: i32) -> (i32, i32) {
    %c0_i32 = arith.constant 0 : i32
    %c0_i32_0 = arith.constant 0 : i32
    %c0_i32_1 = arith.constant 0 : i32
    return %c0_i32, %c0_i32_0 : i32, i32
  }
  func.func @transform_4(%arg0: i32) -> (i32, i32) {
    %c0_i32 = arith.constant 0 : i32
    %c0_i32_0 = arith.constant 0 : i32
    %c0_i32_1 = arith.constant 0 : i32
    return %c0_i32, %c0_i32_0 : i32, i32
  }
  func.func @transform_5(%arg0: i32) -> (i32, i32, i32) {
    %c0_i32 = arith.constant 0 : i32
    %c0_i32_0 = arith.constant 0 : i32
    %c0_i32_1 = arith.constant 0 : i32
    %c0_i32_2 = arith.constant 0 : i32
    return %c0_i32, %c0_i32_0, %c0_i32_1 : i32, i32, i32
  }
  func.func @transform_6(%arg0: i32) -> (i32, i32, i32) {
    %c0_i32 = arith.constant 0 : i32
    %c0_i32_0 = arith.constant 0 : i32
    %c0_i32_1 = arith.constant 0 : i32
    %c0_i32_2 = arith.constant 0 : i32
    return %c0_i32, %c0_i32_0, %c0_i32_1 : i32, i32, i32
  }
  func.func @transform_7(%arg0: i32) -> (i32, i32, i32) {
    %c0_i32 = arith.constant 0 : i32
    %c0_i32_0 = arith.constant 0 : i32
    %c0_i32_1 = arith.constant 0 : i32
    %c0_i32_2 = arith.constant 0 : i32
    return %c0_i32, %c0_i32_0, %c0_i32_1 : i32, i32, i32
  }
  func.func @transform_8(%arg0: i32) -> (i32, i32, i32) {
    %c0_i32 = arith.constant 0 : i32
    %c0_i32_0 = arith.constant 0 : i32
    %c0_i32_1 = arith.constant 0 : i32
    %c0_i32_2 = arith.constant 0 : i32
    return %c0_i32, %c0_i32_0, %c0_i32_1 : i32, i32, i32
  }
  func.func @transform_9(%arg0: i32) -> (i32, i32, i32) {
    %c0_i32 = arith.constant 0 : i32
    %c0_i32_0 = arith.constant 0 : i32
    %c0_i32_1 = arith.constant 0 : i32
    %c0_i32_2 = arith.constant 0 : i32
    return %c0_i32, %c0_i32_0, %c0_i32_1 : i32, i32, i32
  }
  func.func @transform_10(%arg0: i32) -> (i32, i32) {
    %c0_i32 = arith.constant 0 : i32
    %c0_i32_0 = arith.constant 0 : i32
    %c0_i32_1 = arith.constant 0 : i32
    return %c0_i32, %c0_i32_0 : i32, i32
  }
}

module attributes {stable_mosaic.version = 11 : i64} {
  func.func @_dual_decoder_kernel(%arg0: i32, %arg1: i32, %arg2: memref<1x1x8x128xf32, #tpu.memory_space<vmem>>, %arg3: memref<1x1x8x128xf32, #tpu.memory_space<vmem>>, %arg4: memref<1x8x8xf32, #tpu.memory_space<vmem>>, %arg5: memref<1x8x8xf32, #tpu.memory_space<vmem>>, %arg6: memref<1x128x384xbf16, #tpu.memory_space<vmem>>, %arg7: memref<1x1x384xf32, #tpu.memory_space<vmem>>, %arg8: memref<1x128x128xbf16, #tpu.memory_space<vmem>>, %arg9: memref<1x1x128xf32, #tpu.memory_space<vmem>>, %arg10: memref<1x1x128xf32, #tpu.memory_space<vmem>>, %arg11: memref<1x1x128xf32, #tpu.memory_space<vmem>>, %arg12: memref<1x128x128xbf16, #tpu.memory_space<vmem>>, %arg13: memref<1x1x128xf32, #tpu.memory_space<vmem>>, %arg14: memref<1x128x256xbf16, #tpu.memory_space<vmem>>, %arg15: memref<1x1x256xf32, #tpu.memory_space<vmem>>, %arg16: memref<1x128x128xbf16, #tpu.memory_space<vmem>>, %arg17: memref<1x1x128xf32, #tpu.memory_space<vmem>>, %arg18: memref<1x1x128xf32, #tpu.memory_space<vmem>>, %arg19: memref<1x1x128xf32, #tpu.memory_space<vmem>>, %arg20: memref<1x128x256xbf16, #tpu.memory_space<vmem>>, %arg21: memref<1x1x256xf32, #tpu.memory_space<vmem>>, %arg22: memref<1x256x128xbf16, #tpu.memory_space<vmem>>, %arg23: memref<1x1x128xf32, #tpu.memory_space<vmem>>, %arg24: memref<1x1x128xf32, #tpu.memory_space<vmem>>, %arg25: memref<1x1x128xf32, #tpu.memory_space<vmem>>, %arg26: memref<1x128x128xbf16, #tpu.memory_space<vmem>>, %arg27: memref<1x1x128xf32, #tpu.memory_space<vmem>>, %arg28: memref<1x1x8x128xf32, #tpu.memory_space<vmem>>, %arg29: memref<1x1x4x8x8xf32, #tpu.memory_space<vmem>>) attributes {dimension_semantics = [#tpu.dimension_semantics<parallel>, #tpu.dimension_semantics<parallel>], iteration_bounds = array<i64: 2, 2>, scalar_prefetch = 0 : i64, scratch_operands = 0 : i64, tpu.core_type = #tpu.core_type<tc>, window_params = [{transform_indices = @transform_0, window_bounds = array<i64: 1, 1, 8, 128>}, {transform_indices = @transform_1, window_bounds = array<i64: 1, 1, 8, 128>}, {transform_indices = @transform_2, window_bounds = array<i64: 1, 8, 8>}, {transform_indices = @transform_3, window_bounds = array<i64: 1, 8, 8>}, {transform_indices = @transform_4, window_bounds = array<i64: 1, 128, 384>}, {transform_indices = @transform_5, window_bounds = array<i64: 1, 1, 384>}, {transform_indices = @transform_6, window_bounds = array<i64: 1, 128, 128>}, {transform_indices = @transform_7, window_bounds = array<i64: 1, 1, 128>}, {transform_indices = @transform_8, window_bounds = array<i64: 1, 1, 128>}, {transform_indices = @transform_9, window_bounds = array<i64: 1, 1, 128>}, {transform_indices = @transform_10, window_bounds = array<i64: 1, 128, 128>}, {transform_indices = @transform_11, window_bounds = array<i64: 1, 1, 128>}, {transform_indices = @transform_12, window_bounds = array<i64: 1, 128, 256>}, {transform_indices = @transform_13, window_bounds = array<i64: 1, 1, 256>}, {transform_indices = @transform_14, window_bounds = array<i64: 1, 128, 128>}, {transform_indices = @transform_15, window_bounds = array<i64: 1, 1, 128>}, {transform_indices = @transform_16, window_bounds = array<i64: 1, 1, 128>}, {transform_indices = @transform_17, window_bounds = array<i64: 1, 1, 128>}, {transform_indices = @transform_18, window_bounds = array<i64: 1, 128, 256>}, {transform_indices = @transform_19, window_bounds = array<i64: 1, 1, 256>}, {transform_indices = @transform_20, window_bounds = array<i64: 1, 256, 128>}, {transform_indices = @transform_21, window_bounds = array<i64: 1, 1, 128>}, {transform_indices = @transform_22, window_bounds = array<i64: 1, 1, 128>}, {transform_indices = @transform_23, window_bounds = array<i64: 1, 1, 128>}, {transform_indices = @transform_24, window_bounds = array<i64: 1, 128, 128>}, {transform_indices = @transform_25, window_bounds = array<i64: 1, 1, 128>}, {transform_indices = @transform_26, window_bounds = array<i64: 1, 1, 8, 128>}, {transform_indices = @transform_27, window_bounds = array<i64: 1, 1, 4, 8, 8>}]} {
    %c0 = arith.constant 0 : index
    %c0_0 = arith.constant 0 : index
    %c0_1 = arith.constant 0 : index
    %c0_2 = arith.constant 0 : index
    %0 = vector.load %arg2[%c0, %c0_0, %c0_1, %c0_2] : memref<1x1x8x128xf32, #tpu.memory_space<vmem>>, vector<1x1x8x128xf32>
    %1 = vector.shape_cast %0 : vector<1x1x8x128xf32> to vector<8x128xf32>
    %c0_3 = arith.constant 0 : index
    %c0_4 = arith.constant 0 : index
    %c0_5 = arith.constant 0 : index
    %c0_6 = arith.constant 0 : index
    %2 = vector.load %arg3[%c0_3, %c0_4, %c0_5, %c0_6] : memref<1x1x8x128xf32, #tpu.memory_space<vmem>>, vector<1x1x8x128xf32>
    %3 = vector.shape_cast %2 : vector<1x1x8x128xf32> to vector<8x128xf32>
    %c0_7 = arith.constant 0 : index
    %c0_8 = arith.constant 0 : index
    %c0_9 = arith.constant 0 : index
    %4 = vector.load %arg4[%c0_7, %c0_8, %c0_9] : memref<1x8x8xf32, #tpu.memory_space<vmem>>, vector<1x8x8xf32>
    %5 = vector.shape_cast %4 : vector<1x8x8xf32> to vector<8x8xf32>
    %cst = arith.constant 0.000000e+00 : f32
    %6 = vector.broadcast %cst : f32 to vector<8x8xf32>
    %7 = arith.cmpf ogt, %5, %6 : vector<8x8xf32>
    %c0_10 = arith.constant 0 : index
    %c0_11 = arith.constant 0 : index
    %c0_12 = arith.constant 0 : index
    %8 = vector.load %arg5[%c0_10, %c0_11, %c0_12] : memref<1x8x8xf32, #tpu.memory_space<vmem>>, vector<1x8x8xf32>
    %9 = vector.shape_cast %8 : vector<1x8x8xf32> to vector<8x8xf32>
    %cst_13 = arith.constant 0.000000e+00 : f32
    %10 = vector.broadcast %cst_13 : f32 to vector<8x8xf32>
    %11 = arith.cmpf ogt, %9, %10 : vector<8x8xf32>
    %c0_14 = arith.constant 0 : index
    %c0_15 = arith.constant 0 : index
    %c0_16 = arith.constant 0 : index
    %12 = vector.load %arg6[%c0_14, %c0_15, %c0_16] : memref<1x128x384xbf16, #tpu.memory_space<vmem>>, vector<1x128x384xbf16>
    %13 = vector.shape_cast %12 : vector<1x128x384xbf16> to vector<128x384xbf16>
    %c0_17 = arith.constant 0 : index
    %c0_18 = arith.constant 0 : index
    %c0_19 = arith.constant 0 : index
    %14 = vector.load %arg7[%c0_17, %c0_18, %c0_19] : memref<1x1x384xf32, #tpu.memory_space<vmem>>, vector<1x1x384xf32>
    %15 = vector.shape_cast %14 : vector<1x1x384xf32> to vector<1x384xf32>
    %c0_20 = arith.constant 0 : index
    %c0_21 = arith.constant 0 : index
    %c0_22 = arith.constant 0 : index
    %16 = vector.load %arg8[%c0_20, %c0_21, %c0_22] : memref<1x128x128xbf16, #tpu.memory_space<vmem>>, vector<1x128x128xbf16>
    %17 = vector.shape_cast %16 : vector<1x128x128xbf16> to vector<128x128xbf16>
    %c0_23 = arith.constant 0 : index
    %c0_24 = arith.constant 0 : index
    %c0_25 = arith.constant 0 : index
    %18 = vector.load %arg9[%c0_23, %c0_24, %c0_25] : memref<1x1x128xf32, #tpu.memory_space<vmem>>, vector<1x1x128xf32>
    %19 = vector.shape_cast %18 : vector<1x1x128xf32> to vector<1x128xf32>
    %20 = arith.truncf %1 : vector<8x128xf32> to vector<8x128xbf16>
    %cst_26 = arith.constant dense<0.000000e+00> : vector<8x384xf32>
    %21 = tpu.matmul %20, %13, %cst_26 {dimension_numbers = #tpu.dot_dimension_numbers<[1], [0], [0], [1], [0, 0, 1, 1], [], []>} : vector<8x128xbf16>, vector<128x384xbf16>, vector<8x384xf32> -> vector<8x384xf32>
    %22 = vector.broadcast %15 : vector<1x384xf32> to vector<8x384xf32>
    %23 = arith.addf %21, %22 : vector<8x384xf32>
    %24 = vector.extract_strided_slice %23 {offsets = [0, 0], sizes = [8, 128], strides = [1, 1]} : vector<8x384xf32> to vector<8x128xf32>
    %25 = vector.extract_strided_slice %23 {offsets = [0, 128], sizes = [8, 128], strides = [1, 1]} : vector<8x384xf32> to vector<8x128xf32>
    %26 = vector.extract_strided_slice %23 {offsets = [0, 256], sizes = [8, 128], strides = [1, 1]} : vector<8x384xf32> to vector<8x128xf32>
    %27 = arith.truncf %24 : vector<8x128xf32> to vector<8x128xbf16>
    %28 = arith.truncf %25 : vector<8x128xf32> to vector<8x128xbf16>
    %29 = arith.truncf %26 : vector<8x128xf32> to vector<8x128xbf16>
    %30 = vector.extract_strided_slice %27 {offsets = [0, 0], sizes = [8, 32], strides = [1, 1]} : vector<8x128xbf16> to vector<8x32xbf16>
    %31 = vector.extract_strided_slice %28 {offsets = [0, 0], sizes = [8, 32], strides = [1, 1]} : vector<8x128xbf16> to vector<8x32xbf16>
    %cst_27 = arith.constant dense<0.000000e+00> : vector<8x8xf32>
    %32 = tpu.matmul %30, %31, %cst_27 {dimension_numbers = #tpu.dot_dimension_numbers<[1], [1], [0], [0], [0, 0, 1, 0], [], []>} : vector<8x32xbf16>, vector<8x32xbf16>, vector<8x8xf32> -> vector<8x8xf32>
    %cst_28 = arith.constant 0.176776692 : f32
    %33 = vector.broadcast %cst_28 : f32 to vector<8x8xf32>
    %34 = arith.mulf %32, %33 : vector<8x8xf32>
    %cst_29 = arith.constant -1.000000e+10 : f32
    %35 = vector.broadcast %cst_29 : f32 to vector<8x8xf32>
    %36 = arith.select %7, %34, %35 : vector<8x8xi1>, vector<8x8xf32>
    %cst_30 = arith.constant dense<0xFF800000> : vector<8xf32>
    %37 = vector.multi_reduction <maximumf>, %36, %cst_30 [1] : vector<8x8xf32> to vector<8xf32>
    %38 = vector.shape_cast %37 : vector<8xf32> to vector<8x1xf32>
    %39 = vector.broadcast %38 : vector<8x1xf32> to vector<8x8xf32>
    %40 = arith.subf %36, %39 : vector<8x8xf32>
    %41 = math.exp %40 : vector<8x8xf32>
    %cst_31 = arith.constant dense<0.000000e+00> : vector<8xf32>
    %42 = vector.multi_reduction <add>, %41, %cst_31 [1] : vector<8x8xf32> to vector<8xf32>
    %43 = vector.shape_cast %42 : vector<8xf32> to vector<8x1xf32>
    %44 = vector.broadcast %43 : vector<8x1xf32> to vector<8x8xf32>
    %45 = arith.divf %41, %44 : vector<8x8xf32>
    %46 = arith.truncf %45 : vector<8x8xf32> to vector<8x8xbf16>
    %47 = vector.extract_strided_slice %29 {offsets = [0, 0], sizes = [8, 32], strides = [1, 1]} : vector<8x128xbf16> to vector<8x32xbf16>
    %cst_32 = arith.constant dense<0.000000e+00> : vector<8x32xf32>
    %48 = tpu.matmul %46, %47, %cst_32 {dimension_numbers = #tpu.dot_dimension_numbers<[1], [0], [0], [1], [0, 0, 1, 1], [], []>} : vector<8x8xbf16>, vector<8x32xbf16>, vector<8x32xf32> -> vector<8x32xf32>
    %49 = vector.extract_strided_slice %27 {offsets = [0, 32], sizes = [8, 32], strides = [1, 1]} : vector<8x128xbf16> to vector<8x32xbf16>
    %50 = vector.extract_strided_slice %28 {offsets = [0, 32], sizes = [8, 32], strides = [1, 1]} : vector<8x128xbf16> to vector<8x32xbf16>
    %cst_33 = arith.constant dense<0.000000e+00> : vector<8x8xf32>
    %51 = tpu.matmul %49, %50, %cst_33 {dimension_numbers = #tpu.dot_dimension_numbers<[1], [1], [0], [0], [0, 0, 1, 0], [], []>} : vector<8x32xbf16>, vector<8x32xbf16>, vector<8x8xf32> -> vector<8x8xf32>
    %cst_34 = arith.constant 0.176776692 : f32
    %52 = vector.broadcast %cst_34 : f32 to vector<8x8xf32>
    %53 = arith.mulf %51, %52 : vector<8x8xf32>
    %cst_35 = arith.constant -1.000000e+10 : f32
    %54 = vector.broadcast %cst_35 : f32 to vector<8x8xf32>
    %55 = arith.select %7, %53, %54 : vector<8x8xi1>, vector<8x8xf32>
    %cst_36 = arith.constant dense<0xFF800000> : vector<8xf32>
    %56 = vector.multi_reduction <maximumf>, %55, %cst_36 [1] : vector<8x8xf32> to vector<8xf32>
    %57 = vector.shape_cast %56 : vector<8xf32> to vector<8x1xf32>
    %58 = vector.broadcast %57 : vector<8x1xf32> to vector<8x8xf32>
    %59 = arith.subf %55, %58 : vector<8x8xf32>
    %60 = math.exp %59 : vector<8x8xf32>
    %cst_37 = arith.constant dense<0.000000e+00> : vector<8xf32>
    %61 = vector.multi_reduction <add>, %60, %cst_37 [1] : vector<8x8xf32> to vector<8xf32>
    %62 = vector.shape_cast %61 : vector<8xf32> to vector<8x1xf32>
    %63 = vector.broadcast %62 : vector<8x1xf32> to vector<8x8xf32>
    %64 = arith.divf %60, %63 : vector<8x8xf32>
    %65 = arith.truncf %64 : vector<8x8xf32> to vector<8x8xbf16>
    %66 = vector.extract_strided_slice %29 {offsets = [0, 32], sizes = [8, 32], strides = [1, 1]} : vector<8x128xbf16> to vector<8x32xbf16>
    %cst_38 = arith.constant dense<0.000000e+00> : vector<8x32xf32>
    %67 = tpu.matmul %65, %66, %cst_38 {dimension_numbers = #tpu.dot_dimension_numbers<[1], [0], [0], [1], [0, 0, 1, 1], [], []>} : vector<8x8xbf16>, vector<8x32xbf16>, vector<8x32xf32> -> vector<8x32xf32>
    %68 = vector.extract_strided_slice %27 {offsets = [0, 64], sizes = [8, 32], strides = [1, 1]} : vector<8x128xbf16> to vector<8x32xbf16>
    %69 = vector.extract_strided_slice %28 {offsets = [0, 64], sizes = [8, 32], strides = [1, 1]} : vector<8x128xbf16> to vector<8x32xbf16>
    %cst_39 = arith.constant dense<0.000000e+00> : vector<8x8xf32>
    %70 = tpu.matmul %68, %69, %cst_39 {dimension_numbers = #tpu.dot_dimension_numbers<[1], [1], [0], [0], [0, 0, 1, 0], [], []>} : vector<8x32xbf16>, vector<8x32xbf16>, vector<8x8xf32> -> vector<8x8xf32>
    %cst_40 = arith.constant 0.176776692 : f32
    %71 = vector.broadcast %cst_40 : f32 to vector<8x8xf32>
    %72 = arith.mulf %70, %71 : vector<8x8xf32>
    %cst_41 = arith.constant -1.000000e+10 : f32
    %73 = vector.broadcast %cst_41 : f32 to vector<8x8xf32>
    %74 = arith.select %7, %72, %73 : vector<8x8xi1>, vector<8x8xf32>
    %cst_42 = arith.constant dense<0xFF800000> : vector<8xf32>
    %75 = vector.multi_reduction <maximumf>, %74, %cst_42 [1] : vector<8x8xf32> to vector<8xf32>
    %76 = vector.shape_cast %75 : vector<8xf32> to vector<8x1xf32>
    %77 = vector.broadcast %76 : vector<8x1xf32> to vector<8x8xf32>
    %78 = arith.subf %74, %77 : vector<8x8xf32>
    %79 = math.exp %78 : vector<8x8xf32>
    %cst_43 = arith.constant dense<0.000000e+00> : vector<8xf32>
    %80 = vector.multi_reduction <add>, %79, %cst_43 [1] : vector<8x8xf32> to vector<8xf32>
    %81 = vector.shape_cast %80 : vector<8xf32> to vector<8x1xf32>
    %82 = vector.broadcast %81 : vector<8x1xf32> to vector<8x8xf32>
    %83 = arith.divf %79, %82 : vector<8x8xf32>
    %84 = arith.truncf %83 : vector<8x8xf32> to vector<8x8xbf16>
    %85 = vector.extract_strided_slice %29 {offsets = [0, 64], sizes = [8, 32], strides = [1, 1]} : vector<8x128xbf16> to vector<8x32xbf16>
    %cst_44 = arith.constant dense<0.000000e+00> : vector<8x32xf32>
    %86 = tpu.matmul %84, %85, %cst_44 {dimension_numbers = #tpu.dot_dimension_numbers<[1], [0], [0], [1], [0, 0, 1, 1], [], []>} : vector<8x8xbf16>, vector<8x32xbf16>, vector<8x32xf32> -> vector<8x32xf32>
    %87 = vector.extract_strided_slice %27 {offsets = [0, 96], sizes = [8, 32], strides = [1, 1]} : vector<8x128xbf16> to vector<8x32xbf16>
    %88 = vector.extract_strided_slice %28 {offsets = [0, 96], sizes = [8, 32], strides = [1, 1]} : vector<8x128xbf16> to vector<8x32xbf16>
    %cst_45 = arith.constant dense<0.000000e+00> : vector<8x8xf32>
    %89 = tpu.matmul %87, %88, %cst_45 {dimension_numbers = #tpu.dot_dimension_numbers<[1], [1], [0], [0], [0, 0, 1, 0], [], []>} : vector<8x32xbf16>, vector<8x32xbf16>, vector<8x8xf32> -> vector<8x8xf32>
    %cst_46 = arith.constant 0.176776692 : f32
    %90 = vector.broadcast %cst_46 : f32 to vector<8x8xf32>
    %91 = arith.mulf %89, %90 : vector<8x8xf32>
    %cst_47 = arith.constant -1.000000e+10 : f32
    %92 = vector.broadcast %cst_47 : f32 to vector<8x8xf32>
    %93 = arith.select %7, %91, %92 : vector<8x8xi1>, vector<8x8xf32>
    %cst_48 = arith.constant dense<0xFF800000> : vector<8xf32>
    %94 = vector.multi_reduction <maximumf>, %93, %cst_48 [1] : vector<8x8xf32> to vector<8xf32>
    %95 = vector.shape_cast %94 : vector<8xf32> to vector<8x1xf32>
    %96 = vector.broadcast %95 : vector<8x1xf32> to vector<8x8xf32>
    %97 = arith.subf %93, %96 : vector<8x8xf32>
    %98 = math.exp %97 : vector<8x8xf32>
    %cst_49 = arith.constant dense<0.000000e+00> : vector<8xf32>
    %99 = vector.multi_reduction <add>, %98, %cst_49 [1] : vector<8x8xf32> to vector<8xf32>
    %100 = vector.shape_cast %99 : vector<8xf32> to vector<8x1xf32>
    %101 = vector.broadcast %100 : vector<8x1xf32> to vector<8x8xf32>
    %102 = arith.divf %98, %101 : vector<8x8xf32>
    %103 = arith.truncf %102 : vector<8x8xf32> to vector<8x8xbf16>
    %104 = vector.extract_strided_slice %29 {offsets = [0, 96], sizes = [8, 32], strides = [1, 1]} : vector<8x128xbf16> to vector<8x32xbf16>
    %cst_50 = arith.constant dense<0.000000e+00> : vector<8x32xf32>
    %105 = tpu.matmul %103, %104, %cst_50 {dimension_numbers = #tpu.dot_dimension_numbers<[1], [0], [0], [1], [0, 0, 1, 1], [], []>} : vector<8x8xbf16>, vector<8x32xbf16>, vector<8x32xf32> -> vector<8x32xf32>
    %106 = tpu.concatenate %48, %67, %86, %105 in 1 : vector<8x32xf32>, vector<8x32xf32>, vector<8x32xf32>, vector<8x32xf32> -> vector<8x128xf32>
    %107 = arith.truncf %106 : vector<8x128xf32> to vector<8x128xbf16>
    %cst_51 = arith.constant dense<0.000000e+00> : vector<8x128xf32>
    %108 = tpu.matmul %107, %17, %cst_51 {dimension_numbers = #tpu.dot_dimension_numbers<[1], [0], [0], [1], [0, 0, 1, 1], [], []>} : vector<8x128xbf16>, vector<128x128xbf16>, vector<8x128xf32> -> vector<8x128xf32>
    %109 = vector.broadcast %19 : vector<1x128xf32> to vector<8x128xf32>
    %110 = arith.addf %108, %109 : vector<8x128xf32>
    %111 = arith.addf %1, %110 : vector<8x128xf32>
    %c0_52 = arith.constant 0 : index
    %c0_53 = arith.constant 0 : index
    %c0_54 = arith.constant 0 : index
    %112 = vector.load %arg10[%c0_52, %c0_53, %c0_54] : memref<1x1x128xf32, #tpu.memory_space<vmem>>, vector<1x1x128xf32>
    %113 = vector.shape_cast %112 : vector<1x1x128xf32> to vector<1x128xf32>
    %c0_55 = arith.constant 0 : index
    %c0_56 = arith.constant 0 : index
    %c0_57 = arith.constant 0 : index
    %114 = vector.load %arg11[%c0_55, %c0_56, %c0_57] : memref<1x1x128xf32, #tpu.memory_space<vmem>>, vector<1x1x128xf32>
    %115 = vector.shape_cast %114 : vector<1x1x128xf32> to vector<1x128xf32>
    %cst_58 = arith.constant dense<0.000000e+00> : vector<8xf32>
    %116 = vector.multi_reduction <add>, %111, %cst_58 [1] : vector<8x128xf32> to vector<8xf32>
    %117 = vector.shape_cast %116 : vector<8xf32> to vector<8x1xf32>
    %cst_59 = arith.constant 1.280000e+02 : f32
    %118 = vector.broadcast %cst_59 : f32 to vector<8x1xf32>
    %119 = arith.divf %117, %118 : vector<8x1xf32>
    %120 = vector.broadcast %119 : vector<8x1xf32> to vector<8x128xf32>
    %121 = arith.subf %111, %120 : vector<8x128xf32>
    %122 = arith.mulf %121, %121 : vector<8x128xf32>
    %cst_60 = arith.constant dense<0.000000e+00> : vector<8xf32>
    %123 = vector.multi_reduction <add>, %122, %cst_60 [1] : vector<8x128xf32> to vector<8xf32>
    %124 = vector.shape_cast %123 : vector<8xf32> to vector<8x1xf32>
    %cst_61 = arith.constant 1.280000e+02 : f32
    %125 = vector.broadcast %cst_61 : f32 to vector<8x1xf32>
    %126 = arith.divf %124, %125 : vector<8x1xf32>
    %cst_62 = arith.constant 9.99999974E-6 : f32
    %127 = vector.broadcast %cst_62 : f32 to vector<8x1xf32>
    %128 = arith.addf %126, %127 : vector<8x1xf32>
    %129 = math.rsqrt %128 : vector<8x1xf32>
    %130 = vector.broadcast %129 : vector<8x1xf32> to vector<8x128xf32>
    %131 = arith.mulf %121, %130 : vector<8x128xf32>
    %132 = vector.broadcast %113 : vector<1x128xf32> to vector<8x128xf32>
    %133 = arith.mulf %131, %132 : vector<8x128xf32>
    %134 = vector.broadcast %115 : vector<1x128xf32> to vector<8x128xf32>
    %135 = arith.addf %133, %134 : vector<8x128xf32>
    %c0_63 = arith.constant 0 : index
    %c0_64 = arith.constant 0 : index
    %c0_65 = arith.constant 0 : index
    %136 = vector.load %arg12[%c0_63, %c0_64, %c0_65] : memref<1x128x128xbf16, #tpu.memory_space<vmem>>, vector<1x128x128xbf16>
    %137 = vector.shape_cast %136 : vector<1x128x128xbf16> to vector<128x128xbf16>
    %c0_66 = arith.constant 0 : index
    %c0_67 = arith.constant 0 : index
    %c0_68 = arith.constant 0 : index
    %138 = vector.load %arg13[%c0_66, %c0_67, %c0_68] : memref<1x1x128xf32, #tpu.memory_space<vmem>>, vector<1x1x128xf32>
    %139 = vector.shape_cast %138 : vector<1x1x128xf32> to vector<1x128xf32>
    %c0_69 = arith.constant 0 : index
    %c0_70 = arith.constant 0 : index
    %c0_71 = arith.constant 0 : index
    %140 = vector.load %arg14[%c0_69, %c0_70, %c0_71] : memref<1x128x256xbf16, #tpu.memory_space<vmem>>, vector<1x128x256xbf16>
    %141 = vector.shape_cast %140 : vector<1x128x256xbf16> to vector<128x256xbf16>
    %c0_72 = arith.constant 0 : index
    %c0_73 = arith.constant 0 : index
    %c0_74 = arith.constant 0 : index
    %142 = vector.load %arg15[%c0_72, %c0_73, %c0_74] : memref<1x1x256xf32, #tpu.memory_space<vmem>>, vector<1x1x256xf32>
    %143 = vector.shape_cast %142 : vector<1x1x256xf32> to vector<1x256xf32>
    %c0_75 = arith.constant 0 : index
    %c0_76 = arith.constant 0 : index
    %c0_77 = arith.constant 0 : index
    %144 = vector.load %arg16[%c0_75, %c0_76, %c0_77] : memref<1x128x128xbf16, #tpu.memory_space<vmem>>, vector<1x128x128xbf16>
    %145 = vector.shape_cast %144 : vector<1x128x128xbf16> to vector<128x128xbf16>
    %c0_78 = arith.constant 0 : index
    %c0_79 = arith.constant 0 : index
    %c0_80 = arith.constant 0 : index
    %146 = vector.load %arg17[%c0_78, %c0_79, %c0_80] : memref<1x1x128xf32, #tpu.memory_space<vmem>>, vector<1x1x128xf32>
    %147 = vector.shape_cast %146 : vector<1x1x128xf32> to vector<1x128xf32>
    %148 = arith.truncf %135 : vector<8x128xf32> to vector<8x128xbf16>
    %cst_81 = arith.constant dense<0.000000e+00> : vector<8x128xf32>
    %149 = tpu.matmul %148, %137, %cst_81 {dimension_numbers = #tpu.dot_dimension_numbers<[1], [0], [0], [1], [0, 0, 1, 1], [], []>} : vector<8x128xbf16>, vector<128x128xbf16>, vector<8x128xf32> -> vector<8x128xf32>
    %150 = vector.broadcast %139 : vector<1x128xf32> to vector<8x128xf32>
    %151 = arith.addf %149, %150 : vector<8x128xf32>
    %152 = arith.truncf %3 : vector<8x128xf32> to vector<8x128xbf16>
    %cst_82 = arith.constant dense<0.000000e+00> : vector<8x256xf32>
    %153 = tpu.matmul %152, %141, %cst_82 {dimension_numbers = #tpu.dot_dimension_numbers<[1], [0], [0], [1], [0, 0, 1, 1], [], []>} : vector<8x128xbf16>, vector<128x256xbf16>, vector<8x256xf32> -> vector<8x256xf32>
    %154 = vector.broadcast %143 : vector<1x256xf32> to vector<8x256xf32>
    %155 = arith.addf %153, %154 : vector<8x256xf32>
    %156 = vector.extract_strided_slice %155 {offsets = [0, 0], sizes = [8, 128], strides = [1, 1]} : vector<8x256xf32> to vector<8x128xf32>
    %157 = vector.extract_strided_slice %155 {offsets = [0, 128], sizes = [8, 128], strides = [1, 1]} : vector<8x256xf32> to vector<8x128xf32>
    %158 = arith.truncf %151 : vector<8x128xf32> to vector<8x128xbf16>
    %159 = arith.truncf %156 : vector<8x128xf32> to vector<8x128xbf16>
    %160 = arith.truncf %157 : vector<8x128xf32> to vector<8x128xbf16>
    %161 = vector.extract_strided_slice %158 {offsets = [0, 0], sizes = [8, 32], strides = [1, 1]} : vector<8x128xbf16> to vector<8x32xbf16>
    %162 = vector.extract_strided_slice %159 {offsets = [0, 0], sizes = [8, 32], strides = [1, 1]} : vector<8x128xbf16> to vector<8x32xbf16>
    %cst_83 = arith.constant dense<0.000000e+00> : vector<8x8xf32>
    %163 = tpu.matmul %161, %162, %cst_83 {dimension_numbers = #tpu.dot_dimension_numbers<[1], [1], [0], [0], [0, 0, 1, 0], [], []>} : vector<8x32xbf16>, vector<8x32xbf16>, vector<8x8xf32> -> vector<8x8xf32>
    %cst_84 = arith.constant 0.176776692 : f32
    %164 = vector.broadcast %cst_84 : f32 to vector<8x8xf32>
    %165 = arith.mulf %163, %164 : vector<8x8xf32>
    %cst_85 = arith.constant -1.000000e+10 : f32
    %166 = vector.broadcast %cst_85 : f32 to vector<8x8xf32>
    %167 = arith.select %11, %165, %166 : vector<8x8xi1>, vector<8x8xf32>
    %cst_86 = arith.constant dense<0xFF800000> : vector<8xf32>
    %168 = vector.multi_reduction <maximumf>, %167, %cst_86 [1] : vector<8x8xf32> to vector<8xf32>
    %169 = vector.shape_cast %168 : vector<8xf32> to vector<8x1xf32>
    %170 = vector.broadcast %169 : vector<8x1xf32> to vector<8x8xf32>
    %171 = arith.subf %167, %170 : vector<8x8xf32>
    %172 = math.exp %171 : vector<8x8xf32>
    %cst_87 = arith.constant dense<0.000000e+00> : vector<8xf32>
    %173 = vector.multi_reduction <add>, %172, %cst_87 [1] : vector<8x8xf32> to vector<8xf32>
    %174 = vector.shape_cast %173 : vector<8xf32> to vector<8x1xf32>
    %175 = vector.broadcast %174 : vector<8x1xf32> to vector<8x8xf32>
    %176 = arith.divf %172, %175 : vector<8x8xf32>
    %177 = arith.truncf %176 : vector<8x8xf32> to vector<8x8xbf16>
    %178 = vector.extract_strided_slice %160 {offsets = [0, 0], sizes = [8, 32], strides = [1, 1]} : vector<8x128xbf16> to vector<8x32xbf16>
    %cst_88 = arith.constant dense<0.000000e+00> : vector<8x32xf32>
    %179 = tpu.matmul %177, %178, %cst_88 {dimension_numbers = #tpu.dot_dimension_numbers<[1], [0], [0], [1], [0, 0, 1, 1], [], []>} : vector<8x8xbf16>, vector<8x32xbf16>, vector<8x32xf32> -> vector<8x32xf32>
    %180 = vector.extract_strided_slice %158 {offsets = [0, 32], sizes = [8, 32], strides = [1, 1]} : vector<8x128xbf16> to vector<8x32xbf16>
    %181 = vector.extract_strided_slice %159 {offsets = [0, 32], sizes = [8, 32], strides = [1, 1]} : vector<8x128xbf16> to vector<8x32xbf16>
    %cst_89 = arith.constant dense<0.000000e+00> : vector<8x8xf32>
    %182 = tpu.matmul %180, %181, %cst_89 {dimension_numbers = #tpu.dot_dimension_numbers<[1], [1], [0], [0], [0, 0, 1, 0], [], []>} : vector<8x32xbf16>, vector<8x32xbf16>, vector<8x8xf32> -> vector<8x8xf32>
    %cst_90 = arith.constant 0.176776692 : f32
    %183 = vector.broadcast %cst_90 : f32 to vector<8x8xf32>
    %184 = arith.mulf %182, %183 : vector<8x8xf32>
    %cst_91 = arith.constant -1.000000e+10 : f32
    %185 = vector.broadcast %cst_91 : f32 to vector<8x8xf32>
    %186 = arith.select %11, %184, %185 : vector<8x8xi1>, vector<8x8xf32>
    %cst_92 = arith.constant dense<0xFF800000> : vector<8xf32>
    %187 = vector.multi_reduction <maximumf>, %186, %cst_92 [1] : vector<8x8xf32> to vector<8xf32>
    %188 = vector.shape_cast %187 : vector<8xf32> to vector<8x1xf32>
    %189 = vector.broadcast %188 : vector<8x1xf32> to vector<8x8xf32>
    %190 = arith.subf %186, %189 : vector<8x8xf32>
    %191 = math.exp %190 : vector<8x8xf32>
    %cst_93 = arith.constant dense<0.000000e+00> : vector<8xf32>
    %192 = vector.multi_reduction <add>, %191, %cst_93 [1] : vector<8x8xf32> to vector<8xf32>
    %193 = vector.shape_cast %192 : vector<8xf32> to vector<8x1xf32>
    %194 = vector.broadcast %193 : vector<8x1xf32> to vector<8x8xf32>
    %195 = arith.divf %191, %194 : vector<8x8xf32>
    %196 = arith.truncf %195 : vector<8x8xf32> to vector<8x8xbf16>
    %197 = vector.extract_strided_slice %160 {offsets = [0, 32], sizes = [8, 32], strides = [1, 1]} : vector<8x128xbf16> to vector<8x32xbf16>
    %cst_94 = arith.constant dense<0.000000e+00> : vector<8x32xf32>
    %198 = tpu.matmul %196, %197, %cst_94 {dimension_numbers = #tpu.dot_dimension_numbers<[1], [0], [0], [1], [0, 0, 1, 1], [], []>} : vector<8x8xbf16>, vector<8x32xbf16>, vector<8x32xf32> -> vector<8x32xf32>
    %199 = vector.extract_strided_slice %158 {offsets = [0, 64], sizes = [8, 32], strides = [1, 1]} : vector<8x128xbf16> to vector<8x32xbf16>
    %200 = vector.extract_strided_slice %159 {offsets = [0, 64], sizes = [8, 32], strides = [1, 1]} : vector<8x128xbf16> to vector<8x32xbf16>
    %cst_95 = arith.constant dense<0.000000e+00> : vector<8x8xf32>
    %201 = tpu.matmul %199, %200, %cst_95 {dimension_numbers = #tpu.dot_dimension_numbers<[1], [1], [0], [0], [0, 0, 1, 0], [], []>} : vector<8x32xbf16>, vector<8x32xbf16>, vector<8x8xf32> -> vector<8x8xf32>
    %cst_96 = arith.constant 0.176776692 : f32
    %202 = vector.broadcast %cst_96 : f32 to vector<8x8xf32>
    %203 = arith.mulf %201, %202 : vector<8x8xf32>
    %cst_97 = arith.constant -1.000000e+10 : f32
    %204 = vector.broadcast %cst_97 : f32 to vector<8x8xf32>
    %205 = arith.select %11, %203, %204 : vector<8x8xi1>, vector<8x8xf32>
    %cst_98 = arith.constant dense<0xFF800000> : vector<8xf32>
    %206 = vector.multi_reduction <maximumf>, %205, %cst_98 [1] : vector<8x8xf32> to vector<8xf32>
    %207 = vector.shape_cast %206 : vector<8xf32> to vector<8x1xf32>
    %208 = vector.broadcast %207 : vector<8x1xf32> to vector<8x8xf32>
    %209 = arith.subf %205, %208 : vector<8x8xf32>
    %210 = math.exp %209 : vector<8x8xf32>
    %cst_99 = arith.constant dense<0.000000e+00> : vector<8xf32>
    %211 = vector.multi_reduction <add>, %210, %cst_99 [1] : vector<8x8xf32> to vector<8xf32>
    %212 = vector.shape_cast %211 : vector<8xf32> to vector<8x1xf32>
    %213 = vector.broadcast %212 : vector<8x1xf32> to vector<8x8xf32>
    %214 = arith.divf %210, %213 : vector<8x8xf32>
    %215 = arith.truncf %214 : vector<8x8xf32> to vector<8x8xbf16>
    %216 = vector.extract_strided_slice %160 {offsets = [0, 64], sizes = [8, 32], strides = [1, 1]} : vector<8x128xbf16> to vector<8x32xbf16>
    %cst_100 = arith.constant dense<0.000000e+00> : vector<8x32xf32>
    %217 = tpu.matmul %215, %216, %cst_100 {dimension_numbers = #tpu.dot_dimension_numbers<[1], [0], [0], [1], [0, 0, 1, 1], [], []>} : vector<8x8xbf16>, vector<8x32xbf16>, vector<8x32xf32> -> vector<8x32xf32>
    %218 = vector.extract_strided_slice %158 {offsets = [0, 96], sizes = [8, 32], strides = [1, 1]} : vector<8x128xbf16> to vector<8x32xbf16>
    %219 = vector.extract_strided_slice %159 {offsets = [0, 96], sizes = [8, 32], strides = [1, 1]} : vector<8x128xbf16> to vector<8x32xbf16>
    %cst_101 = arith.constant dense<0.000000e+00> : vector<8x8xf32>
    %220 = tpu.matmul %218, %219, %cst_101 {dimension_numbers = #tpu.dot_dimension_numbers<[1], [1], [0], [0], [0, 0, 1, 0], [], []>} : vector<8x32xbf16>, vector<8x32xbf16>, vector<8x8xf32> -> vector<8x8xf32>
    %cst_102 = arith.constant 0.176776692 : f32
    %221 = vector.broadcast %cst_102 : f32 to vector<8x8xf32>
    %222 = arith.mulf %220, %221 : vector<8x8xf32>
    %cst_103 = arith.constant -1.000000e+10 : f32
    %223 = vector.broadcast %cst_103 : f32 to vector<8x8xf32>
    %224 = arith.select %11, %222, %223 : vector<8x8xi1>, vector<8x8xf32>
    %cst_104 = arith.constant dense<0xFF800000> : vector<8xf32>
    %225 = vector.multi_reduction <maximumf>, %224, %cst_104 [1] : vector<8x8xf32> to vector<8xf32>
    %226 = vector.shape_cast %225 : vector<8xf32> to vector<8x1xf32>
    %227 = vector.broadcast %226 : vector<8x1xf32> to vector<8x8xf32>
    %228 = arith.subf %224, %227 : vector<8x8xf32>
    %229 = math.exp %228 : vector<8x8xf32>
    %cst_105 = arith.constant dense<0.000000e+00> : vector<8xf32>
    %230 = vector.multi_reduction <add>, %229, %cst_105 [1] : vector<8x8xf32> to vector<8xf32>
    %231 = vector.shape_cast %230 : vector<8xf32> to vector<8x1xf32>
    %232 = vector.broadcast %231 : vector<8x1xf32> to vector<8x8xf32>
    %233 = arith.divf %229, %232 : vector<8x8xf32>
    %234 = arith.truncf %233 : vector<8x8xf32> to vector<8x8xbf16>
    %235 = vector.extract_strided_slice %160 {offsets = [0, 96], sizes = [8, 32], strides = [1, 1]} : vector<8x128xbf16> to vector<8x32xbf16>
    %cst_106 = arith.constant dense<0.000000e+00> : vector<8x32xf32>
    %236 = tpu.matmul %234, %235, %cst_106 {dimension_numbers = #tpu.dot_dimension_numbers<[1], [0], [0], [1], [0, 0, 1, 1], [], []>} : vector<8x8xbf16>, vector<8x32xbf16>, vector<8x32xf32> -> vector<8x32xf32>
    %237 = tpu.concatenate %179, %198, %217, %236 in 1 : vector<8x32xf32>, vector<8x32xf32>, vector<8x32xf32>, vector<8x32xf32> -> vector<8x128xf32>
    %238 = arith.truncf %237 : vector<8x128xf32> to vector<8x128xbf16>
    %cst_107 = arith.constant dense<0.000000e+00> : vector<8x128xf32>
    %239 = tpu.matmul %238, %145, %cst_107 {dimension_numbers = #tpu.dot_dimension_numbers<[1], [0], [0], [1], [0, 0, 1, 1], [], []>} : vector<8x128xbf16>, vector<128x128xbf16>, vector<8x128xf32> -> vector<8x128xf32>
    %240 = vector.broadcast %147 : vector<1x128xf32> to vector<8x128xf32>
    %241 = arith.addf %239, %240 : vector<8x128xf32>
    %242 = arith.addf %135, %241 : vector<8x128xf32>
    %c0_108 = arith.constant 0 : index
    %c0_109 = arith.constant 0 : index
    %c0_110 = arith.constant 0 : index
    %243 = vector.load %arg18[%c0_108, %c0_109, %c0_110] : memref<1x1x128xf32, #tpu.memory_space<vmem>>, vector<1x1x128xf32>
    %244 = vector.shape_cast %243 : vector<1x1x128xf32> to vector<1x128xf32>
    %c0_111 = arith.constant 0 : index
    %c0_112 = arith.constant 0 : index
    %c0_113 = arith.constant 0 : index
    %245 = vector.load %arg19[%c0_111, %c0_112, %c0_113] : memref<1x1x128xf32, #tpu.memory_space<vmem>>, vector<1x1x128xf32>
    %246 = vector.shape_cast %245 : vector<1x1x128xf32> to vector<1x128xf32>
    %cst_114 = arith.constant dense<0.000000e+00> : vector<8xf32>
    %247 = vector.multi_reduction <add>, %242, %cst_114 [1] : vector<8x128xf32> to vector<8xf32>
    %248 = vector.shape_cast %247 : vector<8xf32> to vector<8x1xf32>
    %cst_115 = arith.constant 1.280000e+02 : f32
    %249 = vector.broadcast %cst_115 : f32 to vector<8x1xf32>
    %250 = arith.divf %248, %249 : vector<8x1xf32>
    %251 = vector.broadcast %250 : vector<8x1xf32> to vector<8x128xf32>
    %252 = arith.subf %242, %251 : vector<8x128xf32>
    %253 = arith.mulf %252, %252 : vector<8x128xf32>
    %cst_116 = arith.constant dense<0.000000e+00> : vector<8xf32>
    %254 = vector.multi_reduction <add>, %253, %cst_116 [1] : vector<8x128xf32> to vector<8xf32>
    %255 = vector.shape_cast %254 : vector<8xf32> to vector<8x1xf32>
    %cst_117 = arith.constant 1.280000e+02 : f32
    %256 = vector.broadcast %cst_117 : f32 to vector<8x1xf32>
    %257 = arith.divf %255, %256 : vector<8x1xf32>
    %cst_118 = arith.constant 9.99999974E-6 : f32
    %258 = vector.broadcast %cst_118 : f32 to vector<8x1xf32>
    %259 = arith.addf %257, %258 : vector<8x1xf32>
    %260 = math.rsqrt %259 : vector<8x1xf32>
    %261 = vector.broadcast %260 : vector<8x1xf32> to vector<8x128xf32>
    %262 = arith.mulf %252, %261 : vector<8x128xf32>
    %263 = vector.broadcast %244 : vector<1x128xf32> to vector<8x128xf32>
    %264 = arith.mulf %262, %263 : vector<8x128xf32>
    %265 = vector.broadcast %246 : vector<1x128xf32> to vector<8x128xf32>
    %266 = arith.addf %264, %265 : vector<8x128xf32>
    %c0_119 = arith.constant 0 : index
    %c0_120 = arith.constant 0 : index
    %c0_121 = arith.constant 0 : index
    %267 = vector.load %arg20[%c0_119, %c0_120, %c0_121] : memref<1x128x256xbf16, #tpu.memory_space<vmem>>, vector<1x128x256xbf16>
    %268 = vector.shape_cast %267 : vector<1x128x256xbf16> to vector<128x256xbf16>
    %c0_122 = arith.constant 0 : index
    %c0_123 = arith.constant 0 : index
    %c0_124 = arith.constant 0 : index
    %269 = vector.load %arg21[%c0_122, %c0_123, %c0_124] : memref<1x1x256xf32, #tpu.memory_space<vmem>>, vector<1x1x256xf32>
    %270 = vector.shape_cast %269 : vector<1x1x256xf32> to vector<1x256xf32>
    %c0_125 = arith.constant 0 : index
    %c0_126 = arith.constant 0 : index
    %c0_127 = arith.constant 0 : index
    %271 = vector.load %arg22[%c0_125, %c0_126, %c0_127] : memref<1x256x128xbf16, #tpu.memory_space<vmem>>, vector<1x256x128xbf16>
    %272 = vector.shape_cast %271 : vector<1x256x128xbf16> to vector<256x128xbf16>
    %c0_128 = arith.constant 0 : index
    %c0_129 = arith.constant 0 : index
    %c0_130 = arith.constant 0 : index
    %273 = vector.load %arg23[%c0_128, %c0_129, %c0_130] : memref<1x1x128xf32, #tpu.memory_space<vmem>>, vector<1x1x128xf32>
    %274 = vector.shape_cast %273 : vector<1x1x128xf32> to vector<1x128xf32>
    %275 = arith.truncf %266 : vector<8x128xf32> to vector<8x128xbf16>
    %cst_131 = arith.constant dense<0.000000e+00> : vector<8x256xf32>
    %276 = tpu.matmul %275, %268, %cst_131 {dimension_numbers = #tpu.dot_dimension_numbers<[1], [0], [0], [1], [0, 0, 1, 1], [], []>} : vector<8x128xbf16>, vector<128x256xbf16>, vector<8x256xf32> -> vector<8x256xf32>
    %277 = vector.broadcast %270 : vector<1x256xf32> to vector<8x256xf32>
    %278 = arith.addf %276, %277 : vector<8x256xf32>
    %cst_132 = arith.constant 0.000000e+00 : f32
    %279 = vector.broadcast %cst_132 : f32 to vector<8x256xf32>
    %280 = arith.maximumf %278, %279 : vector<8x256xf32>
    %281 = arith.truncf %280 : vector<8x256xf32> to vector<8x256xbf16>
    %cst_133 = arith.constant dense<0.000000e+00> : vector<8x128xf32>
    %282 = tpu.matmul %281, %272, %cst_133 {dimension_numbers = #tpu.dot_dimension_numbers<[1], [0], [0], [1], [0, 0, 1, 1], [], []>} : vector<8x256xbf16>, vector<256x128xbf16>, vector<8x128xf32> -> vector<8x128xf32>
    %283 = vector.broadcast %274 : vector<1x128xf32> to vector<8x128xf32>
    %284 = arith.addf %282, %283 : vector<8x128xf32>
    %285 = arith.addf %266, %284 : vector<8x128xf32>
    %c0_134 = arith.constant 0 : index
    %c0_135 = arith.constant 0 : index
    %c0_136 = arith.constant 0 : index
    %286 = vector.load %arg24[%c0_134, %c0_135, %c0_136] : memref<1x1x128xf32, #tpu.memory_space<vmem>>, vector<1x1x128xf32>
    %287 = vector.shape_cast %286 : vector<1x1x128xf32> to vector<1x128xf32>
    %c0_137 = arith.constant 0 : index
    %c0_138 = arith.constant 0 : index
    %c0_139 = arith.constant 0 : index
    %288 = vector.load %arg25[%c0_137, %c0_138, %c0_139] : memref<1x1x128xf32, #tpu.memory_space<vmem>>, vector<1x1x128xf32>
    %289 = vector.shape_cast %288 : vector<1x1x128xf32> to vector<1x128xf32>
    %cst_140 = arith.constant dense<0.000000e+00> : vector<8xf32>
    %290 = vector.multi_reduction <add>, %285, %cst_140 [1] : vector<8x128xf32> to vector<8xf32>
    %291 = vector.shape_cast %290 : vector<8xf32> to vector<8x1xf32>
    %cst_141 = arith.constant 1.280000e+02 : f32
    %292 = vector.broadcast %cst_141 : f32 to vector<8x1xf32>
    %293 = arith.divf %291, %292 : vector<8x1xf32>
    %294 = vector.broadcast %293 : vector<8x1xf32> to vector<8x128xf32>
    %295 = arith.subf %285, %294 : vector<8x128xf32>
    %296 = arith.mulf %295, %295 : vector<8x128xf32>
    %cst_142 = arith.constant dense<0.000000e+00> : vector<8xf32>
    %297 = vector.multi_reduction <add>, %296, %cst_142 [1] : vector<8x128xf32> to vector<8xf32>
    %298 = vector.shape_cast %297 : vector<8xf32> to vector<8x1xf32>
    %cst_143 = arith.constant 1.280000e+02 : f32
    %299 = vector.broadcast %cst_143 : f32 to vector<8x1xf32>
    %300 = arith.divf %298, %299 : vector<8x1xf32>
    %cst_144 = arith.constant 9.99999974E-6 : f32
    %301 = vector.broadcast %cst_144 : f32 to vector<8x1xf32>
    %302 = arith.addf %300, %301 : vector<8x1xf32>
    %303 = math.rsqrt %302 : vector<8x1xf32>
    %304 = vector.broadcast %303 : vector<8x1xf32> to vector<8x128xf32>
    %305 = arith.mulf %295, %304 : vector<8x128xf32>
    %306 = vector.broadcast %287 : vector<1x128xf32> to vector<8x128xf32>
    %307 = arith.mulf %305, %306 : vector<8x128xf32>
    %308 = vector.broadcast %289 : vector<1x128xf32> to vector<8x128xf32>
    %309 = arith.addf %307, %308 : vector<8x128xf32>
    %c0_145 = arith.constant 0 : index
    %c0_146 = arith.constant 0 : index
    %c0_147 = arith.constant 0 : index
    %310 = vector.load %arg26[%c0_145, %c0_146, %c0_147] : memref<1x128x128xbf16, #tpu.memory_space<vmem>>, vector<1x128x128xbf16>
    %311 = vector.shape_cast %310 : vector<1x128x128xbf16> to vector<128x128xbf16>
    %312 = arith.truncf %309 : vector<8x128xf32> to vector<8x128xbf16>
    %cst_148 = arith.constant dense<0.000000e+00> : vector<8x128xf32>
    %313 = tpu.matmul %312, %311, %cst_148 {dimension_numbers = #tpu.dot_dimension_numbers<[1], [0], [0], [1], [0, 0, 1, 1], [], []>} : vector<8x128xbf16>, vector<128x128xbf16>, vector<8x128xf32> -> vector<8x128xf32>
    %c0_149 = arith.constant 0 : index
    %c0_150 = arith.constant 0 : index
    %c0_151 = arith.constant 0 : index
    %314 = vector.load %arg27[%c0_149, %c0_150, %c0_151] : memref<1x1x128xf32, #tpu.memory_space<vmem>>, vector<1x1x128xf32>
    %315 = vector.shape_cast %314 : vector<1x1x128xf32> to vector<1x128xf32>
    %316 = vector.broadcast %315 : vector<1x128xf32> to vector<8x128xf32>
    %317 = arith.addf %313, %316 : vector<8x128xf32>
    %c0_152 = arith.constant 0 : index
    %c0_153 = arith.constant 0 : index
    %c0_154 = arith.constant 0 : index
    %c0_155 = arith.constant 0 : index
    %318 = vector.load %arg28[%c0_152, %c0_153, %c0_154, %c0_155] : memref<1x1x8x128xf32, #tpu.memory_space<vmem>>, vector<1x1x8x128xf32>
    %319 = vector.shape_cast %318 : vector<1x1x8x128xf32> to vector<8x128xf32>
    %320 = vector.shape_cast %317 : vector<8x128xf32> to vector<1x1x8x128xf32>
    tpu.vector_store %arg28[%c0_152, %c0_153, %c0_154, %c0_155], %320 {strides = array<i32>} : memref<1x1x8x128xf32, #tpu.memory_space<vmem>>, vector<1x1x8x128xf32>,
    %c0_156 = arith.constant 0 : index
    %c0_157 = arith.constant 0 : index
    %c0_158 = arith.constant 0 : index
    %c0_159 = arith.constant 0 : index
    %c0_160 = arith.constant 0 : index
    %321 = vector.load %arg29[%c0_156, %c0_157, %c0_158, %c0_159, %c0_160] : memref<1x1x4x8x8xf32, #tpu.memory_space<vmem>>, vector<1x1x1x8x8xf32>
    %322 = vector.shape_cast %321 : vector<1x1x1x8x8xf32> to vector<8x8xf32>
    %323 = vector.shape_cast %176 : vector<8x8xf32> to vector<1x1x1x8x8xf32>
    tpu.vector_store %arg29[%c0_156, %c0_157, %c0_158, %c0_159, %c0_160], %323 {strides = array<i32>} : memref<1x1x4x8x8xf32, #tpu.memory_space<vmem>>, vector<1x1x1x8x8xf32>,
    %c0_161 = arith.constant 0 : index
    %c0_162 = arith.constant 0 : index
    %c1 = arith.constant 1 : index
    %c0_163 = arith.constant 0 : index
    %c0_164 = arith.constant 0 : index
    %324 = vector.load %arg29[%c0_161, %c0_162, %c1, %c0_163, %c0_164] : memref<1x1x4x8x8xf32, #tpu.memory_space<vmem>>, vector<1x1x1x8x8xf32>
    %325 = vector.shape_cast %324 : vector<1x1x1x8x8xf32> to vector<8x8xf32>
    %326 = vector.shape_cast %195 : vector<8x8xf32> to vector<1x1x1x8x8xf32>
    tpu.vector_store %arg29[%c0_161, %c0_162, %c1, %c0_163, %c0_164], %326 {strides = array<i32>} : memref<1x1x4x8x8xf32, #tpu.memory_space<vmem>>, vector<1x1x1x8x8xf32>,
    %c0_165 = arith.constant 0 : index
    %c0_166 = arith.constant 0 : index
    %c2 = arith.constant 2 : index
    %c0_167 = arith.constant 0 : index
    %c0_168 = arith.constant 0 : index
    %327 = vector.load %arg29[%c0_165, %c0_166, %c2, %c0_167, %c0_168] : memref<1x1x4x8x8xf32, #tpu.memory_space<vmem>>, vector<1x1x1x8x8xf32>
    %328 = vector.shape_cast %327 : vector<1x1x1x8x8xf32> to vector<8x8xf32>
    %329 = vector.shape_cast %214 : vector<8x8xf32> to vector<1x1x1x8x8xf32>
    tpu.vector_store %arg29[%c0_165, %c0_166, %c2, %c0_167, %c0_168], %329 {strides = array<i32>} : memref<1x1x4x8x8xf32, #tpu.memory_space<vmem>>, vector<1x1x1x8x8xf32>,
    %c0_169 = arith.constant 0 : index
    %c0_170 = arith.constant 0 : index
    %c3 = arith.constant 3 : index
    %c0_171 = arith.constant 0 : index
    %c0_172 = arith.constant 0 : index
    %330 = vector.load %arg29[%c0_169, %c0_170, %c3, %c0_171, %c0_172] : memref<1x1x4x8x8xf32, #tpu.memory_space<vmem>>, vector<1x1x1x8x8xf32>
    %331 = vector.shape_cast %330 : vector<1x1x1x8x8xf32> to vector<8x8xf32>
    %332 = vector.shape_cast %233 : vector<8x8xf32> to vector<1x1x1x8x8xf32>
    tpu.vector_store %arg29[%c0_169, %c0_170, %c3, %c0_171, %c0_172], %332 {strides = array<i32>} : memref<1x1x4x8x8xf32, #tpu.memory_space<vmem>>, vector<1x1x1x8x8xf32>,
    return
  }
  func.func @transform_0(%arg0: i32, %arg1: i32) -> (i32, i32, i32, i32) {
    %c0_i32 = arith.constant 0 : i32
    %c0_i32_0 = arith.constant 0 : i32
    %c0_i32_1 = arith.constant 0 : i32
    return %arg0, %arg1, %c0_i32, %c0_i32_0 : i32, i32, i32, i32
  }
  func.func @transform_1(%arg0: i32, %arg1: i32) -> (i32, i32, i32, i32) {
    %c0_i32 = arith.constant 0 : i32
    %c0_i32_0 = arith.constant 0 : i32
    %c0_i32_1 = arith.constant 0 : i32
    return %arg0, %arg1, %c0_i32, %c0_i32_0 : i32, i32, i32, i32
  }
  func.func @transform_2(%arg0: i32, %arg1: i32) -> (i32, i32, i32) {
    %c0_i32 = arith.constant 0 : i32
    %c0_i32_0 = arith.constant 0 : i32
    %c0_i32_1 = arith.constant 0 : i32
    return %arg1, %c0_i32, %c0_i32_0 : i32, i32, i32
  }
  func.func @transform_3(%arg0: i32, %arg1: i32) -> (i32, i32, i32) {
    %c0_i32 = arith.constant 0 : i32
    %c0_i32_0 = arith.constant 0 : i32
    %c0_i32_1 = arith.constant 0 : i32
    return %arg1, %c0_i32, %c0_i32_0 : i32, i32, i32
  }
  func.func @transform_4(%arg0: i32, %arg1: i32) -> (i32, i32, i32) {
    %c0_i32 = arith.constant 0 : i32
    %c0_i32_0 = arith.constant 0 : i32
    %c0_i32_1 = arith.constant 0 : i32
    return %arg0, %c0_i32, %c0_i32_0 : i32, i32, i32
  }
  func.func @transform_5(%arg0: i32, %arg1: i32) -> (i32, i32, i32) {
    %c0_i32 = arith.constant 0 : i32
    %c0_i32_0 = arith.constant 0 : i32
    %c0_i32_1 = arith.constant 0 : i32
    return %arg0, %c0_i32, %c0_i32_0 : i32, i32, i32
  }
  func.func @transform_6(%arg0: i32, %arg1: i32) -> (i32, i32, i32) {
    %c0_i32 = arith.constant 0 : i32
    %c0_i32_0 = arith.constant 0 : i32
    %c0_i32_1 = arith.constant 0 : i32
    return %arg0, %c0_i32, %c0_i32_0 : i32, i32, i32
  }
  func.func @transform_7(%arg0: i32, %arg1: i32) -> (i32, i32, i32) {
    %c0_i32 = arith.constant 0 : i32
    %c0_i32_0 = arith.constant 0 : i32
    %c0_i32_1 = arith.constant 0 : i32
    return %arg0, %c0_i32, %c0_i32_0 : i32, i32, i32
  }
  func.func @transform_8(%arg0: i32, %arg1: i32) -> (i32, i32, i32) {
    %c0_i32 = arith.constant 0 : i32
    %c0_i32_0 = arith.constant 0 : i32
    %c0_i32_1 = arith.constant 0 : i32
    return %arg0, %c0_i32, %c0_i32_0 : i32, i32, i32
  }
  func.func @transform_9(%arg0: i32, %arg1: i32) -> (i32, i32, i32) {
    %c0_i32 = arith.constant 0 : i32
    %c0_i32_0 = arith.constant 0 : i32
    %c0_i32_1 = arith.constant 0 : i32
    return %arg0, %c0_i32, %c0_i32_0 : i32, i32, i32
  }
  func.func @transform_10(%arg0: i32, %arg1: i32) -> (i32, i32, i32) {
    %c0_i32 = arith.constant 0 : i32
    %c0_i32_0 = arith.constant 0 : i32
    %c0_i32_1 = arith.constant 0 : i32
    return %arg0, %c0_i32, %c0_i32_0 : i32, i32, i32
  }
  func.func @transform_11(%arg0: i32, %arg1: i32) -> (i32, i32, i32) {
    %c0_i32 = arith.constant 0 : i32
    %c0_i32_0 = arith.constant 0 : i32
    %c0_i32_1 = arith.constant 0 : i32
    return %arg0, %c0_i32, %c0_i32_0 : i32, i32, i32
  }
  func.func @transform_12(%arg0: i32, %arg1: i32) -> (i32, i32, i32) {
    %c0_i32 = arith.constant 0 : i32
    %c0_i32_0 = arith.constant 0 : i32
    %c0_i32_1 = arith.constant 0 : i32
    return %arg0, %c0_i32, %c0_i32_0 : i32, i32, i32
  }
  func.func @transform_13(%arg0: i32, %arg1: i32) -> (i32, i32, i32) {
    %c0_i32 = arith.constant 0 : i32
    %c0_i32_0 = arith.constant 0 : i32
    %c0_i32_1 = arith.constant 0 : i32
    return %arg0, %c0_i32, %c0_i32_0 : i32, i32, i32
  }
  func.func @transform_14(%arg0: i32, %arg1: i32) -> (i32, i32, i32) {
    %c0_i32 = arith.constant 0 : i32
    %c0_i32_0 = arith.constant 0 : i32
    %c0_i32_1 = arith.constant 0 : i32
    return %arg0, %c0_i32, %c0_i32_0 : i32, i32, i32
  }
  func.func @transform_15(%arg0: i32, %arg1: i32) -> (i32, i32, i32) {
    %c0_i32 = arith.constant 0 : i32
    %c0_i32_0 = arith.constant 0 : i32
    %c0_i32_1 = arith.constant 0 : i32
    return %arg0, %c0_i32, %c0_i32_0 : i32, i32, i32
  }
  func.func @transform_16(%arg0: i32, %arg1: i32) -> (i32, i32, i32) {
    %c0_i32 = arith.constant 0 : i32
    %c0_i32_0 = arith.constant 0 : i32
    %c0_i32_1 = arith.constant 0 : i32
    return %arg0, %c0_i32, %c0_i32_0 : i32, i32, i32
  }
  func.func @transform_17(%arg0: i32, %arg1: i32) -> (i32, i32, i32) {
    %c0_i32 = arith.constant 0 : i32
    %c0_i32_0 = arith.constant 0 : i32
    %c0_i32_1 = arith.constant 0 : i32
    return %arg0, %c0_i32, %c0_i32_0 : i32, i32, i32
  }
  func.func @transform_18(%arg0: i32, %arg1: i32) -> (i32, i32, i32) {
    %c0_i32 = arith.constant 0 : i32
    %c0_i32_0 = arith.constant 0 : i32
    %c0_i32_1 = arith.constant 0 : i32
    return %arg0, %c0_i32, %c0_i32_0 : i32, i32, i32
  }
  func.func @transform_19(%arg0: i32, %arg1: i32) -> (i32, i32, i32) {
    %c0_i32 = arith.constant 0 : i32
    %c0_i32_0 = arith.constant 0 : i32
    %c0_i32_1 = arith.constant 0 : i32
    return %arg0, %c0_i32, %c0_i32_0 : i32, i32, i32
  }
  func.func @transform_20(%arg0: i32, %arg1: i32) -> (i32, i32, i32) {
    %c0_i32 = arith.constant 0 : i32
    %c0_i32_0 = arith.constant 0 : i32
    %c0_i32_1 = arith.constant 0 : i32
    return %arg0, %c0_i32, %c0_i32_0 : i32, i32, i32
  }
  func.func @transform_21(%arg0: i32, %arg1: i32) -> (i32, i32, i32) {
    %c0_i32 = arith.constant 0 : i32
    %c0_i32_0 = arith.constant 0 : i32
    %c0_i32_1 = arith.constant 0 : i32
    return %arg0, %c0_i32, %c0_i32_0 : i32, i32, i32
  }
  func.func @transform_22(%arg0: i32, %arg1: i32) -> (i32, i32, i32) {
    %c0_i32 = arith.constant 0 : i32
    %c0_i32_0 = arith.constant 0 : i32
    %c0_i32_1 = arith.constant 0 : i32
    return %arg0, %c0_i32, %c0_i32_0 : i32, i32, i32
  }
  func.func @transform_23(%arg0: i32, %arg1: i32) -> (i32, i32, i32) {
    %c0_i32 = arith.constant 0 : i32
    %c0_i32_0 = arith.constant 0 : i32
    %c0_i32_1 = arith.constant 0 : i32
    return %arg0, %c0_i32, %c0_i32_0 : i32, i32, i32
  }
  func.func @transform_24(%arg0: i32, %arg1: i32) -> (i32, i32, i32) {
    %c0_i32 = arith.constant 0 : i32
    %c0_i32_0 = arith.constant 0 : i32
    %c0_i32_1 = arith.constant 0 : i32
    return %arg0, %c0_i32, %c0_i32_0 : i32, i32, i32
  }
  func.func @transform_25(%arg0: i32, %arg1: i32) -> (i32, i32, i32) {
    %c0_i32 = arith.constant 0 : i32
    %c0_i32_0 = arith.constant 0 : i32
    %c0_i32_1 = arith.constant 0 : i32
    return %arg0, %c0_i32, %c0_i32_0 : i32, i32, i32
  }
  func.func @transform_26(%arg0: i32, %arg1: i32) -> (i32, i32, i32, i32) {
    %c0_i32 = arith.constant 0 : i32
    %c0_i32_0 = arith.constant 0 : i32
    %c0_i32_1 = arith.constant 0 : i32
    return %arg0, %arg1, %c0_i32, %c0_i32_0 : i32, i32, i32, i32
  }
  func.func @transform_27(%arg0: i32, %arg1: i32) -> (i32, i32, i32, i32, i32) {
    %c0_i32 = arith.constant 0 : i32
    %c0_i32_0 = arith.constant 0 : i32
    %c0_i32_1 = arith.constant 0 : i32
    %c0_i32_2 = arith.constant 0 : i32
    return %arg0, %arg1, %c0_i32, %c0_i32_0, %c0_i32_1 : i32, i32, i32, i32, i32
  }
}

</mosaic_0001>

<bundles_post_ra>
// kernel: seq2seq_forward.4
= control target key start
LH: loop header
LB: loop body
LE: loop exit
PB: predicated region body
PF: predicated region fallthrough
CT: control target
= control target key end

     0   :  { %16 = vsyncpa [#allocation3], 0  ;;  %s1048_s0 = inlined_call_operand.vmem [shape: f32[2,8,128], index: 0, kind: input, shape index: {}]   ;;  %s1049_s1 = inlined_call_operand.vmem [shape: bf16[128,384], index: 1, kind: input, shape index: {}]   ;;  %s1050_s2 = inlined_call_operand.hbm [shape: f32[1,384], index: 2, kind: input, shape index: {}]   ;;  %s1051_s3 = inlined_call_operand.hbm [shape: bf16[128,128], index: 3, kind: input, shape index: {}]   ;;  %s1052_s4 = inlined_call_operand.hbm [shape: f32[1,128], index: 4, kind: input, shape index: {}]   ;;  %s1053_s5 = inlined_call_operand.hbm [shape: f32[2,8,128], index: 5, kind: output, shape index: {0}]   ;;  %s1054_s6 = inlined_call_operand.hbm [shape: f32[2,8,128], index: 6, kind: output, shape index: {1}]   ;;  %s1055_s7 = inlined_call_operand.hbm [shape: f32[2,8,128], index: 7, kind: output, shape index: {2}]   ;;  %s1056_s8 = inlined_call_operand.vmem [shape: f32[2,8,128], index: 8, kind: output, shape index: {3}]   ;;  %s1057_s9 = inlined_call_operand.vmem [shape: f32[2,8,128], index: 9, kind: output, shape index: {4}]   ;;  %s1058_s10 = inlined_call_operand.hbm [shape: f32[2,128], index: 10, kind: output, shape index: {5}]  }
   0x1   :  { %17 = vsyncpa [#allocation6], 0 }
   0x2   :  { %18 = vsyncpa [#allocation4], 0 }
   0x3   :  { %19 = vsyncpa [#allocation10], 0 }
   0x4   :  { %20 = vsyncpa [#allocation13], 0  ;;  %s848_s13 = smov [#allocation5]  }
   0x5   :  { %s40_s14 = sshll.u32 %s848_s13, 4  ;;  %s41_s14 = int_to_ptr.vmem [resolvable:$true] %s40_s14 }
   0x6   :  { %s706_s15 = scalar_lea.vmem %s41_s14, 1024  ;;  %p711_p1 = scmp.lt.s32.totalorder %s41_s14, %s41_s14 }
   0x7   :  { %p707_p0 = scmp.ne.s32.totalorder %s41_s14, %s706_s15  ;;  %p712_p2 = scmp.lt.s32.totalorder %s706_s15, %s706_s15 }
   0x9   :  { %p713_p3 = por %p712_p2, %p711_p1 }
   0xb   :  { %p714_p4 = pnand %p713_p3, %p707_p0 }
   0xd   :  { %717 = shalt.err (!%p714_p4)
}
   0xe   :  { %s849_s16 = smov 64   ;;  %s850_s17 = smov 4  }
   0xf   :  { %46 = dma.hbm_to_vmem [thread:$0]  %s1051_s3, 1024, %s41_s14, [#allocation6], %s849_s16, %s849_s16, %s850_s17  }
  0x10   :  { %s851_s20 = smov [#allocation2]   ;;  %s852_s22 = smov [#allocation7]  }
  0x11   :  { %s31_s21 = sshll.u32 %s851_s20, 4  ;;  %s53_s23 = sshll.u32 %s852_s22, 4  ;;  %s32_s21 = int_to_ptr.vmem [resolvable:$true] %s31_s21  ;;  %s54_s23 = int_to_ptr.vmem [resolvable:$true] %s53_s23 }
  0x12   :  { %s726_s24 = scalar_lea.vmem %s32_s21, 48  ;;  %s730_s25 = scalar_lea.vmem %s32_s21, 64 }
  0x13   :  { %p727_p5 = scmp.ne.s32.totalorder %s32_s21, %s726_s24  ;;  %p731_p6 = scmp.lt.s32.totalorder %s32_s21, %s32_s21 }
  0x14   :  { %p732_p7 = scmp.lt.s32.totalorder %s730_s25, %s726_s24 }
  0x16   :  { %p733_p8 = por %p732_p7, %p731_p6 }
  0x18   :  { %p734_p9 = pnand %p733_p8, %p727_p5 }
  0x1a   :  { %737 = shalt.err (!%p734_p9)
}
  0x1b   :  { %34 = dma.hbm_to_vmem [thread:$0]  %s1050_s2, 48, %s32_s21, [#allocation3]  }
  0x1c   :  { %s746_s28 = scalar_lea.vmem %s54_s23, 16  ;;  %s750_s3 = scalar_lea.vmem %s54_s23, 32 }
  0x1d   :  { %p747_p10 = scmp.ne.s32.totalorder %s54_s23, %s746_s28  ;;  %p751_p11 = scmp.lt.s32.totalorder %s54_s23, %s54_s23 }
  0x1e   :  { %p752_p12 = scmp.lt.s32.totalorder %s750_s3, %s746_s28 }
  0x20   :  { %p753_p13 = por %p752_p12, %p751_p11 }
  0x22   :  { %p754_p0 = pnand %p753_p13, %p747_p10 }
  0x24   :  { %757 = shalt.err (!%p754_p0)
}
  0x25   :  { %56 = dma.hbm_to_vmem [thread:$0]  %s1052_s4, 16, %s54_s23, [#allocation6]  }
  0x26   :  { %838 = dma.done.wait [#allocation3], 48  }
  0x27   :  { %839 = vsyncadd [#allocation3], 4294967248 }
  0x28   :  { %840 = dma.done.wait [#allocation6], 1040  }
  0x29   :  { %841 = vsyncadd [#allocation6], 4294966256  ;;  %v853_v0 = vmov 0.0   ;;  %v854_v1 = vmov 0   ;;  %vm855_vm0 = vmmov 0   ;;  %v67_v25 = vld [vmem:[%s1048_s0] sm:$0xff]  ;;  %v104_v37 = vlaneseq }
  0x2a   :  { %604 = vmatprep.subr.bf16.mxu1 %v853_v0  ;;  %279 = vmatprep.mubr.bf16.mxu0 %v854_v1  ;;  %v658_v2 = vld [vmem:[%s1049_s1 + $0xac] ss:$12 sps:$4 sm:$0xff]   ;;  %v660_v3 = vld [vmem:[%s1049_s1 + $0xa8] ss:$12 sps:$4 sm:$0xff]   ;;  %v661_v4 = vld [vmem:[%s1049_s1 + $0xb0] ss:$12 sps:$4 sm:$0xff]  }
  0x2b   :  { %620 = vmatprep.mubr.msk.bf16.mxu1 %vm855_vm0, %v853_v0  ;;  %247 = vmatprep.subr.bf16.mxu0 %v658_v2  ;;  %v662_v5 = vld [vmem:[%s1049_s1 + $0x94] ss:$12 sps:$4 sm:$0xff]   ;;  %v664_v6 = vld [vmem:[%s1049_s1 + $0x90] ss:$12 sps:$4 sm:$0xff]   ;;  %v665_v7 = vld [vmem:[%s1049_s1 + $0x98] ss:$12 sps:$4 sm:$0xff]  }
  0x2c   :  { %248 = vmatpush1.bf16.msra.mxu0 %v660_v3  ;;  %605 = vmatpush3.bf16.msra.mxu1 %v661_v4  ;;  %v666_v8 = vld [vmem:[%s1049_s1 + $0x7c] ss:$12 sps:$4 sm:$0xff]   ;;  %v668_v9 = vld [vmem:[%s1049_s1 + $0x78] ss:$12 sps:$4 sm:$0xff]   ;;  %v669_v10 = vld [vmem:[%s1049_s1 + $0x80] ss:$12 sps:$4 sm:$0xff]  }
  0x2d   :  { %249 = vmatprep.subr.bf16.mxu0 %v662_v5  ;;  %606 = vmatprep.subr.bf16.mxu1 %v853_v0  ;;  %v670_v11 = vld [vmem:[%s1049_s1 + $0x64] ss:$12 sps:$4 sm:$0xff]   ;;  %v672_v12 = vld [vmem:[%s1049_s1 + $0x60] ss:$12 sps:$4 sm:$0xff]   ;;  %v673_v13 = vld [vmem:[%s1049_s1 + $0x68] ss:$12 sps:$4 sm:$0xff]  }
  0x2e   :  { %v674_v14 = vld [vmem:[%s1049_s1 + $0x4c] ss:$12 sps:$4 sm:$0xff]   ;;  %v676_v15 = vld [vmem:[%s1049_s1 + $0x48] ss:$12 sps:$4 sm:$0xff]   ;;  %v677_v16 = vld [vmem:[%s1049_s1 + $0x50] ss:$12 sps:$4 sm:$0xff]  }
  0x2f   :  { %v678_v17 = vld [vmem:[%s1049_s1 + $0x34] ss:$12 sps:$4 sm:$0xff]   ;;  %v680_v18 = vld [vmem:[%s1049_s1 + $0x30] ss:$12 sps:$4 sm:$0xff]   ;;  %v681_v19 = vld [vmem:[%s1049_s1 + $0x38] ss:$12 sps:$4 sm:$0xff]  }
  0x30   :  { %250 = vmatpush1.bf16.msra.mxu0 %v664_v6  ;;  %607 = vmatpush3.bf16.msra.mxu1 %v665_v7  ;;  %v682_v20 = vld [vmem:[%s1049_s1 + $0x1c] ss:$12 sps:$4 sm:$0xff]   ;;  %v684_v21 = vld [vmem:[%s1049_s1 + $0x18] ss:$12 sps:$4 sm:$0xff]   ;;  %v685_v22 = vld [vmem:[%s1049_s1 + $0x20] ss:$12 sps:$4 sm:$0xff]  }
  0x31   :  { %251 = vmatprep.subr.bf16.mxu0 %v666_v8  ;;  %608 = vmatprep.subr.bf16.mxu1 %v853_v0  ;;  %v686_v23 = vld [vmem:[%s1049_s1 + $0x4] ss:$12 sps:$4 sm:$0xff]   ;;  %v688_v24 = vld [vmem:[%s1049_s1] ss:$12 sps:$4 sm:$0xff]   ;;  %v689_v27 = vld [vmem:[%s1049_s1 + $0x8] ss:$12 sps:$4 sm:$0xff]  }
  0x32   :  { %v68_v26 = vld [vmem:[%s1048_s0 + $0x8] sm:$0xff]  ;;  %v690_v29 = vld [vmem:[#allocation5 + $0x38] sm:$0xff]   ;;  %v691_v30 = vld [vmem:[#allocation5 + $0x30] sm:$0xff]   ;;  %v105_v38 = vshrl.u32 %v104_v37, 7  ;;  %vm389_vm1 = vcmask 1041409   ;;  %s857_s22 = smov [#allocation8]  }
  0x33   :  { %v101_v28 = vpack.c.bf16 %v68_v26, %v67_v25  ;;  %v692_v31 = vld [vmem:[#allocation5 + $0x28] sm:$0xff]   ;;  %v693_v32 = vld [vmem:[#allocation5 + $0x20] sm:$0xff]   ;;  %v694_v33 = vld [vmem:[#allocation5 + $0x18] sm:$0xff]   ;;  %s487_s23 = sshll.u32 %s857_s22, 4  ;;  %s488_s23 = int_to_ptr.vmem [resolvable:$true] %s487_s23 }
  0x34   :  { %252 = vmatpush1.bf16.msra.mxu0 %v668_v9  ;;  %609 = vmatpush3.bf16.msra.mxu1 %v669_v10  ;;  %v695_v34 = vld [vmem:[#allocation5 + $0x10] sm:$0xff]   ;;  %v696_v35 = vld [vmem:[#allocation5 + $0x8] sm:$0xff]   ;;  %v697_v36 = vld [vmem:[#allocation5] sm:$0xff]   ;;  %v106_v39 = vsub.s32 0, %v105_v38  ;;  %v114_v41 = vsub.s32 2, %v105_v38  ;;  %v110_v42 = vsub.s32 1, %v105_v38 }
  0x35   :  { %253 = vmatprep.subr.bf16.mxu0 %v670_v11  ;;  %610 = vmatprep.subr.bf16.mxu1 %v853_v0  ;;  %v102_v40 = vld [vmem:[#allocation2] sm:$0x7] }
  0x36   :  { %v107_v43 = vrot.slane %v102_v40, %v106_v39  ;;  %v115_v44 = vrot.slane %v102_v40, %v114_v41  ;;  %v111_v45 = vrot.slane %v102_v40, %v110_v42 }
  0x38   :  { %254 = vmatpush1.bf16.msra.mxu0 %v672_v12  ;;  %611 = vmatpush3.bf16.msra.mxu1 %v673_v13 }
  0x39   :  { %255 = vmatprep.subr.bf16.mxu0 %v674_v14  ;;  %612 = vmatprep.subr.bf16.mxu1 %v853_v0 }
  0x3c   :  { %256 = vmatpush1.bf16.msra.mxu0 %v676_v15  ;;  %613 = vmatpush3.bf16.msra.mxu1 %v677_v16 }
  0x3d   :  { %257 = vmatprep.subr.bf16.mxu0 %v678_v17  ;;  %614 = vmatprep.subr.bf16.mxu1 %v853_v0 }
  0x40   :  { %258 = vmatpush1.bf16.msra.mxu0 %v680_v18  ;;  %615 = vmatpush3.bf16.msra.mxu1 %v681_v19 }
  0x41   :  { %259 = vmatprep.subr.bf16.mxu0 %v682_v20  ;;  %616 = vmatprep.subr.bf16.mxu1 %v853_v0 }
  0x44   :  { %260 = vmatpush1.bf16.msra.mxu0 %v684_v21  ;;  %617 = vmatpush3.bf16.msra.mxu1 %v685_v22 }
  0x45   :  { %261 = vmatprep.subr.bf16.mxu0 %v686_v23  ;;  %618 = vmatprep.subr.bf16.mxu1 %v853_v0 }
  0x48   :  { %262 = vmatpush1.bf16.msra.mxu0 %v688_v24  ;;  %619 = vmatpush3.bf16.msra.mxu1 %v689_v27 }
  0x49   :  { %624 = vmatprep.subr.bf16.mxu0 %v853_v0 }
  0x4b   :  { %280 = vmatmul.mubr.bf16.vlgmr.msra.gmra.mxu0 %v101_v28  ;;  %621 = vmatmul.mubr.bf16.vlgmr.msra.gmra.mxu1 %v101_v28 }
  0x4c   :  { %625 = vmatpush3.bf16.msra.mxu0 %v690_v29  ;;  %640 = vmatprep.mubr.msk.bf16.mxu0 %vm855_vm0, %v853_v0 }
  0x4d   :  { %626 = vmatprep.subr.bf16.mxu0 %v853_v0 }
  0x50   :  { %627 = vmatpush3.bf16.msra.mxu0 %v691_v30 }
  0x51   :  { %628 = vmatprep.subr.bf16.mxu0 %v853_v0 }
  0x54   :  { %629 = vmatpush3.bf16.msra.mxu0 %v692_v31 }
  0x55   :  { %630 = vmatprep.subr.bf16.mxu0 %v853_v0 }
  0x58   :  { %631 = vmatpush3.bf16.msra.mxu0 %v693_v32 }
  0x59   :  { %632 = vmatprep.subr.bf16.mxu0 %v853_v0 }
  0x5c   :  { %633 = vmatpush3.bf16.msra.mxu0 %v694_v33 }
  0x5d   :  { %634 = vmatprep.subr.bf16.mxu0 %v853_v0 }
  0x60   :  { %635 = vmatpush3.bf16.msra.mxu0 %v695_v34 }
  0x61   :  { %636 = vmatprep.subr.bf16.mxu0 %v853_v0 }
  0x64   :  { %637 = vmatpush3.bf16.msra.mxu0 %v696_v35 }
  0x65   :  { %638 = vmatprep.subr.bf16.mxu0 %v853_v0 }
  0x68   :  { %639 = vmatpush3.bf16.msra.mxu0 %v697_v36 }
 0x10b   :  { %v281_v46 = vpop.f32.mrf.mxu0  ;;  %v324_v48 = vpop.f32.mrf.mxu1 }
 0x10c   :  { %v282_v47 = vadd.f32 %v281_v46, %v107_v43  ;;  %v325_v49 = vadd.f32 %v324_v48, %v115_v44 }
 0x10d   :  { %v283_v50 = vpop.f32.mrf.mxu0  ;;  %v622_v53 = vpop.f32.mrf.mxu1 }
 0x10e   :  { %v345_v51 = vrot.slane %v282_v47, 4  ;;  %331 = vst [vmem:[#allocation8] sm:$0xff] %v282_v47  ;;  %v284_v52 = vadd.f32 %v283_v50, %v111_v45  ;;  %335 = vst [vmem:[#allocation11] sm:$0xff] %v325_v49  ;;  %v337_v54 = vadd.f32 %v325_v49, %v282_v47 }
 0x10f   :  { %v285_v55 = vpop.f32.mrf.mxu0  ;;  %v327_v59 = vpop.f32.mrf.mxu1 }
 0x110   :  { %v346_v56 = vadd.f32 %v345_v51, %v282_v47  ;;  %333 = vst [vmem:[#allocation9] sm:$0xff] %v284_v52  ;;  %v341_v57 = vadd.f32 %v325_v49, %v284_v52  ;;  %v286_v58 = vadd.f32 %v285_v55, %v107_v43  ;;  %339 = vst [vmem:[%s1056_s8] sm:$0xff] %v337_v54 }
 0x111   :  { %v328_v60 = vadd.f32 %v327_v59, %v115_v44  ;;  %v287_v61 = vpop.f32.mrf.mxu0  ;;  %v623_v1 = vpop.f32.mrf.mxu1 }
 0x112   :  { %v347_v62 = vrot.slane %v346_v56, 2  ;;  %343 = vst [vmem:[%s1057_s9] sm:$0xff] %v341_v57  ;;  %v351_v63 = vrot.slane %v286_v58, 4  ;;  %332 = vst [vmem:[#allocation8 + $0x8] sm:$0xff] %v286_v58  ;;  %v288_v0 = vadd.f32 %v287_v61, %v111_v45 }
 0x113   :  { %336 = vst [vmem:[#allocation11 + $0x8] sm:$0xff] %v328_v60  ;;  %v338_v2 = vadd.f32 %v328_v60, %v286_v58 }
 0x114   :  { %v348_v3 = vadd.f32 %v347_v62, %v346_v56  ;;  %v352_v4 = vadd.f32 %v351_v63, %v286_v58  ;;  %334 = vst [vmem:[#allocation9 + $0x8] sm:$0xff] %v288_v0  ;;  %v342_v5 = vadd.f32 %v328_v60, %v288_v0 }
 0x115   :  { %340 = vst [vmem:[%s1056_s8 + $0x8] sm:$0xff] %v338_v2  ;;  %s856_s8 = smov [#allocation9]  }
 0x116   :  { %v349_v6 = vrot.slane %v348_v3, 1  ;;  %v353_v7 = vrot.slane %v352_v4, 2  ;;  %344 = vst [vmem:[%s1057_s9 + $0x8] sm:$0xff] %v342_v5  ;;  %s499_s21 = sshll.u32 %s856_s8, 4  ;;  %s500_s21 = int_to_ptr.vmem [resolvable:$true] %s499_s21 }
 0x117   :  { %s758_s9 = scalar_lea.vmem %s500_s21, 256  ;;  %p763_p2 = scmp.lt.s32.totalorder %s500_s21, %s500_s21 }
 0x118   :  { %v350_v8 = vadd.f32 %v349_v6, %v348_v3  ;;  %v354_v9 = vadd.f32 %v353_v7, %v352_v4  ;;  %p759_p1 = scmp.ne.s32.totalorder %s500_s21, %s758_s9  ;;  %p764_p3 = scmp.lt.s32.totalorder %s758_s9, %s758_s9 }
 0x11a   :  { %v358_v10 = vmul.f32 0.125, %v350_v8  ;;  %v355_v11 = vrot.slane %v354_v9, 1  ;;  %p765_p4 = por %p764_p3, %p763_p2 }
 0x11c   :  { %v356_v12 = vadd.f32 %v355_v11, %v354_v9  ;;  %v376_v14 = vpack.c.bf16 %v358_v10, %v358_v10  ;;  %p766_p5 = pnand %p765_p4, %p759_p1 }
 0x11e   :  { %v359_v13 = vmul.f32 0.125, %v356_v12  ;;  %v387_v16 = vunpack.c.l.b16 %v376_v14 }
 0x120   :  { %v377_v15 = vpack.c.bf16 %v359_v13, %v359_v13 }
 0x122   :  { %v388_v17 = vunpack.c.l.b16 %v377_v15 }
 0x124   :  { %v390_v18 = vsel %vm389_vm1, %v388_v17, %v387_v16 }
 0x125   :  { %v391_v19 = vpack.c.b16 %v390_v18, %v390_v18 }
 0x127   :  { %641 = vmatmul.mubr.bf16.vlgmr.msra.gmra.mxu0 %v391_v19 }
 0x128   :  { %769 = shalt.err (!%p766_p5)
}
 0x129   :  { %s858_s24 = smov 128   ;;  %s859_s25 = smov 8  }
 0x12a   :  { %505 = dma.vmem_to_hbm [thread:$0]  %s500_s21, 256, %s1054_s6, [#allocation10], %s858_s24, %s858_s24, %s859_s25  }
 0x12b   :  { %s778_s28 = scalar_lea.vmem %s488_s23, 256  ;;  %p783_p7 = scmp.lt.s32.totalorder %s488_s23, %s488_s23 }
 0x12c   :  { %p779_p6 = scmp.ne.s32.totalorder %s488_s23, %s778_s28  ;;  %p784_p8 = scmp.lt.s32.totalorder %s778_s28, %s778_s28 }
 0x12e   :  { %p785_p9 = por %p784_p8, %p783_p7 }
 0x130   :  { %p786_p10 = pnand %p785_p9, %p779_p6 }
 0x132   :  { %789 = shalt.err (!%p786_p10)
}
 0x133   :  { %493 = dma.vmem_to_hbm [thread:$0]  %s488_s23, 256, %s1053_s5, [#allocation4], %s858_s24, %s858_s24, %s859_s25  }
 0x134   :  { %s860_s30 = smov [#allocation11]  }
 0x135   :  { %s511_s2 = sshll.u32 %s860_s30, 4  ;;  %s512_s2 = int_to_ptr.vmem [resolvable:$true] %s511_s2 }
 0x136   :  { %s798_s11 = scalar_lea.vmem %s512_s2, 256  ;;  %p803_p12 = scmp.lt.s32.totalorder %s512_s2, %s512_s2 }
 0x137   :  { %p799_p11 = scmp.ne.s32.totalorder %s512_s2, %s798_s11  ;;  %p804_p13 = scmp.lt.s32.totalorder %s798_s11, %s798_s11 }
 0x139   :  { %p805_p0 = por %p804_p13, %p803_p12 }
 0x13b   :  { %p806_p1 = pnand %p805_p0, %p799_p11 }
 0x13d   :  { %809 = shalt.err (!%p806_p1)
}
 0x13e   :  { %517 = dma.vmem_to_hbm [thread:$0]  %s512_s2, 256, %s1055_s7, [#allocation10], %s858_s24, %s858_s24, %s859_s25   ;;  %v577_v20 = vld [vmem:[#allocation7] ss:$0 sm:$0xff] }
 0x13f   :  { %s861_s13 = smov [#allocation12]  }
 0x140   :  { %s528_s4 = sshll.u32 %s861_s13, 4  ;;  %s529_s4 = int_to_ptr.vmem [resolvable:$true] %s528_s4 }
 0x141   :  { %s818_s5 = scalar_lea.vmem %s529_s4, 32  ;;  %p823_p3 = scmp.lt.s32.totalorder %s529_s4, %s529_s4 }
 0x142   :  { %p819_p2 = scmp.ne.s32.totalorder %s529_s4, %s818_s5  ;;  %p824_p4 = scmp.lt.s32.totalorder %s818_s5, %s818_s5 }
 0x144   :  { %p825_p5 = por %p824_p4, %p823_p3 }
 0x146   :  { %p826_p6 = pnand %p825_p5, %p819_p2 }
 0x1e7   :  { %v475_v21 = vpop.f32.mrf.mxu0 }
 0x1e8   :  { %v476_v22 = vadd.f32 %v577_v20, %v475_v21 }
 0x1e9   :  { %v642_v23 = vpop.f32.mrf.mxu0 }
 0x1ea   :  { %481 = vst [vmem:[#allocation12] sm:$0x3] %v476_v22 }
 0x1eb   :  { %v478_v24 = vpop.f32.mrf.mxu0 }
 0x1ec   :  { %829 = shalt.err (!%p826_p6)
}
 0x1ed   :  { %531 = dma.vmem_to_hbm [thread:$0]  %s529_s4, 32, %s1058_s10, [#allocation13]   ;;  %v643_v25 = vpop.f32.mrf.mxu0 }
 0x1ee   :  { %842 = dma.done.wait [#allocation4], 256  }
 0x1ef   :  { %843 = vsyncadd [#allocation4], 4294967040 }
 0x1f0   :  { %844 = dma.done.wait [#allocation10], 512  }
 0x1f1   :  { %845 = vsyncadd [#allocation10], 4294966784 }
 0x1f2   :  { %846 = dma.done.wait [#allocation13], 32  }
 0x1f3   :  { %847 = vsyncadd [#allocation13], 4294967264 }
 0x1f4   :  { %548 = vsyncpa [#allocation3], 1 }
 0x1f5   :  { %549 = vsyncpa [#allocation6], 1 }
 0x1f6   :  { %550 = vsyncpa [#allocation4], 1 }
 0x1f7   :  { %551 = vsyncpa [#allocation10], 1 }
 0x1f8   :  { %552 = vsyncpa [#allocation13], 1 }

// kernel: seq2seq_forward.3
= control target key start
LH: loop header
LB: loop body
LE: loop exit
PB: predicated region body
PF: predicated region fallthrough
CT: control target
= control target key end

     0   :  { %19 = vsyncpa [#allocation3], 0  ;;  %s2860_s0 = inlined_call_operand.vmem [shape: f32[2,8,128], index: 0, kind: input, shape index: {}]   ;;  %s2861_s1 = inlined_call_operand.vmem [shape: f32[2,8,8], index: 1, kind: input, shape index: {}]   ;;  %s2862_s2 = inlined_call_operand.vmem [shape: bf16[128,384], index: 2, kind: input, shape index: {}]   ;;  %s2863_s3 = inlined_call_operand.vmem [shape: f32[1,384], index: 3, kind: input, shape index: {}]   ;;  %s2864_s4 = inlined_call_operand.hbm [shape: bf16[128,128], index: 4, kind: input, shape index: {}]   ;;  %s2865_s5 = inlined_call_operand.vmem [shape: f32[1,128], index: 5, kind: input, shape index: {}]   ;;  %s2866_s6 = inlined_call_operand.vmem [shape: f32[1,128], index: 6, kind: input, shape index: {}]   ;;  %s2867_s7 = inlined_call_operand.vmem [shape: f32[1,128], index: 7, kind: input, shape index: {}]   ;;  %s2868_s8 = inlined_call_operand.hbm [shape: bf16[128,256], index: 8, kind: input, shape index: {}]   ;;  %s2869_s9 = inlined_call_operand.vmem [shape: f32[1,256], index: 9, kind: input, shape index: {}]   ;;  %s2870_s10 = inlined_call_operand.hbm [shape: bf16[256,128], index: 10, kind: input, shape index: {}]   ;;  %s2871_s11 = inlined_call_operand.vmem [shape: f32[1,128], index: 11, kind: input, shape index: {}]   ;;  %s2872_s12 = inlined_call_operand.hbm [shape: f32[1,128], index: 12, kind: input, shape index: {}]   ;;  %s2873_s13 = inlined_call_operand.hbm [shape: f32[1,128], index: 13, kind: input, shape index: {}]   ;;  %s2874_s14 = inlined_call_operand.vmem [shape: f32[2,8,128], index: 14, kind: output, shape index: {}]  }
   0x1   :  { %20 = vsyncpa [#allocation5], 0 }
   0x2   :  { %21 = vsyncpa [#allocation8], 0  ;;  %s2545_s29 = smov 0  }
   0x3 LB: > { %s2455_s30 = smov [#allocation4]   ;;  %s2551_s16 = sadd.s32 4294967295, %s2453_s29   ;;  %s2453_s29 = sphi %s2545_s29, %s27_s29  }
   0x4   : > { %s402_s15 = sshll.u32 %s2455_s30, 4  ;;  %p1896_p0 = scmp.ge.s32.totalorder %s2453_s29, 1  ;;  %s403_s15 = int_to_ptr.vmem [resolvable:$true] %s402_s15 }
   0x5   : > { %p362_p1 = scmp.lt.s32.totalorder %s2453_s29, 3  ;;  %p2875_p2 = scmp.eq.s32.totalorder %s2551_s16, 0 }
   0x6   : > { %s2456_s18 = smov [#allocation7]   ;;  %s2457_s21 = smov [#allocation2]  }
   0x7   : > { %p2556_p3 = pnand %p1896_p0, %p362_p1  ;;  %s435_s19 = sshll.u32 %s2456_s18, 4  ;;  %s436_s19 = int_to_ptr.vmem [resolvable:$true] %s435_s19 }
   0x8   : > { %s380_s22 = sshll.u32 %s2457_s21, 4  ;;  %s2316_s24 = scalar_lea.vmem %s403_s15, 2048  ;;  %s2568_s22 = int_to_ptr.vmem [resolvable:$true] %s380_s22 }
   0x9   : > { %s2877_s17 = scalar_select %p2556_p3, 1, 0 }
   0xa   : > { %p2156_p4 = pneg %p2556_p3  ;;  %p2317_p7 = scmp.ne.s32.totalorder %s403_s15, %s2316_s24 }
   0xb   : > { %p2324_p10 = scmp.lt.s32.totalorder %s403_s15, %s403_s15  ;;  %p2325_p11 = scmp.lt.s32.totalorder %s2316_s24, %s2316_s24 }
   0xc   : > { %p2564_p5 = pnand %p2875_p2, %p2156_p4 }
   0xd   : > { %p2326_p12 = por %p2325_p11, %p2324_p10 }
   0xe   : > { %p2572_p6 = pneg %p2564_p5 }
  0x10   : > { %p2319_p8 = pnand %p2317_p7, %p2572_p6 }
  0x12   : > { %p2320_p9 = pneg %p2319_p8 }
  0x14   : > { %p2327_p13 = pnand %p2326_p12, %p2320_p9 }
  0x16   : > { %2330 = shalt.err (!%p2327_p13)
}
  0x17   : > { %s2458_s25 = smov 128   ;;  %s2459_s26 = smov 8  }
  0x18   : > { %2162 = dma.hbm_to_vmem [thread:$0]  (!%p2564_p5), %s2868_s8, 2048, %s403_s15, [#allocation5], %s2458_s25, %s2458_s25, %s2459_s26  }
  0x19   : > { %s2342_s30 = scalar_lea.vmem %s436_s19, 16  ;;  %s2349_s18 = scalar_lea.vmem %s436_s19, 32 }
  0x1a   : > { %p2343_p0 = scmp.ne.s32.totalorder %s436_s19, %s2342_s30  ;;  %p2350_p7 = scmp.lt.s32.totalorder %s436_s19, %s436_s19 }
  0x1b   : > { %p2351_p8 = scmp.lt.s32.totalorder %s2349_s18, %s2342_s30 }
  0x1c   : > { %p2345_p1 = pnand %p2343_p0, %p2572_p6 }
  0x1d   : > { %p2352_p10 = por %p2351_p8, %p2350_p7 }
  0x1e   : > { %p2346_p4 = pneg %p2345_p1 }
  0x20   : > { %p2353_p9 = pnand %p2352_p10, %p2346_p4 }
  0x22   : > { %2356 = shalt.err (!%p2353_p9)
}
  0x23   : > { %2168 = dma.hbm_to_vmem [thread:$0]  (!%p2564_p5), %s2872_s12, 16, %s436_s19, [#allocation8]  }
  0x24   : > { %s2368_s15 = scalar_lea.vmem %s2568_s22, 1024  ;;  %p2376_p0 = scmp.lt.s32.totalorder %s2568_s22, %s2568_s22 }
  0x25   : > { %p2369_p11 = scmp.ne.s32.totalorder %s2568_s22, %s2368_s15  ;;  %p2377_p1 = scmp.lt.s32.totalorder %s2368_s15, %s2368_s15 }
  0x27   : > { %p2371_p12 = pnand %p2369_p11, %p2572_p6  ;;  %p2378_p4 = por %p2377_p1, %p2376_p0 }
  0x29   : > { %p2372_p13 = pneg %p2371_p12 }
  0x2b   : > { %p2379_p7 = pnand %p2378_p4, %p2372_p13 }
  0x2d   : > { %2382 = shalt.err (!%p2379_p7)
}
  0x2e   : > { %s2460_s25 = smov 64   ;;  %s2461_s26 = smov 4  }
  0x2f   : > { %2159 = dma.hbm_to_vmem [thread:$0]  (!%p2564_p5), %s2864_s4, 1024, %s2568_s22, [#allocation3], %s2460_s25, %s2460_s25, %s2461_s26  }
  0x30   : > { %s2462_s19 = smov [#allocation6]   ;;  %s2463_s18 = smov [#allocation9]  }
  0x31   : > { %s418_s30 = sshll.u32 %s2462_s19, 4  ;;  %s446_s21 = sshll.u32 %s2463_s18, 4  ;;  %s419_s30 = int_to_ptr.vmem [resolvable:$true] %s418_s30  ;;  %s447_s21 = int_to_ptr.vmem [resolvable:$true] %s446_s21 }
  0x32   : > { %s2394_s24 = scalar_lea.vmem %s419_s30, 2048  ;;  %p2402_p11 = scmp.lt.s32.totalorder %s419_s30, %s419_s30 }
  0x33   : > { %p2395_p8 = scmp.ne.s32.totalorder %s419_s30, %s2394_s24  ;;  %p2403_p12 = scmp.lt.s32.totalorder %s2394_s24, %s2394_s24 }
  0x35   : > { %p2397_p10 = pnand %p2395_p8, %p2572_p6  ;;  %p2404_p13 = por %p2403_p12, %p2402_p11 }
  0x37   : > { %p2398_p9 = pneg %p2397_p10 }
  0x39   : > { %p2405_p0 = pnand %p2404_p13, %p2398_p9 }
  0x3b   : > { %2408 = shalt.err (!%p2405_p0)
}
  0x3c   : > { %2165 = dma.hbm_to_vmem [thread:$0]  (!%p2564_p5), %s2870_s10, 2048, %s419_s30, [#allocation5], %s2460_s25, %s2460_s25, %s2461_s26  }
  0x3d   : > { %s2420_s27 = scalar_lea.vmem %s447_s21, 16  ;;  %s2427_s28 = scalar_lea.vmem %s447_s21, 32 }
  0x3e   : > { %p2421_p1 = scmp.ne.s32.totalorder %s447_s21, %s2420_s27  ;;  %p2428_p8 = scmp.lt.s32.totalorder %s447_s21, %s447_s21 }
  0x3f   : > { %p2429_p10 = scmp.lt.s32.totalorder %s2427_s28, %s2420_s27 }
  0x40   : > { %p2423_p4 = pnand %p2421_p1, %p2572_p6 }
  0x41   : > { %p2430_p2 = por %p2429_p10, %p2428_p8 }
  0x42   : > { %p2424_p7 = pneg %p2423_p4 }
  0x44   : > { %p2431_p3 = pnand %p2430_p2, %p2424_p7 }
  0x46   : > { %2434 = shalt.err (!%p2431_p3)
}
  0x47   : > { %2171 = dma.hbm_to_vmem [thread:$0]  (!%p2564_p5), %s2873_s13, 16, %s447_s21, [#allocation8]  }
  0x48   : > { %p2880_p9 = scmp.ne.s32.totalorder %s2877_s17, 0 }
  0x49   : > { %p2881_p11 = scmp.eq.s32.totalorder (!%p2880_p9), %s2551_s16, 0 }
  0x4a   : > { %473 = sbr.rel (%p2880_p9) target bundleno = 2906 (0xb5a), region = 76 }
  0x4f   : > { %2440 = dma.done.wait (%p2881_p11), [#allocation3], 1024   ;;  %p2882_p6 = pmov %p2881_p11 }
  0x51   : > { %2442 = vsyncadd (%p2882_p6), [#allocation3], 4294966272  ;;  %p2883_p12 = pmov %p2882_p6 }
  0x52   : > { %p2884_p2 = pmov %p2882_p6 }
  0x53   : > { %2444 = dma.done.wait (%p2883_p12), [#allocation5], 4096  }
  0x54   : > { %2446 = vsyncadd (%p2884_p2), [#allocation5], 4294963200  ;;  %p2885_p3 = pmov %p2884_p2 }
  0x55   : > { %p2886_p5 = pmov %p2884_p2 }
  0x56   : > { %2448 = dma.done.wait (%p2885_p3), [#allocation8], 32  }
  0x57   : > { %2450 = vsyncadd (%p2886_p5), [#allocation8], 4294967264  ;;  %v2464_v0 = vmov 0   ;;  %v2465_v1 = vmov 0.0   ;;  %v2205_v2 = vld [vmem:[%s2862_s2 + $0xac] ss:$12 sps:$4 sm:$0xff]   ;;  %v605_v28 = vlaneseq }
  0x58   : > { %780 = vmatprep.mubr.bf16.mxu0 %v2464_v0  ;;  %2048 = vmatprep.subr.bf16.mxu1 %v2465_v1  ;;  %v2207_v3 = vld [vmem:[%s2862_s2 + $0xa8] ss:$12 sps:$4 sm:$0xff]   ;;  %v2210_v5 = vld [vmem:[%s2862_s2 + $0x90] ss:$12 sps:$4 sm:$0xff]   ;;  %p537_p13 = scmp.lt.s32.totalorder %s2551_s16, 1  ;;  %vm2466_vm0 = vmmov 0  }
  0x59   : > { %748 = vmatprep.subr.bf16.mxu0 %v2205_v2  ;;  %v2208_v4 = vld [vmem:[%s2862_s2 + $0x94] ss:$12 sps:$4 sm:$0xff]   ;;  %v2211_v6 = vld [vmem:[%s2862_s2 + $0x7c] ss:$12 sps:$4 sm:$0xff]   ;;  %v2213_v7 = vld [vmem:[%s2862_s2 + $0x78] ss:$12 sps:$4 sm:$0xff]   ;;  %2064 = vmatprep.mubr.msk.bf16.mxu1 %vm2466_vm0, %v2465_v1 }
  0x5a   : > { %749 = vmatpush1.bf16.msra.mxu0 %v2207_v3  ;;  %v2214_v8 = vld [vmem:[%s2862_s2 + $0x64] ss:$12 sps:$4 sm:$0xff]   ;;  %v2216_v9 = vld [vmem:[%s2862_s2 + $0x60] ss:$12 sps:$4 sm:$0xff]   ;;  %s2888_s16 = smov (!%p537_p13, %s2551_s16), 1  ;;  %v2731_v29 = vshrl.u32 %v605_v28, 7 }
  0x5b   : > { %750 = vmatprep.subr.bf16.mxu0 %v2208_v4  ;;  %v2229_v10 = vld [vmem:[%s2862_s2 + $0xb0] ss:$12 sps:$4 sm:$0xff]   ;;  %v2217_v11 = vld [vmem:[%s2862_s2 + $0x4c] ss:$12 sps:$4 sm:$0xff]   ;;  %s2667_s15 = sshll.u32 %s2888_s16, 3  ;;  %vm832_vm1 = vcmask 261120  }
  0x5c   : > { %2049 = vmatpush3.bf16.msra.mxu1 %v2229_v10  ;;  %v2230_v12 = vld [vmem:[%s2862_s2 + $0x98] ss:$12 sps:$4 sm:$0xff]   ;;  %v2219_v13 = vld [vmem:[%s2862_s2 + $0x48] ss:$12 sps:$4 sm:$0xff]   ;;  %v2222_v15 = vld [vmem:[%s2862_s2 + $0x30] ss:$12 sps:$4 sm:$0xff]   ;;  %s540_s18 = scalar_lea.vmem %s2860_s0, %s2667_s15  ;;  %s544_s23 = scalar_lea.vmem %s2861_s1, %s2667_s15 }
  0x5d   : > { %2050 = vmatprep.subr.bf16.mxu1 %v2465_v1  ;;  %v2220_v14 = vld [vmem:[%s2862_s2 + $0x34] ss:$12 sps:$4 sm:$0xff]   ;;  %v2223_v17 = vld [vmem:[%s2862_s2 + $0x1c] ss:$12 sps:$4 sm:$0xff]   ;;  %v2225_v19 = vld [vmem:[%s2862_s2 + $0x18] ss:$12 sps:$4 sm:$0xff]   ;;  %s548_s20 = scalar_lea.vmem %s2874_s14, %s2667_s15 }
  0x5e   : > { %751 = vmatpush1.bf16.msra.mxu0 %v2210_v5  ;;  %v2231_v16 = vld [vmem:[%s2862_s2 + $0x80] ss:$12 sps:$4 sm:$0xff]   ;;  %v2232_v18 = vld [vmem:[%s2862_s2 + $0x68] ss:$12 sps:$4 sm:$0xff]   ;;  %v2226_v20 = vld [vmem:[%s2862_s2 + $0x4] ss:$12 sps:$4 sm:$0xff]  }
  0x5f   : > { %752 = vmatprep.subr.bf16.mxu0 %v2211_v6  ;;  %v2233_v21 = vld [vmem:[%s2862_s2 + $0x50] ss:$12 sps:$4 sm:$0xff]   ;;  %v2228_v22 = vld [vmem:[%s2862_s2] ss:$12 sps:$4 sm:$0xff]   ;;  %v2234_v24 = vld [vmem:[%s2862_s2 + $0x38] ss:$12 sps:$4 sm:$0xff]  }
  0x60   : > { %2051 = vmatpush3.bf16.msra.mxu1 %v2230_v12  ;;  %v2706_v23 = vld [vmem:[%s540_s18] sm:$0xff]  ;;  %v2236_v27 = vld [vmem:[%s2862_s2 + $0x8] ss:$12 sps:$4 sm:$0xff]   ;;  %v611_v30 = vsub.s32 1, %v2731_v29  ;;  %v607_v31 = vsub.s32 0, %v2731_v29  ;;  %s2467_s19 = smov 96  }
  0x61   : > { %2052 = vmatprep.subr.bf16.mxu1 %v2465_v1  ;;  %v603_v25 = vpack.c.bf16 %v2706_v23, %v2706_v23  ;;  %v2235_v26 = vld [vmem:[%s2862_s2 + $0x20] ss:$12 sps:$4 sm:$0xff]   ;;  %s2468_s18 = smov 64   ;;  %s2469_s17 = smov 32   ;;  %v615_v44 = vsub.s32 2, %v2731_v29  ;;  %vm897_vm2 = vcmask 1043456  }
  0x62   : > { %753 = vmatpush1.bf16.msra.mxu0 %v2213_v7  ;;  %v585_v32 = vld [vmem:[%s2863_s3] sm:$0x7]  ;;  %vm881_vm4 = vcmask 64512   ;;  %vm1293_vm5 = vcmask 523264   ;;  %vm1295_vm6 = vcmask 785408  }
  0x63   : > { %754 = vmatprep.subr.bf16.mxu0 %v2214_v8  ;;  %v612_v33 = vrot.slane %v585_v32, %v611_v30  ;;  %v608_v35 = vrot.slane %v585_v32, %v607_v31  ;;  %v616_v45 = vrot.slane %v585_v32, %v615_v44  ;;  %v2762_v53 = vld [vmem:[%s544_s23] sm:$0xff] }
  0x64   : > { %2053 = vmatpush3.bf16.msra.mxu1 %v2231_v16  ;;  %vm552_vm3 = vcmp.gt.f32.partialorder %v2762_v53, 0.0 }
  0x65   : > { %2054 = vmatprep.subr.bf16.mxu1 %v2465_v1 }
  0x66   : > { %755 = vmatpush1.bf16.msra.mxu0 %v2216_v9 }
  0x67   : > { %756 = vmatprep.subr.bf16.mxu0 %v2217_v11 }
  0x68   : > { %2055 = vmatpush3.bf16.msra.mxu1 %v2232_v18 }
  0x69   : > { %2056 = vmatprep.subr.bf16.mxu1 %v2465_v1 }
  0x6a   : > { %757 = vmatpush1.bf16.msra.mxu0 %v2219_v13 }
  0x6b   : > { %758 = vmatprep.subr.bf16.mxu0 %v2220_v14 }
  0x6c   : > { %2057 = vmatpush3.bf16.msra.mxu1 %v2233_v21 }
  0x6d   : > { %2058 = vmatprep.subr.bf16.mxu1 %v2465_v1 }
  0x6e   : > { %759 = vmatpush1.bf16.msra.mxu0 %v2222_v15 }
  0x6f   : > { %760 = vmatprep.subr.bf16.mxu0 %v2223_v17 }
  0x70   : > { %2059 = vmatpush3.bf16.msra.mxu1 %v2234_v24 }
  0x71   : > { %2060 = vmatprep.subr.bf16.mxu1 %v2465_v1 }
  0x72   : > { %761 = vmatpush1.bf16.msra.mxu0 %v2225_v19 }
  0x73   : > { %762 = vmatprep.subr.bf16.mxu0 %v2226_v20 }
  0x74   : > { %2061 = vmatpush3.bf16.msra.mxu1 %v2235_v26 }
  0x75   : > { %2062 = vmatprep.subr.bf16.mxu1 %v2465_v1 }
  0x76   : > { %763 = vmatpush1.bf16.msra.mxu0 %v2228_v22 }
  0x77   : > { %2092 = vmatprep.subr.bf16.mxu0 %v2465_v1 }
  0x78   : > { %2063 = vmatpush3.bf16.msra.mxu1 %v2236_v27 }
  0x79   : > { %781 = vmatmul.mubr.bf16.vlgmr.msra.gmra.mxu0 %v603_v25  ;;  %2068 = vmatprep.subr.bf16.mxu1 %v2465_v1 }
  0x7a   : > { %2094 = vmatprep.mubr.msk.bf16.mxu0 %vm2466_vm0, %v2465_v1 }
  0x7b   : > { %2065 = vmatmul.mubr.bf16.vlgmr.msra.gmra.mxu1 %v603_v25 }
  0x7c   : > { %2070 = vmatprep.mubr.msk.bf16.mxu1 %vm2466_vm0, %v2465_v1 }
 0x139   : > { %v782_v34 = vpop.f32.mrf.mxu0 }
 0x13a   : > { %v783_v39 = vadd.f32 %v782_v34, %v608_v35 }
 0x13b   : > { %v784_v36 = vpop.f32.mrf.mxu0  ;;  %v823_v46 = vpop.f32.mrf.mxu1 }
 0x13c   : > { %v785_v37 = vadd.f32 %v784_v36, %v612_v33  ;;  %v829_v43 = vpack.c.bf16 %v783_v39, %v783_v39  ;;  %v824_v47 = vadd.f32 %v823_v46, %v616_v45 }
 0x13d   : > { %v786_v38 = vpop.f32.mrf.mxu0  ;;  %v2066_v48 = vpop.f32.mrf.mxu1 }
 0x13e   : > { %v830_v40 = vpack.c.bf16 %v785_v37, %v785_v37  ;;  %v2753_v49 = vpack.c.bf16 %v824_v47, %v824_v47 }
 0x13f   : > { %v787_v41 = vpop.f32.mrf.mxu0  ;;  %v826_v50 = vpop.f32.mrf.mxu1 }
 0x140   : > { %945 = vrot.lane.b32.xlu1 %v830_v40, %s2467_s19  ;;  %v837_v42 = vsel %vm832_vm1, %v830_v40, 0  ;;  %v899_v51 = vsel %vm897_vm2, %v2753_v49, 0 }
 0x141   : > { %2069 = vmatpush3.bf16.xpose.msra.mxu1 %v837_v42  ;;  %v2067_v52 = vpop.f32.mrf.mxu1 }
 0x142   : > { %2074 = vmatprep.subr.bf16.mxu1 %v2465_v1 }
 0x144   : > { %942 = vrot.lane.b32.xlu1 %v829_v43, %s2467_s19 }
 0x148   : > { %1056 = vrot.lane.b32.xlu1 %v829_v43, %s2468_s18  ;;  %2071 = vmatmul.mubr.msk.bf16.vlgmr.msra.gmra.mxu1 %vm832_vm1, %v829_v43 }
 0x149   : > { %2076 = vmatprep.mubr.msk.bf16.mxu1 %vm2466_vm0, %v2465_v1  ;;  %2075 = vmatpush3.bf16.msra.mxu1 %v899_v51 }
 0x14a   : > { %2080 = vmatprep.subr.bf16.mxu1 %v2465_v1 }
 0x14c   : > { %1170 = vrot.lane.b32.xlu1 %v830_v40, %s2469_s17 }
 0x150   : > { %1168 = vrot.lane.b32.xlu1 %v829_v43, %s2469_s17 }
 0x1b2   : > { %v946_v4 = vpop.permute.xlu1 %945 }
 0x1b3   : > { %v951_v15 = vsel %vm832_vm1, %v946_v4, 0 }
 0x1b6   : > { %v943_v5 = vpop.permute.xlu1 %942 }
 0x1ba   : > { %v1057_v7 = vpop.permute.xlu1 %1056 }
 0x1be   : > { %v1171_v10 = vpop.permute.xlu1 %1170 }
 0x1bf   : > { %v1176_v11 = vsel %vm832_vm1, %v1171_v10, 0 }
 0x1c2   : > { %v1169_v16 = vpop.permute.xlu1 %1168 }
 0x208   : > { %v873_v54 = vpop.f32.mrf.mxu1 }
 0x209   : > { %v879_v55 = vmul.f32 0.17677669, %v873_v54 }
 0x20a   : > { %v2072_v56 = vpop.f32.mrf.mxu1 }
 0x20b   : > { %v880_v57 = vsel %vm552_vm3, %v879_v55, -1e+10 }
 0x20c   : > { %v876_v58 = vpop.f32.mrf.mxu1  ;;  %v882_v59 = vsel %vm881_vm4, %v880_v57, -inf }
 0x20d   : > { %883 = vmax.xlane.f32.xlu0 %v882_v59 }
 0x20e   : > { %v2073_v60 = vpop.f32.mrf.mxu1 }
 0x296   : > { %v884_v61 = vpop.xlane.xlu0 %883 }
 0x297   : > { %v885_v62 = vsub.f32 %v880_v57, %v884_v61 }
 0x299   : > { %v886_v63 = vmul.f32 1.442695, %v885_v62 }
 0x29b   : > { %2285 = vpow2.f32 %v886_v63 }
 0x2a8   : > { %v2286_v2 = vpop.eup %2285 }
 0x2a9   : > { %v888_v3 = vsel %vm881_vm4, %v2286_v2, 0.0 }
 0x2aa   : > { %889 = vadd.xlane.f32.xlu0 %v888_v3 }
 0x2c0   : > { %1058 = vrot.lane.b32.xlu0 %v830_v40, %s2468_s18 }
 0x333   : > { %v890_v6 = vpop.xlane.xlu0 %889 }
 0x334   : > { %2287 = vrcp.f32 %v890_v6 }
 0x337   : > { %v1059_v8 = vpop.permute.xlu0 %1058 }
 0x338   : > { %v1064_v9 = vsel %vm832_vm1, %v1059_v8, 0 }
 0x339   : > { %2093 = vmatpush3.bf16.xpose.msra.mxu0 %v1064_v9 }
 0x33a   : > { %2104 = vmatprep.subr.bf16.mxu0 %v2465_v1 }
 0x340   : > { %2095 = vmatmul.mubr.msk.bf16.vlgmr.msra.gmra.mxu0 %vm832_vm1, %v1057_v7 }
 0x341   : > { %v2288_v12 = vpop.eup %2287  ;;  %2105 = vmatpush3.bf16.xpose.msra.mxu0 %v1176_v11  ;;  %2106 = vmatprep.mubr.msk.bf16.mxu0 %vm2466_vm0, %v2465_v1 }
 0x342   : > { %v892_v13 = vmul.f32 %v2288_v12, %v2286_v2  ;;  %2116 = vmatprep.subr.bf16.mxu0 %v2465_v1 }
 0x344   : > { %v893_v14 = vpack.c.bf16 %v892_v13, %v892_v13 }
 0x346   : > { %2077 = vmatmul.mubr.msk.bf16.vlgmr.msra.gmra.mxu1 %vm881_vm4, %v893_v14 }
 0x347   : > { %2081 = vmatpush3.bf16.xpose.msra.mxu1 %v951_v15  ;;  %2082 = vmatprep.mubr.msk.bf16.mxu1 %vm2466_vm0, %v2465_v1 }
 0x348   : > { %2107 = vmatmul.mubr.msk.bf16.vlgmr.msra.gmra.mxu0 %vm832_vm1, %v1169_v16  ;;  %2086 = vmatprep.subr.bf16.mxu1 %v2465_v1 }
 0x349   : > { %2132 = vmatprep.mubr.msk.bf16.mxu0 %vm2466_vm0, %v2465_v1 }
 0x34e   : > { %2083 = vmatmul.mubr.msk.bf16.vlgmr.msra.gmra.mxu1 %vm832_vm1, %v943_v5 }
 0x34f   : > { %2088 = vmatprep.mubr.msk.bf16.mxu1 %vm2466_vm0, %v2465_v1 }
 0x400   : > { %v1100_v17 = vpop.f32.mrf.mxu0 }
 0x401   : > { %v1106_v18 = vmul.f32 0.17677669, %v1100_v17  ;;  %v2237_v17 = vld [vmem:[#allocation2 + $0x38] sm:$0xff]  }
 0x402   : > { %v2096_v19 = vpop.f32.mrf.mxu0  ;;  %2117 = vmatpush3.bf16.msra.mxu0 %v2237_v17  ;;  %v2276_v17 = vld [vmem:[#allocation6 + $0x20] sm:$0xff]  }
 0x403   : > { %v1107_v20 = vsel %vm552_vm3, %v1106_v18, -1e+10  ;;  %v2238_v18 = vld [vmem:[#allocation2 + $0x30] sm:$0xff]   ;;  %2118 = vmatprep.subr.bf16.mxu0 %v2465_v1  ;;  %v2239_v19 = vld [vmem:[#allocation2 + $0x28] sm:$0xff]  }
 0x404   : > { %v1103_v21 = vpop.f32.mrf.mxu0  ;;  %v1108_v22 = vsel %vm881_vm4, %v1107_v20, -inf }
 0x405   : > { %1109 = vmax.xlane.f32.xlu0 %v1108_v22  ;;  %v2241_v21 = vld [vmem:[#allocation2 + $0x18] sm:$0xff]   ;;  %v2243_v22 = vld [vmem:[#allocation2 + $0x8] sm:$0xff]  }
 0x406   : > { %v2791_v24 = vpop.f32.mrf.mxu1  ;;  %v2097_v25 = vpop.f32.mrf.mxu0  ;;  %2119 = vmatpush3.bf16.msra.mxu0 %v2238_v18  ;;  %v2277_v18 = vld [vmem:[#allocation6 + $0x58] sm:$0xff]  }
 0x407   : > { %2120 = vmatprep.subr.bf16.mxu0 %v2465_v1 }
 0x408   : > { %v2078_v26 = vpop.f32.mrf.mxu1  ;;  %v1212_v27 = vpop.f32.mrf.mxu0 }
 0x409   : > { %v1218_v37 = vmul.f32 0.17677669, %v1212_v27  ;;  %v2244_v27 = vld [vmem:[#allocation2] sm:$0xff]  }
 0x40a   : > { %v938_v28 = vpop.f32.mrf.mxu1  ;;  %v2108_v32 = vpop.f32.mrf.mxu0  ;;  %2121 = vmatpush3.bf16.msra.mxu0 %v2239_v19  ;;  %v2278_v19 = vld [vmem:[#allocation6 + $0x18] sm:$0xff]  }
 0x40b   : > { %v1219_v43 = vsel %vm552_vm3, %v1218_v37, -1e+10  ;;  %2122 = vmatprep.subr.bf16.mxu0 %v2465_v1 }
 0x40c   : > { %v2079_v33 = vpop.f32.mrf.mxu1  ;;  %v1215_v34 = vpop.f32.mrf.mxu0  ;;  %v1220_v45 = vsel %vm881_vm4, %v1219_v43, -inf }
 0x40e   : > { %v987_v35 = vpop.f32.mrf.mxu1  ;;  %v2109_v36 = vpop.f32.mrf.mxu0 }
 0x40f   : > { %v993_v38 = vmul.f32 0.17677669, %v987_v35 }
 0x410   : > { %v2084_v39 = vpop.f32.mrf.mxu1 }
 0x411   : > { %v994_v40 = vsel %vm552_vm3, %v993_v38, -1e+10 }
 0x412   : > { %v990_v41 = vpop.f32.mrf.mxu1  ;;  %v995_v42 = vsel %vm881_vm4, %v994_v40, -inf }
 0x413   : > { %996 = vmax.xlane.f32.xlu1 %v995_v42 }
 0x414   : > { %v2085_v44 = vpop.f32.mrf.mxu1 }
 0x417   : > { %1221 = vmax.xlane.f32.xlu1 %v1220_v45 }
 0x48e   : > { %v1110_v46 = vpop.xlane.xlu0 %1109 }
 0x48f   : > { %v1111_v47 = vsub.f32 %v1107_v20, %v1110_v46  ;;  %v2240_v20 = vld [vmem:[#allocation2 + $0x20] sm:$0xff]  }
 0x490   : > { %2123 = vmatpush3.bf16.msra.mxu0 %v2240_v20  ;;  %v2279_v20 = vld [vmem:[#allocation6 + $0x50] sm:$0xff]  }
 0x491   : > { %v1112_v48 = vmul.f32 1.442695, %v1111_v47  ;;  %2124 = vmatprep.subr.bf16.mxu0 %v2465_v1  ;;  %v1944_v47 = vld [vmem:[%s2865_s5] ss:$0 sm:$0xff] }
 0x493   : > { %2289 = vpow2.f32 %v1112_v48 }
 0x494   : > { %2125 = vmatpush3.bf16.msra.mxu0 %v2241_v21  ;;  %v2280_v21 = vld [vmem:[#allocation6 + $0x10] sm:$0xff]  }
 0x495   : > { %2126 = vmatprep.subr.bf16.mxu0 %v2465_v1 }
 0x49c   : > { %v997_v50 = vpop.xlane.xlu1 %996 }
 0x49d   : > { %v998_v51 = vsub.f32 %v994_v40, %v997_v50 }
 0x49f   : > { %v999_v57 = vmul.f32 1.442695, %v998_v51 }
 0x4a0   : > { %v2290_v52 = vpop.eup %2289  ;;  %v1222_v54 = vpop.xlane.xlu1 %1221 }
 0x4a1   : > { %v1223_v55 = vsub.f32 %v1219_v43, %v1222_v54  ;;  %v1114_v56 = vsel %vm881_vm4, %v2290_v52, 0.0 }
 0x4a2   : > { %1115 = vadd.xlane.f32.xlu0 %v1114_v56  ;;  %v2245_v56 = vld [vmem:[#allocation4 + $0x70] ss:$8 sps:$4 sm:$0xff]  }
 0x4a3   : > { %v1224_v58 = vmul.f32 1.442695, %v1223_v55 }
 0x4a5   : > { %2291 = vpow2.f32 %v1224_v58  ;;  %v2248_v58 = vld [vmem:[#allocation4 + $0x60] ss:$8 sps:$4 sm:$0xff]  }
 0x4a6   : > { %2293 = vpow2.f32 %v999_v57  ;;  %v2247_v57 = vld [vmem:[#allocation4 + $0x74] ss:$8 sps:$4 sm:$0xff]  }
 0x4b2   : > { %v2292_v53 = vpop.eup %2291 }
 0x4b3   : > { %v1226_v59 = vsel %vm881_vm4, %v2292_v53, 0.0  ;;  %v2294_v60 = vpop.eup %2293 }
 0x4b4   : > { %1227 = vadd.xlane.f32.xlu1 %v1226_v59  ;;  %v1001_v61 = vsel %vm881_vm4, %v2294_v60, 0.0 }
 0x4b8   : > { %1008 = vrot.lane.b32.xlu0 %v2753_v49, %s2467_s19  ;;  %1002 = vadd.xlane.f32.xlu1 %v1001_v61 }
 0x4c9   : > { %1120 = vrot.lane.b32.xlu1 %v2753_v49, %s2468_s18 }
 0x4cd   : > { %1232 = vrot.lane.b32.xlu1 %v2753_v49, %s2469_s17 }
 0x52b   : > { %v1116_v62 = vpop.xlane.xlu0 %1115 }
 0x52f   : > { %v1009_v63 = vpop.permute.xlu0 %1008 }
 0x530   : > { %v1014_v2 = vsel %vm897_vm2, %v1009_v63, 0  ;;  %v2251_v63 = vld [vmem:[#allocation4 + $0x50] ss:$8 sps:$4 sm:$0xff]  }
 0x531   : > { %2087 = vmatpush3.bf16.msra.mxu1 %v1014_v2  ;;  %v2256_v2 = vld [vmem:[#allocation4 + $0x44] ss:$8 sps:$4 sm:$0xff]  }
 0x532   : > { %2098 = vmatprep.subr.bf16.mxu1 %v2465_v1 }
 0x53d   : > { %v1228_v3 = vpop.xlane.xlu1 %1227 }
 0x541   : > { %v1003_v4 = vpop.xlane.xlu1 %1002 }
 0x542   : > { %2295 = vrcp.f32 %v1003_v4  ;;  %v2257_v4 = vld [vmem:[#allocation4 + $0x30] ss:$8 sps:$4 sm:$0xff]  }
 0x543   : > { %2297 = vrcp.f32 %v1116_v62  ;;  %v2253_v62 = vld [vmem:[#allocation4 + $0x54] ss:$8 sps:$4 sm:$0xff]  }
 0x544   : > { %2299 = vrcp.f32 %v1228_v3  ;;  %v2259_v3 = vld [vmem:[#allocation4 + $0x34] ss:$8 sps:$4 sm:$0xff]  }
 0x545   : > { %v1121_v7 = vpop.permute.xlu1 %1120 }
 0x546   : > { %v1126_v10 = vsel %vm897_vm2, %v1121_v7, 0  ;;  %v2265_v7 = vld [vmem:[#allocation4 + $0x14] ss:$8 sps:$4 sm:$0xff]  }
 0x549   : > { %v1233_v11 = vpop.permute.xlu1 %1232 }
 0x54a   : > { %v1238_v14 = vsel %vm897_vm2, %v1233_v11, 0  ;;  %v2270_v11 = vld [vmem:[#allocation6 + $0x38] sm:$0xff]  }
 0x54f   : > { %v2296_v5 = vpop.eup %2295 }
 0x550   : > { %v1005_v6 = vmul.f32 %v2296_v5, %v2294_v60  ;;  %v2298_v9 = vpop.eup %2297  ;;  %v2262_v5 = vld [vmem:[#allocation4 + $0x24] ss:$8 sps:$4 sm:$0xff]  }
 0x551   : > { %v1118_v49 = vmul.f32 %v2298_v9, %v2290_v52  ;;  %v2300_v13 = vpop.eup %2299  ;;  %v2268_v9 = vld [vmem:[#allocation4 + $0x4] ss:$8 sps:$4 sm:$0xff]  }
 0x552   : > { %v1006_v8 = vpack.c.bf16 %v1005_v6, %v1005_v6  ;;  %v1230_v15 = vmul.f32 %v2300_v13, %v2292_v53  ;;  %v2260_v6 = vld [vmem:[#allocation4 + $0x20] ss:$8 sps:$4 sm:$0xff]   ;;  %v2272_v13 = vld [vmem:[#allocation6 + $0x30] sm:$0xff]  }
 0x553   : > { %v1119_v12 = vpack.c.bf16 %v1118_v49, %v1118_v49  ;;  %v2269_v49 = vld [vmem:[#allocation6 + $0x78] sm:$0xff]  }
 0x554   : > { %2089 = vmatmul.mubr.msk.bf16.vlgmr.msra.gmra.mxu1 %vm881_vm4, %v1006_v8  ;;  %v1231_v16 = vpack.c.bf16 %v1230_v15, %v1230_v15  ;;  %v2263_v8 = vld [vmem:[#allocation4 + $0x10] ss:$8 sps:$4 sm:$0xff]   ;;  %v2274_v15 = vld [vmem:[#allocation6 + $0x28] sm:$0xff]  }
 0x555   : > { %2099 = vmatpush3.bf16.msra.mxu1 %v1126_v10  ;;  %2100 = vmatprep.mubr.msk.bf16.mxu1 %vm2466_vm0, %v2465_v1  ;;  %v2266_v10 = vld [vmem:[#allocation4] ss:$8 sps:$4 sm:$0xff]  }
 0x556   : > { %2110 = vmatprep.subr.bf16.mxu1 %v2465_v1 }
 0x55c   : > { %2101 = vmatmul.mubr.msk.bf16.vlgmr.msra.gmra.mxu1 %vm881_vm4, %v1119_v12  ;;  %v2271_v12 = vld [vmem:[#allocation6 + $0x70] sm:$0xff]  }
 0x55d   : > { %2111 = vmatpush3.bf16.msra.mxu1 %v1238_v14  ;;  %2112 = vmatprep.mubr.msk.bf16.mxu1 %vm2466_vm0, %v2465_v1  ;;  %v2273_v14 = vld [vmem:[#allocation6 + $0x68] sm:$0xff]  }
 0x55e   : > { %1563 = vmatprep.subr.bf16.mxu1 %v2247_v57 }
 0x564   : > { %2113 = vmatmul.mubr.msk.bf16.vlgmr.msra.gmra.mxu1 %vm881_vm4, %v1231_v16  ;;  %v2275_v16 = vld [vmem:[#allocation6 + $0x60] sm:$0xff]  }
 0x565   : > { %1595 = vmatprep.mubr.bf16.mxu1 %v2464_v0  ;;  %v2242_v0 = vld [vmem:[#allocation2 + $0x10] sm:$0xff]   ;;  %1564 = vmatpush1.bf16.msra.mxu1 %v2245_v56 }
 0x566   : > { %2127 = vmatpush3.bf16.msra.mxu0 %v2242_v0 }
 0x567   : > { %2128 = vmatprep.subr.bf16.mxu0 %v2465_v1 }
 0x56a   : > { %2129 = vmatpush3.bf16.msra.mxu0 %v2243_v22 }
 0x56b   : > { %2130 = vmatprep.subr.bf16.mxu0 %v2465_v1 }
 0x56e   : > { %2131 = vmatpush3.bf16.msra.mxu0 %v2244_v27  ;;  %v1953_v27 = vld [vmem:[%s2866_s6] ss:$0 sm:$0xff] }
 0x56f   : > { %2026 = vmatprep.subr.bf16.mxu0 %v2269_v49 }
 0x614   : > { %v1050_v25 = vpop.f32.mrf.mxu1 }
 0x615   : > { %1281 = vrot.lane.b32.xlu0 %v1050_v25, %s2469_s17 }
 0x616   : > { %v2090_v26 = vpop.f32.mrf.mxu1 }
 0x618   : > { %v1053_v28 = vpop.f32.mrf.mxu1 }
 0x61a   : > { %v2091_v32 = vpop.f32.mrf.mxu1 }
 0x61b   : > { %v1954_v32 = vld [vmem:[%s2867_s7] ss:$0 sm:$0xff] }
 0x61c   : > { %v1162_v33 = vpop.f32.mrf.mxu1 }
 0x61d   : > { %1285 = vrot.lane.b32.xlu1 %v1162_v33, %s2468_s18 }
 0x61e   : > { %v2102_v34 = vpop.f32.mrf.mxu1 }
 0x620   : > { %v1165_v35 = vpop.f32.mrf.mxu1 }
 0x622   : > { %v2103_v36 = vpop.f32.mrf.mxu1 }
 0x623   : > { %v2281_v36 = vld [vmem:[#allocation6 + $0x48] sm:$0xff]  }
 0x624   : > { %v1274_v37 = vpop.f32.mrf.mxu1 }
 0x625   : > { %1289 = vrot.lane.b32.xlu0 %v1274_v37, %s2467_s19  ;;  %v2282_v37 = vld [vmem:[#allocation6 + $0x8] sm:$0xff]  }
 0x626   : > { %v2114_v38 = vpop.f32.mrf.mxu1 }
 0x627   : > { %v2283_v38 = vld [vmem:[#allocation6 + $0x40] sm:$0xff]  }
 0x628   : > { %v1277_v39 = vpop.f32.mrf.mxu1 }
 0x629   : > { %v2284_v39 = vld [vmem:[#allocation6] sm:$0xff]  }
 0x62a   : > { %v2115_v40 = vpop.f32.mrf.mxu1 }
 0x62b   : > { %v1437_v40 = vld [vmem:[%s2869_s9] sm:$0x3] }
 0x687   : > { %v1282_v41 = vpop.permute.xlu0 %1281 }
 0x688   : > { %v1292_v1 = vsel %vm832_vm1, %v2791_v24, %v1282_v41  ;;  %v2250_v24 = vld [vmem:[#allocation4 + $0x64] ss:$8 sps:$4 sm:$0xff]   ;;  %v1476_v41 = vrot.slane %v1437_v40, %v607_v31  ;;  %v1971_v31 = vld [vmem:[%s2871_s11] ss:$0 sm:$0xff] }
 0x689   : > { %1565 = vmatprep.subr.bf16.mxu1 %v2250_v24 }
 0x68a   : > { %1566 = vmatpush1.bf16.msra.mxu1 %v2248_v58 }
 0x68b   : > { %1567 = vmatprep.subr.bf16.mxu1 %v2253_v62 }
 0x68e   : > { %1568 = vmatpush1.bf16.msra.mxu1 %v2251_v63 }
 0x68f   : > { %v1286_v42 = vpop.permute.xlu1 %1285  ;;  %1569 = vmatprep.subr.bf16.mxu1 %v2256_v2  ;;  %v1988_v2 = vld [vmem:[#allocation7] ss:$0 sm:$0xff] }
 0x690   : > { %v1294_v43 = vsel %vm1293_vm5, %v1292_v1, %v1286_v42  ;;  %v1480_v42 = vrot.slane %v1437_v40, %v611_v30 }
 0x697   : > { %v1290_v44 = vpop.permute.xlu0 %1289 }
 0x698   : > { %v1296_v45 = vsel %vm1295_vm6, %v1294_v43, %v1290_v44 }
 0x699   : > { %v1297_v46 = vpack.c.bf16 %v1296_v45, %v1296_v45 }
 0x69b   : > { %2133 = vmatmul.mubr.bf16.vlgmr.msra.gmra.mxu0 %v1297_v46 }
 0x69c   : > { %2027 = vmatpush3.bf16.msra.mxu0 %v2270_v11 }
 0x69d   : > { %2028 = vmatprep.subr.bf16.mxu0 %v2271_v12 }
 0x6a0   : > { %2029 = vmatpush3.bf16.msra.mxu0 %v2272_v13 }
 0x6a1   : > { %2030 = vmatprep.subr.bf16.mxu0 %v2273_v14 }
 0x6a4   : > { %2031 = vmatpush3.bf16.msra.mxu0 %v2274_v15 }
 0x6a5   : > { %2032 = vmatprep.subr.bf16.mxu0 %v2275_v16 }
 0x6a8   : > { %2033 = vmatpush3.bf16.msra.mxu0 %v2276_v17 }
 0x6a9   : > { %2034 = vmatprep.subr.bf16.mxu0 %v2277_v18 }
 0x6ac   : > { %2035 = vmatpush3.bf16.msra.mxu0 %v2278_v19 }
 0x6ad   : > { %2036 = vmatprep.subr.bf16.mxu0 %v2279_v20 }
 0x6b0   : > { %2037 = vmatpush3.bf16.msra.mxu0 %v2280_v21 }
 0x6b1   : > { %2038 = vmatprep.subr.bf16.mxu0 %v2281_v36 }
 0x6b4   : > { %2039 = vmatpush3.bf16.msra.mxu0 %v2282_v37 }
 0x6b5   : > { %2040 = vmatprep.subr.bf16.mxu0 %v2283_v38 }
 0x6b8   : > { %2041 = vmatpush3.bf16.msra.mxu0 %v2284_v39 }
 0x75b   : > { %v1386_v48 = vpop.f32.mrf.mxu0 }
 0x75c   : > { %v1387_v50 = vadd.f32 %v1944_v47, %v1386_v48 }
 0x75d   : > { %v2134_v51 = vpop.f32.mrf.mxu0 }
 0x75e   : > { %v1392_v52 = vadd.f32 %v1387_v50, %v2706_v23  ;;  %v2254_v23 = vld [vmem:[#allocation4 + $0x40] ss:$8 sps:$4 sm:$0xff]  }
 0x75f   : > { %v1389_v54 = vpop.f32.mrf.mxu0  ;;  %1570 = vmatpush1.bf16.msra.mxu1 %v2254_v23 }
 0x760   : > { %1395 = vadd.xlane.f32.xlu1 %v1392_v52  ;;  %1571 = vmatprep.subr.bf16.mxu1 %v2259_v3 }
 0x761   : > { %v2135_v55 = vpop.f32.mrf.mxu0 }
 0x763   : > { %1572 = vmatpush1.bf16.msra.mxu1 %v2257_v4  ;;  %v1989_v4 = vld [vmem:[#allocation9] ss:$0 sm:$0xff] }
 0x764   : > { %1573 = vmatprep.subr.bf16.mxu1 %v2262_v5 }
 0x767   : > { %1574 = vmatpush1.bf16.msra.mxu1 %v2260_v6 }
 0x768   : > { %1575 = vmatprep.subr.bf16.mxu1 %v2265_v7 }
 0x76b   : > { %1576 = vmatpush1.bf16.msra.mxu1 %v2263_v8 }
 0x76c   : > { %1577 = vmatprep.subr.bf16.mxu1 %v2268_v9 }
 0x76f   : > { %1578 = vmatpush1.bf16.msra.mxu1 %v2266_v10 }
 0x7e9   : > { %v1396_v53 = vpop.xlane.xlu1 %1395 }
 0x7ea   : > { %v1398_v59 = vmul.f32 0.0078125, %v1396_v53 }
 0x7ec   : > { %v1399_v60 = vsub.f32 %v1392_v52, %v1398_v59 }
 0x7ee   : > { %v1400_v61 = vmul.f32 %v1399_v60, %v1399_v60 }
 0x7f0   : > { %1401 = vadd.xlane.f32.xlu0 %v1400_v61 }
 0x879   : > { %v1402_v0 = vpop.xlane.xlu0 %1401 }
 0x87a   : > { %v1403_v22 = vmul.f32 0.0078125, %v1402_v0 }
 0x87c   : > { %v1404_v25 = vadd.f32 1e-05, %v1403_v22 }
 0x87e   : > { %2301 = vrsqrt.f32 %v1404_v25 }
 0x88b   : > { %v2302_v26 = vpop.eup %2301 }
 0x88c   : > { %v1406_v28 = vmul.f32 %v2302_v26, %v1399_v60 }
 0x88e   : > { %v1413_v33 = vmul.f32 %v1953_v27, %v1406_v28 }
 0x890   : > { %v1420_v34 = vadd.f32 %v1954_v32, %v1413_v33 }
 0x892   : > { %v1471_v35 = vpack.c.bf16 %v1420_v34, %v1420_v34 }
 0x894   : > { %1596 = vmatmul.mubr.bf16.vlgmr.msra.gmra.mxu1 %v1471_v35 }
 0x954   : > { %v1597_v1 = vpop.f32.mrf.mxu1 }
 0x955   : > { %v1598_v43 = vadd.f32 %v1597_v1, %v1476_v41 }
 0x956   : > { %v1599_v44 = vpop.f32.mrf.mxu1 }
 0x957   : > { %v1600_v45 = vadd.f32 %v1599_v44, %v1480_v42  ;;  %v1604_v46 = vmax.f32 %v1598_v43, 0.0 }
 0x958   : > { %v1601_v47 = vpop.f32.mrf.mxu1 }
 0x959   : > { %v1605_v48 = vmax.f32 %v1600_v45, 0.0  ;;  %v1606_v52 = vpack.c.bf16 %v1604_v46, %v1604_v46 }
 0x95a   : > { %v1602_v50 = vpop.f32.mrf.mxu1 }
 0x95b   : > { %v1607_v51 = vpack.c.bf16 %v1605_v48, %v1605_v48 }
 0x95d   : > { %1742 = vmatprep.mubr.bf16.mxu0 %v1607_v51 }
 0x95e   : > { %1743 = vmatmul.mubr.bf16.vlgmr.msra.gmra.mxu0 %v1606_v52 }
 0xa1e   : > { %v2042_v54 = vpop.f32.mrf.mxu0 }
 0xa20   : > { %v2043_v55 = vpop.f32.mrf.mxu0 }
 0xa21   : > { %v2044_v29 = vadd.f32 %v2043_v55, %v2042_v54 }
 0xa22   : > { %v2045_v30 = vpop.f32.mrf.mxu0 }
 0xa23   : > { %v1745_v56 = vadd.f32 %v2044_v29, %v1971_v31 }
 0xa24   : > { %v2046_v57 = vpop.f32.mrf.mxu0 }
 0xa25   : > { %v1750_v24 = vadd.f32 %v1745_v56, %v1420_v34 }
 0xa27   : > { %1753 = vadd.xlane.f32.xlu0 %v1750_v24 }
 0xab0   : > { %v1754_v58 = vpop.xlane.xlu0 %1753 }
 0xab1   : > { %v1755_v53 = vmul.f32 0.0078125, %v1754_v58 }
 0xab3   : > { %v1756_v59 = vsub.f32 %v1750_v24, %v1755_v53 }
 0xab5   : > { %v1757_v60 = vmul.f32 %v1756_v59, %v1756_v59 }
 0xab7   : > { %1758 = vadd.xlane.f32.xlu1 %v1757_v60 }
 0xb40   : > { %v1759_v61 = vpop.xlane.xlu1 %1758 }
 0xb41   : > { %v1760_v62 = vmul.f32 0.0078125, %v1759_v61 }
 0xb43   : > { %v1761_v63 = vadd.f32 1e-05, %v1760_v62 }
 0xb45   : > { %2303 = vrsqrt.f32 %v1761_v63 }
 0xb52   : > { %v2304_v23 = vpop.eup %2303 }
 0xb53   : > { %v1763_v3 = vmul.f32 %v2304_v23, %v1756_v59 }
 0xb55   : > { %v1770_v5 = vmul.f32 %v1988_v2, %v1763_v3 }
 0xb57   : > { %v1777_v6 = vadd.f32 %v1989_v4, %v1770_v5 }
 0xb59   : > { %1778 = vst [vmem:[%s548_s20] sm:$0xff] %v1777_v6 }
 0xb5a PF: > { %s27_s29 = sadd.s32 1, %s2453_s29  }
 0xb5b   : > { %p24_p0 = scmp.ge.s32.totalorder %s27_s29, 4  }
 0xb5d   :  { %26 = sbr.rel (!%p24_p0) target bundleno = 3 (0x3), region = 130 }
 0xb62   :  { %1798 = vsyncpa [#allocation3], 1 }
 0xb63   :  { %1800 = vsyncpa [#allocation3 + $0x1], 1 }
 0xb64   :  { %1801 = vsyncpa [#allocation5], 1 }
 0xb65   :  { %1802 = vsyncpa [#allocation8], 1 }

// kernel: seq2seq_forward.5
= control target key start
LH: loop header
LB: loop body
LE: loop exit
PB: predicated region body
PF: predicated region fallthrough
CT: control target
= control target key end

     0   :  { %s6869_s0 = inlined_call_operand.vmem [shape: f32[2,2,8,128], index: 0, kind: input, shape index: {}]   ;;  %s6870_s1 = inlined_call_operand.vmem [shape: f32[2,2,8,128], index: 1, kind: input, shape index: {}]   ;;  %s6871_s2 = inlined_call_operand.vmem [shape: f32[2,8,8], index: 2, kind: input, shape index: {}]   ;;  %s6872_s3 = inlined_call_operand.vmem [shape: f32[2,8,8], index: 3, kind: input, shape index: {}]   ;;  %s6873_s4 = inlined_call_operand.vmem [shape: bf16[2,128,384], index: 4, kind: input, shape index: {}]   ;;  %s6874_s5 = inlined_call_operand.hbm [shape: f32[2,1,384], index: 5, kind: input, shape index: {}]   ;;  %s6875_s6 = inlined_call_operand.hbm [shape: bf16[2,128,128], index: 6, kind: input, shape index: {}]   ;;  %s6876_s7 = inlined_call_operand.hbm [shape: f32[2,1,128], index: 7, kind: input, shape index: {}]   ;;  %s6877_s8 = inlined_call_operand.hbm [shape: f32[2,1,128], index: 8, kind: input, shape index: {}]   ;;  %s6878_s9 = inlined_call_operand.hbm [shape: f32[2,1,128], index: 9, kind: input, shape index: {}]   ;;  %s6879_s10 = inlined_call_operand.hbm [shape: bf16[2,128,128], index: 10, kind: input, shape index: {}]   ;;  %s6880_s11 = inlined_call_operand.hbm [shape: f32[2,1,128], index: 11, kind: input, shape index: {}]   ;;  %s6881_s12 = inlined_call_operand.vmem [shape: bf16[2,128,256], index: 12, kind: input, shape index: {}]   ;;  %s6882_s13 = inlined_call_operand.hbm [shape: f32[2,1,256], index: 13, kind: input, shape index: {}]   ;;  %s6883_s14 = inlined_call_operand.hbm [shape: bf16[2,128,128], index: 14, kind: input, shape index: {}]   ;;  %s6884_s15 = inlined_call_operand.hbm [shape: f32[2,1,128], index: 15, kind: input, shape index: {}]   ;;  %s6885_s16 = inlined_call_operand.hbm [shape: f32[2,1,128], index: 16, kind: input, shape index: {}]   ;;  %s6886_s17 = inlined_call_operand.hbm [shape: f32[2,1,128], index: 17, kind: input, shape index: {}]   ;;  %s6887_s18 = inlined_call_operand.vmem [shape: bf16[2,128,256], index: 18, kind: input, shape index: {}]   ;;  %s6888_s19 = inlined_call_operand.hbm [shape: f32[2,1,256], index: 19, kind: input, shape index: {}]   ;;  %s6889_s20 = inlined_call_operand.vmem [shape: bf16[2,256,128], index: 20, kind: input, shape index: {}]   ;;  %s6890_s21 = inlined_call_operand.hbm [shape: f32[2,1,128], index: 21, kind: input, shape index: {}]   ;;  %s6891_s22 = inlined_call_operand.hbm [shape: f32[2,1,128], index: 22, kind: input, shape index: {}]   ;;  %s6892_s23 = inlined_call_operand.hbm [shape: f32[2,1,128], index: 23, kind: input, shape index: {}]   ;;  %s6893_s24 = inlined_call_operand.hbm [shape: bf16[2,128,128], index: 24, kind: input, shape index: {}]   ;;  %s6894_s25 = inlined_call_operand.hbm [shape: f32[2,1,128], index: 25, kind: input, shape index: {}]   ;;  %s6895_s26 = inlined_call_operand.vmem [shape: f32[2,2,8,128], index: 26, kind: output, shape index: {0}]   ;;  %s6896_s27 = inlined_call_operand.vmem [shape: f32[2,2,4,8,8], index: 27, kind: output, shape index: {1}]  }
   0x1   :  { %6927 = sst [smem:[#allocation50_spill]] %s6869_s0 }
   0x2   :  { %6928 = sst [smem:[#allocation51_spill]] %s6870_s1 }
   0x3   :  { %6929 = sst [smem:[#allocation52_spill]] %s6871_s2 }
   0x4   :  { %6930 = sst [smem:[#allocation53_spill]] %s6872_s3 }
   0x5   :  { %6931 = sst [smem:[#allocation54_spill]] %s6873_s4 }
   0x6   :  { %6932 = sst [smem:[#allocation55_spill]] %s6874_s5 }
   0x7   :  { %6933 = sst [smem:[#allocation56_spill]] %s6875_s6 }
   0x8   :  { %6934 = sst [smem:[#allocation57_spill]] %s6876_s7 }
   0x9   :  { %6935 = sst [smem:[#allocation58_spill]] %s6877_s8 }
   0xa   :  { %6936 = sst [smem:[#allocation59_spill]] %s6878_s9 }
   0xb   :  { %6937 = sst [smem:[#allocation60_spill]] %s6879_s10 }
   0xc   :  { %6938 = sst [smem:[#allocation61_spill]] %s6880_s11 }
   0xd   :  { %6939 = sst [smem:[#allocation62_spill]] %s6881_s12 }
   0xe   :  { %6940 = sst [smem:[#allocation63_spill]] %s6882_s13 }
   0xf   :  { %6941 = sst [smem:[#allocation64_spill]] %s6884_s15 }
  0x10   :  { %6942 = sst [smem:[#allocation65_spill]] %s6886_s17 }
  0x11   :  { %6943 = sst [smem:[#allocation66_spill]] %s6887_s18 }
  0x12   :  { %6944 = sst [smem:[#allocation67_spill]] %s6889_s20 }
  0x13   :  { %6945 = sst [smem:[#allocation68_spill]] %s6890_s21 }
  0x14   :  { %6946 = sst [smem:[#allocation69_spill]] %s6891_s22 }
  0x15   :  { %6947 = sst [smem:[#allocation70_spill]] %s6893_s24 }
  0x16   :  { %6948 = sst [smem:[#allocation71_spill]] %s6894_s25 }
  0x17   :  { %6949 = sst [smem:[#allocation72_spill]] %s6895_s26 }
  0x18   :  { %6950 = sst [smem:[#allocation73_spill]] %s6896_s27 }
  0x19   :  { %33 = vsyncpa [#allocation3], 0 }
  0x1a   :  { %35 = vsyncpa [#allocation3 + $0x1], 0 }
  0x1b   :  { %36 = vsyncpa [#allocation5], 0 }
  0x1c   :  { %38 = vsyncpa [#allocation5 + $0x1], 0 }
  0x1d   :  { %39 = vsyncpa [#allocation8], 0 }
  0x1e   :  { %41 = vsyncpa [#allocation8 + $0x1], 0 }
  0x1f   :  { %42 = vsyncpa [#allocation11], 0 }
  0x20   :  { %44 = vsyncpa [#allocation11 + $0x1], 0 }
  0x21   :  { %45 = vsyncpa [#allocation14], 0 }
  0x22   :  { %47 = vsyncpa [#allocation14 + $0x1], 0 }
  0x23   :  { %48 = vsyncpa [#allocation17], 0 }
  0x24   :  { %50 = vsyncpa [#allocation17 + $0x1], 0 }
  0x25   :  { %51 = vsyncpa [#allocation20], 0 }
  0x26   :  { %53 = vsyncpa [#allocation20 + $0x1], 0 }
  0x27   :  { %54 = vsyncpa [#allocation23], 0 }
  0x28   :  { %56 = vsyncpa [#allocation23 + $0x1], 0 }
  0x29   :  { %57 = vsyncpa [#allocation26], 0 }
  0x2a   :  { %59 = vsyncpa [#allocation26 + $0x1], 0 }
  0x2b   :  { %60 = vsyncpa [#allocation29], 0 }
  0x2c   :  { %62 = vsyncpa [#allocation29 + $0x1], 0  ;;  %s5961_s7 = smov 0   ;;  %s5963_s4 = smov 0  }
  0x2d   :  { %s5965_s8 = smov 0   ;;  %s5967_s30 = smov 0  }
  0x2e   :  { %s5969_s9 = smov 0   ;;  %s5971_s5 = smov 0  }
  0x2f   :  { %s5973_s28 = smov 0   ;;  %s5975_s0 = smov 0  }
  0x30 LB: > { %6951 = sst [smem:[#allocation40_spill]] %s5769_s4  ;;  %s77_s10 = sadd.s32 1, %s5785_s5  ;;  %s5793_s0 = sphi %s5975_s0, %s68_s0   ;;  %s5789_s28 = sphi %s5973_s28, %s7023_s28   ;;  %s5785_s5 = sphi %s5971_s5, %s7020_s5   ;;  %s5781_s9 = sphi %s5969_s9, %s7022_s9   ;;  %s5777_s30 = sphi %s5967_s30, %s7019_s30   ;;  %s5773_s8 = sphi %s5965_s8, %s7018_s8   ;;  %s5769_s4 = sphi %s5963_s4, %s7017_s4   ;;  %s5765_s7 = sphi %s5961_s7, %s7016_s7  }
  0x31   : > { %6952 = sst [smem:[#allocation41_spill]] %s5773_s8  ;;  %p78_p0 = scmp.ge.s32.totalorder %s77_s10, 2 }
  0x32   : > { %6953 = sst [smem:[#allocation42_spill]] %s5777_s30  ;;  %s80_s29 = sadd.s32 1, %s5789_s28 }
  0x33   : > { %6954 = sst [smem:[#allocation43_spill]] %s5781_s9  ;;  %s6899_s1 = sadd.s32 4294967295, %s5793_s0  }
  0x34   : > { %6955 = sst [smem:[#allocation44_spill]] %s5785_s5  ;;  %p228_p1 = scmp.ne.s32.totalorder %s5773_s8, %s5769_s4 }
  0x35   : > { %6956 = sst [smem:[#allocation45_spill]] %s5793_s0  ;;  %s7025_s10 = smov (%p78_p0, %s77_s10), 0 }
  0x36   : > { %6957 = sst [smem:[#allocation46_spill]] %s7025_s10  ;;  %s7027_s29 = smov (!%p78_p0, %s80_s29), %s5789_s28 }
  0x37   : > { %p229_p2 = scmp.eq.s32.totalorder %s5793_s0, 0  ;;  %p234_p3 = scmp.ne.s32.totalorder %s5769_s4, %s5765_s7 }
  0x38   : > { %p82_p4 = scmp.ge.s32.totalorder %s7027_s29, 2  ;;  %p235_p5 = scmp.eq.s32.totalorder %s6899_s1, 0 }
  0x39   : > { %p6011_p6 = por %p229_p2, %p228_p1  ;;  %s221_s3 = sadd.s32 1, %s5773_s8 }
  0x3a   : > { %s7029_s29 = smov (%p82_p4, %s7027_s29), 0  ;;  %p6017_p7 = por %p235_p5, %p234_p3 }
  0x3b   : > { %6959 = sst [smem:[#allocation47_spill]] %s7029_s29  ;;  %s218_s2 = ssub.s32 %s5789_s28, %s7029_s29 }
  0x3c   : > { %s6960_s11 = scalar_select %p6017_p7, 1, 0 }
  0x3d   : > { %p219_p8 = scmp.eq.s32.totalorder %s218_s2, 0  ;;  %p4449_p9 = scmp.ge.s32.totalorder %s5793_s0, 4 }
  0x3e   : > { %6961 = sst [smem:[#allocation48_spill]] %s6960_s11  ;;  %s6029_s7 = sand.u32 (!%p4449_p9), 1, %s5773_s8  }
  0x3f   : > { %s6025_s10 = scalar_select %p219_p8, %s5773_s8, %s221_s3  }
  0x40   : > { %830 = sbr.rel (%p4449_p9) target bundleno = 313 (0x139), region = 16  ;;  %s6032_s1 = sand.u32 (!%p4449_p9), 1, %s5793_s0  }
  0x41   : > { %6962 = sst [smem:[#allocation49_spill]] %s6025_s10  ;;  %s6035_s5 = sshll.u32 (!%p4449_p9), %s6029_s7, 6 }
  0x42   : > { %s6038_s2 = sshll.u32 (!%p4449_p9), %s5789_s28, 10  ;;  %s6963_s10 = sld [smem:[#allocation56_spill]] (!%p4449_p9) }
  0x43   : > { %s901_s18 = scalar_lea.vmem (!%p4449_p9), [#allocation4], %s6035_s5  ;;  %s6046_s20 = sshll.u32 (!%p4449_p9), %s5789_s28, 4 }
  0x44   : > { %s908_s27 = sshll.u32 (!%p4449_p9), %s901_s18, 4  ;;  %s6912_s8 = scalar_lea.sflag (!%p4449_p9), [#allocation5], %s6032_s1  ;;  %s909_s27 = int_to_ptr.vmem [resolvable:$true] %s908_s27 }
  0x45   : > { %s5235_s12 = scalar_lea.vmem %s909_s27, 1024  ;;  %s5795_s30 = smov [#allocation4]  }
  0x46   : > { %p5236_p10 = scmp.ne.s32.totalorder %s909_s27, %s5235_s12  ;;  %s5239_s9 = sshll.u32 %s5795_s30, 4  ;;  %s5240_s9 = int_to_ptr.vmem [resolvable:$false] %s5239_s9 }
  0x47   : > { %s5241_s11 = scalar_lea.vmem %s5240_s9, 2048  ;;  %p5242_p13 = scmp.lt.s32.totalorder %s909_s27, %s5240_s9 }
  0x48   : > { %s907_s26 = scalar_lea.hbm %s6963_s10, %s6038_s2  ;;  %p5237_p11 = pnand %p5236_p10, %p6011_p6 }
  0x49   : > { %p5243_p0 = scmp.lt.s32.totalorder %s5241_s11, %s5235_s12 }
  0x4a   : > { %p5238_p12 = pneg %p5237_p11 }
  0x4b   : > { %p5244_p1 = por %p5243_p0, %p5242_p13 }
  0x4d   : > { %p5245_p2 = pnand %p5244_p1, %p5238_p12 }
  0x4f   : > { %5248 = shalt.err (!%p5245_p2)
}
  0x50   : > { %s6913_s10 = smov 64   ;;  %s6922_s18 = smov 4  }
  0x51   : > { %4950 = dma.hbm_to_vmem [thread:$0]  (%p6011_p6), %s907_s26, 1024, %s909_s27, %s6912_s8, %s6913_s10, %s6913_s10, %s6922_s18  }
  0x52   : > { %s6964_s12 = sld [smem:[#allocation58_spill]]  ;;  %s938_s11 = scalar_lea.vmem [#allocation7], %s6029_s7 }
  0x53   : > { %s945_s3 = sshll.u32 %s938_s11, 4  ;;  %s6915_s4 = scalar_lea.sflag [#allocation8], %s6032_s1  ;;  %s946_s3 = int_to_ptr.vmem [resolvable:$true] %s945_s3 }
  0x54   : > { %s5261_s0 = scalar_lea.vmem %s946_s3, 16  ;;  %s5798_s25 = smov [#allocation7]  }
  0x55   : > { %p5262_p3 = scmp.ne.s32.totalorder %s946_s3, %s5261_s0  ;;  %s5265_s24 = sshll.u32 %s5798_s25, 4  ;;  %s5266_s24 = int_to_ptr.vmem [resolvable:$false] %s5265_s24 }
  0x56   : > { %s5267_s22 = scalar_lea.vmem %s5266_s24, 32  ;;  %p5268_p8 = scmp.lt.s32.totalorder %s946_s3, %s5266_s24 }
  0x57   : > { %p5263_p4 = pnand %p5262_p3, %p6011_p6  ;;  %p5269_p9 = scmp.lt.s32.totalorder %s5267_s22, %s5261_s0 }
  0x58   : > { %s943_s29 = scalar_lea.hbm %s6964_s12, %s6046_s20 }
  0x59   : > { %p5264_p5 = pneg %p5263_p4  ;;  %p5270_p10 = por %p5269_p9, %p5268_p8 }
  0x5b   : > { %p5271_p11 = pnand %p5270_p10, %p5264_p5 }
  0x5d   : > { %5274 = shalt.err (!%p5271_p11)
}
  0x5e   : > { %4952 = dma.hbm_to_vmem [thread:$0]  (%p6011_p6), %s943_s29, 16, %s946_s3, %s6915_s4  }
  0x5f   : > { %s6965_s25 = sld [smem:[#allocation60_spill]]  ;;  %s973_s9 = scalar_lea.vmem [#allocation10], %s6035_s5 }
  0x60   : > { %s980_s24 = sshll.u32 %s973_s9, 4  ;;  %s6916_s22 = sshll.u32 %s6029_s7, 1  ;;  %s981_s24 = int_to_ptr.vmem [resolvable:$true] %s980_s24 }
  0x61   : > { %s6924_s0 = scalar_lea.sflag [#allocation11], %s6032_s1  ;;  %s5287_s12 = scalar_lea.vmem %s981_s24, 1024 }
  0x62   : > { %p5288_p12 = scmp.ne.s32.totalorder %s981_s24, %s5287_s12  ;;  %s5799_s11 = smov [#allocation10]  }
  0x63   : > { %s5291_s8 = sshll.u32 %s5799_s11, 4  ;;  %s5292_s8 = int_to_ptr.vmem [resolvable:$false] %s5291_s8 }
  0x64   : > { %p5289_p13 = pnand %p5288_p12, %p6011_p6  ;;  %s5293_s10 = scalar_lea.vmem %s5292_s8, 2048 }
  0x65   : > { %s979_s30 = scalar_lea.hbm %s6965_s25, %s6038_s2  ;;  %p5294_p1 = scmp.lt.s32.totalorder %s981_s24, %s5292_s8 }
  0x66   : > { %p5290_p0 = pneg %p5289_p13  ;;  %p5295_p2 = scmp.lt.s32.totalorder %s5293_s10, %s5287_s12 }
  0x68   : > { %p5296_p3 = por %p5295_p2, %p5294_p1 }
  0x6a   : > { %p5297_p4 = pnand %p5296_p3, %p5290_p0 }
  0x6c   : > { %5300 = shalt.err (!%p5297_p4)
}
  0x6d   : > { %s6966_s29 = smov 64   ;;  %s6917_s3 = sshll.u32 %s5789_s28, 5 }
  0x6e   : > { %4954 = dma.hbm_to_vmem [thread:$0]  (%p6011_p6), %s979_s30, 1024, %s981_s24, %s6924_s0, %s6966_s29, %s6966_s29, %s6922_s18  }
  0x6f   : > { %s6967_s13 = sld [smem:[#allocation63_spill]]  ;;  %s1019_s27 = scalar_lea.vmem [#allocation13], %s6916_s22 }
  0x70   : > { %s1027_s25 = sshll.u32 %s1019_s27, 4  ;;  %s6918_s9 = scalar_lea.sflag [#allocation14], %s6032_s1  ;;  %s1028_s25 = int_to_ptr.vmem [resolvable:$true] %s1027_s25 }
  0x71   : > { %s5313_s12 = scalar_lea.vmem %s1028_s25, 32  ;;  %s5800_s11 = smov [#allocation13]  }
  0x72   : > { %p5314_p5 = scmp.ne.s32.totalorder %s1028_s25, %s5313_s12  ;;  %s5317_s4 = sshll.u32 %s5800_s11, 4  ;;  %s5318_s4 = int_to_ptr.vmem [resolvable:$false] %s5317_s4 }
  0x73   : > { %s5319_s30 = scalar_lea.vmem %s5318_s4, 64  ;;  %p5320_p10 = scmp.lt.s32.totalorder %s1028_s25, %s5318_s4 }
  0x74   : > { %p5315_p8 = pnand %p5314_p5, %p6011_p6  ;;  %p5321_p11 = scmp.lt.s32.totalorder %s5319_s30, %s5313_s12 }
  0x75   : > { %s1025_s26 = scalar_lea.hbm %s6967_s13, %s6917_s3 }
  0x76   : > { %p5316_p9 = pneg %p5315_p8  ;;  %p5322_p12 = por %p5321_p11, %p5320_p10 }
  0x78   : > { %p5323_p13 = pnand %p5322_p12, %p5316_p9 }
  0x7a   : > { %5326 = shalt.err (!%p5323_p13)
}
  0x7b   : > { %4956 = dma.hbm_to_vmem [thread:$0]  (%p6011_p6), %s1025_s26, 32, %s1028_s25, %s6918_s9  }
  0x7c   : > { %s6968_s15 = sld [smem:[#allocation64_spill]]  ;;  %s1058_s27 = scalar_lea.vmem [#allocation16], %s6029_s7 }
  0x7d   : > { %s1065_s11 = sshll.u32 %s1058_s27, 4  ;;  %s6919_s4 = scalar_lea.sflag [#allocation17], %s6032_s1  ;;  %s1066_s11 = int_to_ptr.vmem [resolvable:$true] %s1065_s11 }
  0x7e   : > { %s5339_s12 = scalar_lea.vmem %s1066_s11, 16  ;;  %s5801_s30 = smov [#allocation16]  }
  0x7f   : > { %p5340_p0 = scmp.ne.s32.totalorder %s1066_s11, %s5339_s12  ;;  %s5343_s22 = sshll.u32 %s5801_s30, 4  ;;  %s5344_s22 = int_to_ptr.vmem [resolvable:$false] %s5343_s22 }
  0x80   : > { %s5345_s3 = scalar_lea.vmem %s5344_s22, 32  ;;  %p5346_p3 = scmp.lt.s32.totalorder %s1066_s11, %s5344_s22 }
  0x81   : > { %p5341_p1 = pnand %p5340_p0, %p6011_p6  ;;  %p5347_p4 = scmp.lt.s32.totalorder %s5345_s3, %s5339_s12 }
  0x82   : > { %s1063_s10 = scalar_lea.hbm %s6968_s15, %s6046_s20 }
  0x83   : > { %p5342_p2 = pneg %p5341_p1  ;;  %p5348_p5 = por %p5347_p4, %p5346_p3 }
  0x85   : > { %p5349_p8 = pnand %p5348_p5, %p5342_p2 }
  0x87   : > { %5352 = shalt.err (!%p5349_p8)
}
  0x88   : > { %4958 = dma.hbm_to_vmem [thread:$0]  (%p6011_p6), %s1063_s10, 16, %s1066_s11, %s6919_s4  }
  0x89   : > { %s6969_s17 = sld [smem:[#allocation65_spill]]  ;;  %s1092_s8 = scalar_lea.vmem [#allocation19], %s6029_s7 }
  0x8a   : > { %s1099_s27 = sshll.u32 %s1092_s8, 4  ;;  %s6920_s22 = scalar_lea.sflag [#allocation20], %s6032_s1  ;;  %s1100_s27 = int_to_ptr.vmem [resolvable:$true] %s1099_s27 }
  0x8b   : > { %s5365_s3 = scalar_lea.vmem %s1100_s27, 16  ;;  %s5802_s12 = smov [#allocation19]  }
  0x8c   : > { %p5366_p9 = scmp.ne.s32.totalorder %s1100_s27, %s5365_s3  ;;  %s5369_s30 = sshll.u32 %s5802_s12, 4  ;;  %s5370_s30 = int_to_ptr.vmem [resolvable:$false] %s5369_s30 }
  0x8d   : > { %s5371_s9 = scalar_lea.vmem %s5370_s30, 32  ;;  %p5372_p12 = scmp.lt.s32.totalorder %s1100_s27, %s5370_s30 }
  0x8e   : > { %p5367_p10 = pnand %p5366_p9, %p6011_p6  ;;  %p5373_p13 = scmp.lt.s32.totalorder %s5371_s9, %s5365_s3 }
  0x8f   : > { %s1097_s24 = scalar_lea.hbm %s6969_s17, %s6046_s20 }
  0x90   : > { %p5368_p11 = pneg %p5367_p10  ;;  %p5374_p0 = por %p5373_p13, %p5372_p12 }
  0x92   : > { %p5375_p1 = pnand %p5374_p0, %p5368_p11 }
  0x94   : > { %5378 = shalt.err (!%p5375_p1)
}
  0x95   : > { %4960 = dma.hbm_to_vmem [thread:$0]  (%p6011_p6), %s1097_s24, 16, %s1100_s27, %s6920_s22  }
  0x96   : > { %s6970_s21 = sld [smem:[#allocation68_spill]]  ;;  %s1144_s25 = scalar_lea.vmem [#allocation22], %s6029_s7 }
  0x97   : > { %s1151_s8 = sshll.u32 %s1144_s25, 4  ;;  %s6921_s9 = scalar_lea.sflag [#allocation23], %s6032_s1  ;;  %s1152_s8 = int_to_ptr.vmem [resolvable:$true] %s1151_s8 }
  0x98   : > { %s5391_s3 = scalar_lea.vmem %s1152_s8, 16  ;;  %s5803_s12 = smov [#allocation22]  }
  0x99   : > { %p5392_p2 = scmp.ne.s32.totalorder %s1152_s8, %s5391_s3  ;;  %s5395_s30 = sshll.u32 %s5803_s12, 4  ;;  %s5396_s30 = int_to_ptr.vmem [resolvable:$false] %s5395_s30 }
  0x9a   : > { %s5397_s4 = scalar_lea.vmem %s5396_s30, 32  ;;  %p5398_p5 = scmp.lt.s32.totalorder %s1152_s8, %s5396_s30 }
  0x9b   : > { %p5393_p3 = pnand %p5392_p2, %p6011_p6  ;;  %p5399_p8 = scmp.lt.s32.totalorder %s5397_s4, %s5391_s3 }
  0x9c   : > { %s1149_s26 = scalar_lea.hbm %s6970_s21, %s6046_s20 }
  0x9d   : > { %p5394_p4 = pneg %p5393_p3  ;;  %p5400_p9 = por %p5399_p8, %p5398_p5 }
  0x9f   : > { %p5401_p10 = pnand %p5400_p9, %p5394_p4 }
  0xa1   : > { %5404 = shalt.err (!%p5401_p10)
}
  0xa2   : > { %4962 = dma.hbm_to_vmem [thread:$0]  (%p6011_p6), %s1149_s26, 16, %s1152_s8, %s6921_s9  }
  0xa3   : > { %s1183_s10 = scalar_lea.hbm %s6892_s23, %s6046_s20  ;;  %s1178_s11 = scalar_lea.vmem [#allocation25], %s6029_s7 }
  0xa4   : > { %s1185_s25 = sshll.u32 %s1178_s11, 4  ;;  %s6925_s4 = scalar_lea.sflag [#allocation26], %s6032_s1  ;;  %s1186_s25 = int_to_ptr.vmem [resolvable:$true] %s1185_s25 }
  0xa5   : > { %s5417_s3 = scalar_lea.vmem %s1186_s25, 16  ;;  %s5804_s12 = smov [#allocation25]  }
  0xa6   : > { %p5418_p11 = scmp.ne.s32.totalorder %s1186_s25, %s5417_s3  ;;  %s5421_s30 = sshll.u32 %s5804_s12, 4  ;;  %s5422_s30 = int_to_ptr.vmem [resolvable:$false] %s5421_s30 }
  0xa7   : > { %s5423_s22 = scalar_lea.vmem %s5422_s30, 32  ;;  %p5424_p0 = scmp.lt.s32.totalorder %s1186_s25, %s5422_s30 }
  0xa8   : > { %p5419_p12 = pnand %p5418_p11, %p6011_p6  ;;  %p5425_p1 = scmp.lt.s32.totalorder %s5423_s22, %s5417_s3 }
  0xaa   : > { %p5420_p13 = pneg %p5419_p12  ;;  %p5426_p2 = por %p5425_p1, %p5424_p0 }
  0xac   : > { %p5427_p3 = pnand %p5426_p2, %p5420_p13 }
  0xae   : > { %5430 = shalt.err (!%p5427_p3)
}
  0xaf   : > { %4964 = dma.hbm_to_vmem [thread:$0]  (%p6011_p6), %s1183_s10, 16, %s1186_s25, %s6925_s4  }
  0xb0   : > { %s4945_s26 = smul.u32 3, %s6029_s7  ;;  %s6971_s11 = sld [smem:[#allocation57_spill]] }
  0xb1   : > { %s4946_s8 = smul.u32 48, %s5789_s28  ;;  %s921_s3 = scalar_lea.vmem [#allocation6], %s6029_s7 }
  0xb2   : > { %s928_s12 = sshll.u32 %s921_s3, 4  ;;  %s6972_s18 = sld [smem:[#allocation55_spill]]  ;;  %s6159_s12 = int_to_ptr.vmem [resolvable:$true] %s928_s12 }
  0xb3   : > { %s882_s13 = scalar_lea.vmem [#allocation2], %s4945_s26  ;;  %s879_s17 = scalar_lea.sflag [#allocation3], %s6029_s7 }
  0xb4   : > { %s890_s15 = sshll.u32 %s882_s13, 4  ;;  %s5805_s10 = smov [#allocation2]   ;;  %s891_s15 = int_to_ptr.vmem [resolvable:$true] %s890_s15 }
  0xb5   : > { %s5443_s21 = scalar_lea.vmem %s891_s15, 48  ;;  %s5447_s25 = sshll.u32 %s5805_s10, 4  ;;  %s5448_s25 = int_to_ptr.vmem [resolvable:$false] %s5447_s25 }
  0xb6   : > { %s926_s22 = scalar_lea.hbm %s6971_s11, %s6046_s20  ;;  %p5444_p4 = scmp.ne.s32.totalorder %s891_s15, %s5443_s21 }
  0xb7   : > { %s5449_s24 = scalar_lea.vmem %s5448_s25, 96  ;;  %p5450_p9 = scmp.lt.s32.totalorder %s891_s15, %s5448_s25 }
  0xb8   : > { %s888_s0 = scalar_lea.hbm %s6972_s18, %s4946_s8  ;;  %p5445_p5 = pnand %p5444_p4, %p6011_p6 }
  0xb9   : > { %p5451_p10 = scmp.lt.s32.totalorder %s5449_s24, %s5443_s21 }
  0xba   : > { %p5446_p8 = pneg %p5445_p5 }
  0xbb   : > { %p5452_p11 = por %p5451_p10, %p5450_p9 }
  0xbd   : > { %p5453_p12 = pnand %p5452_p11, %p5446_p8 }
  0xbf   : > { %5456 = shalt.err (!%p5453_p12)
}
  0xc0   : > { %4949 = dma.hbm_to_vmem [thread:$0]  (%p6011_p6), %s888_s0, 48, %s891_s15, %s879_s17  }
  0xc1   : > { %s5469_s13 = scalar_lea.vmem %s6159_s12, 16  ;;  %s5806_s18 = smov [#allocation6]  }
  0xc2   : > { %p5470_p13 = scmp.ne.s32.totalorder %s6159_s12, %s5469_s13  ;;  %s5473_s9 = sshll.u32 %s5806_s18, 4  ;;  %s5474_s9 = int_to_ptr.vmem [resolvable:$false] %s5473_s9 }
  0xc3   : > { %s5475_s26 = scalar_lea.vmem %s5474_s9, 32  ;;  %p5476_p2 = scmp.lt.s32.totalorder %s6159_s12, %s5474_s9 }
  0xc4   : > { %p5471_p0 = pnand %p5470_p13, %p6011_p6  ;;  %p5477_p3 = scmp.lt.s32.totalorder %s5475_s26, %s5469_s13 }
  0xc6   : > { %p5472_p1 = pneg %p5471_p0  ;;  %p5478_p4 = por %p5477_p3, %p5476_p2 }
  0xc8   : > { %p5479_p5 = pnand %p5478_p4, %p5472_p1 }
  0xca   : > { %5482 = shalt.err (!%p5479_p5)
}
  0xcb   : > { %s6973_s21 = scalar_lea.sflag [#allocation5], %s6032_s1  ;;  %s6974_s27 = sld [smem:[#allocation59_spill]] }
  0xcc   : > { %4951 = dma.hbm_to_vmem [thread:$0]  (%p6011_p6), %s926_s22, 16, %s6159_s12, %s6973_s21  }
  0xcd   : > { %s955_s30 = scalar_lea.vmem [#allocation9], %s6029_s7  ;;  %s6975_s13 = sld [smem:[#allocation61_spill]] }
  0xce   : > { %s962_s10 = sshll.u32 %s955_s30, 4  ;;  %s5807_s26 = smov [#allocation9]   ;;  %s963_s10 = int_to_ptr.vmem [resolvable:$true] %s962_s10 }
  0xcf   : > { %s5495_s9 = scalar_lea.vmem %s963_s10, 16  ;;  %s5499_s15 = sshll.u32 %s5807_s26, 4  ;;  %s5500_s15 = int_to_ptr.vmem [resolvable:$false] %s5499_s15 }
  0xd0   : > { %p5496_p8 = scmp.ne.s32.totalorder %s963_s10, %s5495_s9  ;;  %s5501_s22 = scalar_lea.vmem %s5500_s15, 32 }
  0xd1   : > { %s960_s3 = scalar_lea.hbm %s6974_s27, %s6046_s20  ;;  %p5502_p11 = scmp.lt.s32.totalorder %s963_s10, %s5500_s15 }
  0xd2   : > { %p5497_p9 = pnand %p5496_p8, %p6011_p6  ;;  %p5503_p12 = scmp.lt.s32.totalorder %s5501_s22, %s5495_s9 }
  0xd3   : > { %s998_s18 = scalar_lea.hbm %s6975_s13, %s6046_s20 }
  0xd4   : > { %p5498_p10 = pneg %p5497_p9  ;;  %p5504_p13 = por %p5503_p12, %p5502_p11 }
  0xd6   : > { %p5505_p0 = pnand %p5504_p13, %p5498_p10 }
  0xd8   : > { %5508 = shalt.err (!%p5505_p0)
}
  0xd9   : > { %s6976_s12 = scalar_lea.sflag [#allocation8], %s6032_s1  ;;  %s993_s21 = scalar_lea.vmem [#allocation12], %s6029_s7 }
  0xda   : > { %4953 = dma.hbm_to_vmem [thread:$0]  (%p6011_p6), %s960_s3, 16, %s963_s10, %s6976_s12  }
  0xdb   : > { %s1000_s17 = sshll.u32 %s993_s21, 4  ;;  %s1044_s27 = scalar_lea.hbm %s6883_s14, %s6038_s2  ;;  %s1001_s17 = int_to_ptr.vmem [resolvable:$true] %s1000_s17 }
  0xdc   : > { %s5521_s30 = scalar_lea.vmem %s1001_s17, 16  ;;  %s5808_s25 = smov [#allocation12]  }
  0xdd   : > { %p5522_p1 = scmp.ne.s32.totalorder %s1001_s17, %s5521_s30  ;;  %s5525_s24 = sshll.u32 %s5808_s25, 4  ;;  %s5526_s24 = int_to_ptr.vmem [resolvable:$false] %s5525_s24 }
  0xde   : > { %s5527_s9 = scalar_lea.vmem %s5526_s24, 32  ;;  %p5528_p4 = scmp.lt.s32.totalorder %s1001_s17, %s5526_s24 }
  0xdf   : > { %p5523_p2 = pnand %p5522_p1, %p6011_p6  ;;  %p5529_p5 = scmp.lt.s32.totalorder %s5527_s9, %s5521_s30 }
  0xe1   : > { %p5524_p3 = pneg %p5523_p2  ;;  %p5530_p8 = por %p5529_p5, %p5528_p4 }
  0xe3   : > { %p5531_p9 = pnand %p5530_p8, %p5524_p3 }
  0xe5   : > { %5534 = shalt.err (!%p5531_p9)
}
  0xe6   : > { %s6977_s3 = scalar_lea.sflag [#allocation11], %s6032_s1  ;;  %s1038_s15 = scalar_lea.vmem [#allocation15], %s6035_s5 }
  0xe7   : > { %4955 = dma.hbm_to_vmem [thread:$0]  (%p6011_p6), %s998_s18, 16, %s1001_s17, %s6977_s3  }
  0xe8   : > { %s1045_s22 = sshll.u32 %s1038_s15, 4  ;;  %s1080_s0 = scalar_lea.hbm %s6885_s16, %s6046_s20  ;;  %s1046_s22 = int_to_ptr.vmem [resolvable:$true] %s1045_s22 }
  0xe9   : > { %s5547_s8 = scalar_lea.vmem %s1046_s22, 1024  ;;  %s5809_s30 = smov [#allocation15]  }
  0xea   : > { %p5548_p10 = scmp.ne.s32.totalorder %s1046_s22, %s5547_s8  ;;  %s5551_s25 = sshll.u32 %s5809_s30, 4  ;;  %s5552_s25 = int_to_ptr.vmem [resolvable:$false] %s5551_s25 }
  0xeb   : > { %s5553_s24 = scalar_lea.vmem %s5552_s25, 2048  ;;  %p5554_p13 = scmp.lt.s32.totalorder %s1046_s22, %s5552_s25 }
  0xec   : > { %p5549_p11 = pnand %p5548_p10, %p6011_p6  ;;  %p5555_p0 = scmp.lt.s32.totalorder %s5553_s24, %s5547_s8 }
  0xee   : > { %p5550_p12 = pneg %p5549_p11  ;;  %p5556_p1 = por %p5555_p0, %p5554_p13 }
  0xf0   : > { %p5557_p2 = pnand %p5556_p1, %p5550_p12 }
  0xf2   : > { %5560 = shalt.err (!%p5557_p2)
}
  0xf3   : > { %s6978_s18 = smov 4   ;;  %s6979_s17 = scalar_lea.sflag [#allocation14], %s6032_s1 }
  0xf4   : > { %4957 = dma.hbm_to_vmem [thread:$0]  (%p6011_p6), %s1044_s27, 1024, %s1046_s22, %s6979_s17, %s6966_s29, %s6966_s29, %s6978_s18  }
  0xf5   : > { %s1075_s10 = scalar_lea.vmem [#allocation18], %s6029_s7  ;;  %s6980_s15 = sshll.u32 %s5789_s28, 5 }
  0xf6   : > { %s1082_s26 = sshll.u32 %s1075_s10, 4  ;;  %s6237_s8 = scalar_lea.hbm %s6888_s19, %s6980_s15  ;;  %s1083_s26 = int_to_ptr.vmem [resolvable:$true] %s1082_s26 }
  0xf7   : > { %s5573_s30 = scalar_lea.vmem %s1083_s26, 16  ;;  %s5810_s25 = smov [#allocation18]  }
  0xf8   : > { %p5574_p3 = scmp.ne.s32.totalorder %s1083_s26, %s5573_s30  ;;  %s5577_s24 = sshll.u32 %s5810_s25, 4  ;;  %s5578_s24 = int_to_ptr.vmem [resolvable:$false] %s5577_s24 }
  0xf9   : > { %s5579_s9 = scalar_lea.vmem %s5578_s24, 32  ;;  %p5580_p8 = scmp.lt.s32.totalorder %s1083_s26, %s5578_s24 }
  0xfa   : > { %p5575_p4 = pnand %p5574_p3, %p6011_p6  ;;  %p5581_p9 = scmp.lt.s32.totalorder %s5579_s9, %s5573_s30 }
  0xfc   : > { %p5576_p5 = pneg %p5575_p4  ;;  %p5582_p10 = por %p5581_p9, %p5580_p8 }
  0xfe   : > { %p5583_p11 = pnand %p5582_p10, %p5576_p5 }
 0x100   : > { %5586 = shalt.err (!%p5583_p11)
}
 0x101   : > { %s6981_s27 = scalar_lea.sflag [#allocation17], %s6032_s1  ;;  %s6982_s3 = sshll.u32 %s6029_s7, 1 }
 0x102   : > { %4959 = dma.hbm_to_vmem [thread:$0]  (%p6011_p6), %s1080_s0, 16, %s1083_s26, %s6981_s27  }
 0x103   : > { %s1118_s10 = scalar_lea.vmem [#allocation21], %s6982_s3  ;;  %s6983_s30 = sld [smem:[#allocation69_spill]] }
 0x104   : > { %s1126_s15 = sshll.u32 %s1118_s10, 4  ;;  %s5811_s22 = smov [#allocation21]   ;;  %s1127_s15 = int_to_ptr.vmem [resolvable:$true] %s1126_s15 }
 0x105   : > { %s5599_s9 = scalar_lea.vmem %s1127_s15, 32  ;;  %s5603_s17 = sshll.u32 %s5811_s22, 4  ;;  %s5604_s17 = int_to_ptr.vmem [resolvable:$false] %s5603_s17 }
 0x106   : > { %p5600_p12 = scmp.ne.s32.totalorder %s1127_s15, %s5599_s9  ;;  %s5605_s4 = scalar_lea.vmem %s5604_s17, 64 }
 0x107   : > { %p5606_p1 = scmp.lt.s32.totalorder %s1127_s15, %s5604_s17  ;;  %p5607_p2 = scmp.lt.s32.totalorder %s5605_s4, %s5599_s9 }
 0x108   : > { %p5601_p13 = pnand %p5600_p12, %p6011_p6 }
 0x109   : > { %s1166_s24 = scalar_lea.hbm %s6983_s30, %s6046_s20  ;;  %p5608_p3 = por %p5607_p2, %p5606_p1 }
 0x10a   : > { %p5602_p0 = pneg %p5601_p13 }
 0x10c   : > { %p5609_p4 = pnand %p5608_p3, %p5602_p0 }
 0x10e   : > { %5612 = shalt.err (!%p5609_p4)
}
 0x10f   : > { %s6985_s0 = scalar_lea.sflag [#allocation20], %s6032_s1  ;;  %s1161_s26 = scalar_lea.vmem [#allocation24], %s6029_s7 }
 0x110   : > { %4961 = dma.hbm_to_vmem [thread:$0]  (%p6011_p6), %s6237_s8, 32, %s1127_s15, %s6985_s0  }
 0x111   : > { %s1168_s27 = sshll.u32 %s1161_s26, 4  ;;  %s6986_s12 = sld [smem:[#allocation70_spill]]  ;;  %s1169_s27 = int_to_ptr.vmem [resolvable:$true] %s1168_s27 }
 0x112   : > { %s5625_s4 = scalar_lea.vmem %s1169_s27, 16  ;;  %s5812_s30 = smov [#allocation24]  }
 0x113   : > { %p5626_p5 = scmp.ne.s32.totalorder %s1169_s27, %s5625_s4  ;;  %s5629_s9 = sshll.u32 %s5812_s30, 4  ;;  %s5630_s9 = int_to_ptr.vmem [resolvable:$false] %s5629_s9 }
 0x114   : > { %s5631_s22 = scalar_lea.vmem %s5630_s9, 32  ;;  %p5632_p10 = scmp.lt.s32.totalorder %s1169_s27, %s5630_s9 }
 0x115   : > { %p5627_p8 = pnand %p5626_p5, %p6011_p6  ;;  %p5633_p11 = scmp.lt.s32.totalorder %s5631_s22, %s5625_s4 }
 0x117   : > { %s1202_s21 = scalar_lea.hbm %s6986_s12, %s6038_s2  ;;  %p5628_p9 = pneg %p5627_p8 }
 0x118   : > { %p5634_p12 = por %p5633_p11, %p5632_p10 }
 0x11a   : > { %p5635_p13 = pnand %p5634_p12, %p5628_p9 }
 0x11c   : > { %5638 = shalt.err (!%p5635_p13)
}
 0x11d   : > { %s6987_s8 = scalar_lea.sflag [#allocation23], %s6032_s1  ;;  %s1196_s0 = scalar_lea.vmem [#allocation27], %s6035_s5 }
 0x11e   : > { %4963 = dma.hbm_to_vmem [thread:$0]  (%p6011_p6), %s1166_s24, 16, %s1169_s27, %s6987_s8  }
 0x11f   : > { %s1203_s26 = sshll.u32 %s1196_s0, 4  ;;  %s5813_s10 = smov [#allocation27]   ;;  %s1204_s26 = int_to_ptr.vmem [resolvable:$true] %s1203_s26 }
 0x120   : > { %s5651_s3 = scalar_lea.vmem %s1204_s26, 1024  ;;  %s5655_s4 = sshll.u32 %s5813_s10, 4  ;;  %s5656_s4 = int_to_ptr.vmem [resolvable:$false] %s5655_s4 }
 0x121   : > { %p5652_p0 = scmp.ne.s32.totalorder %s1204_s26, %s5651_s3  ;;  %s5657_s30 = scalar_lea.vmem %s5656_s4, 2048 }
 0x122   : > { %p5658_p3 = scmp.lt.s32.totalorder %s1204_s26, %s5656_s4  ;;  %p5659_p4 = scmp.lt.s32.totalorder %s5657_s30, %s5651_s3 }
 0x123   : > { %p5653_p1 = pnand %p5652_p0, %p6011_p6 }
 0x124   : > { %p5660_p5 = por %p5659_p4, %p5658_p3 }
 0x125   : > { %p5654_p2 = pneg %p5653_p1 }
 0x127   : > { %p5661_p8 = pnand %p5660_p5, %p5654_p2 }
 0x129   : > { %5664 = shalt.err (!%p5661_p8)
}
 0x12a   : > { %s6988_s5 = scalar_lea.sflag [#allocation26], %s6032_s1  ;;  %s6989_s8 = sld [smem:[#allocation71_spill]] }
 0x12b   : > { %4965 = dma.hbm_to_vmem [thread:$0]  (%p6011_p6), %s1202_s21, 1024, %s1204_s26, %s6988_s5, %s6966_s29, %s6966_s29, %s6978_s18  }
 0x12c   : > { %s1216_s17 = scalar_lea.vmem [#allocation28], %s6029_s7  ;;  %s1214_s3 = scalar_lea.sflag [#allocation29], %s6029_s7 }
 0x12d   : > { %s1223_s0 = sshll.u32 %s1216_s17, 4  ;;  %s5814_s1 = smov [#allocation28]   ;;  %s1224_s0 = int_to_ptr.vmem [resolvable:$true] %s1223_s0 }
 0x12e   : > { %s5677_s10 = scalar_lea.vmem %s1224_s0, 16  ;;  %s5681_s2 = sshll.u32 %s5814_s1, 4  ;;  %s5682_s2 = int_to_ptr.vmem [resolvable:$false] %s5681_s2 }
 0x12f   : > { %p5678_p9 = scmp.ne.s32.totalorder %s1224_s0, %s5677_s10  ;;  %s5683_s4 = scalar_lea.vmem %s5682_s2, 32 }
 0x130   : > { %s1221_s15 = scalar_lea.hbm %s6989_s8, %s6046_s20  ;;  %p5684_p12 = scmp.lt.s32.totalorder %s1224_s0, %s5682_s2 }
 0x131   : > { %p5679_p10 = pnand %p5678_p9, %p6011_p6  ;;  %p5685_p13 = scmp.lt.s32.totalorder %s5683_s4, %s5677_s10 }
 0x133   : > { %p5680_p11 = pneg %p5679_p10  ;;  %p5686_p0 = por %p5685_p13, %p5684_p12 }
 0x135   : > { %p5687_p1 = pnand %p5686_p0, %p5680_p11 }
 0x137   : > { %5690 = shalt.err (!%p5687_p1)
}
 0x138   : > { %4966 = dma.hbm_to_vmem [thread:$0]  (%p6011_p6), %s1221_s15, 16, %s1224_s0, %s1214_s3  }
 0x139 PF: > { %s6990_s20 = sld [smem:[#allocation45_spill]] }
 0x13f   : > { %p4480_p2 = scmp.ge.s32.totalorder %s6990_s20, 1  ;;  %p1228_p3 = scmp.lt.s32.totalorder %s6990_s20, 5 }
 0x141   : > { %p1229_p4 = pnand %p4480_p2, %p1228_p3 }
 0x142   : > { %s6991_s7 = sld [smem:[#allocation40_spill]] (!%p1229_p4) }
 0x143   : > { %1232 = sbr.rel (%p1229_p4) target bundleno = 5038 (0x13ae), region = 124 }
 0x148   : > { %s6307_s18 = sand.u32 1, %s6991_s7  }
 0x149   : > { %s4947_s21 = smul.u32 3, %s6307_s18  ;;  %s1235_s26 = scalar_lea.sflag [#allocation3], %s6307_s18 }
 0x14b   : > { %s6311_s30 = scalar_lea.vmem [#allocation2], %s4947_s21 }
 0x14c   : > { %5724 = dma.done.wait (%p6017_p7), %s1235_s26, 48  }
 0x14d   : > { %5726 = vsyncadd (%p6017_p7), %s1235_s26, 4294967248  ;;  %s6993_s6 = sld [smem:[#allocation45_spill]]  ;;  %s6322_s27 = sshll.u32 %s6307_s18, 6 }
 0x14e   : > { %s6326_s22 = scalar_lea.vmem [#allocation4], %s6322_s27 }
 0x153   : > { %s6994_s5 = sadd.s32 4294967295, %s6993_s6  }
 0x154   : > { %s6319_s24 = sand.u32 1, %s6994_s5  }
 0x155   : > { %s1244_s9 = scalar_lea.sflag [#allocation5], %s6319_s24 }
 0x156   : > { %5728 = dma.done.wait (%p6017_p7), %s1244_s9, 1040  }
 0x157   : > { %5730 = vsyncadd (%p6017_p7), %s1244_s9, 4294966256  ;;  %s1255_s8 = scalar_lea.vmem [#allocation6], %s6307_s18  ;;  %s1261_s15 = scalar_lea.sflag [#allocation8], %s6319_s24 }
 0x158   : > { %s1263_s17 = scalar_lea.vmem [#allocation7], %s6307_s18 }
 0x159   : > { %5732 = dma.done.wait (%p6017_p7), %s1261_s15, 32  }
 0x15a   : > { %5734 = vsyncadd (%p6017_p7), %s1261_s15, 4294967264  ;;  %s1271_s0 = scalar_lea.vmem [#allocation9], %s6307_s18  ;;  %s1277_s3 = scalar_lea.sflag [#allocation11], %s6319_s24 }
 0x15b   : > { %s6342_s10 = scalar_lea.vmem [#allocation10], %s6322_s27 }
 0x15c   : > { %5736 = dma.done.wait (%p6017_p7), %s1277_s3, 1040  }
 0x15d   : > { %5738 = vsyncadd (%p6017_p7), %s1277_s3, 4294966256  ;;  %s4483_s1 = sshll.u32 %s6307_s18, 1  ;;  %s1288_s2 = scalar_lea.vmem [#allocation12], %s6307_s18 }
 0x15e   : > { %s1294_s4 = scalar_lea.sflag [#allocation14], %s6319_s24  ;;  %s6351_s20 = scalar_lea.vmem [#allocation13], %s4483_s1 }
 0x15f   : > { %5740 = dma.done.wait (%p6017_p7), %s1294_s4, 1056  }
 0x160   : > { %5742 = vsyncadd (%p6017_p7), %s1294_s4, 4294966240  ;;  %s6358_s7 = scalar_lea.vmem [#allocation15], %s6322_s27  ;;  %s1312_s21 = scalar_lea.sflag [#allocation17], %s6319_s24 }
 0x161   : > { %5744 = dma.done.wait (%p6017_p7), %s1312_s21, 32  }
 0x162   : > { %5746 = vsyncadd (%p6017_p7), %s1312_s21, 4294967264  ;;  %s1328_s5 = scalar_lea.sflag [#allocation20], %s6319_s24 }
 0x163   : > { %5748 = dma.done.wait (%p6017_p7), %s1328_s5, 48  }
 0x164   : > { %5750 = vsyncadd (%p6017_p7), %s1328_s5, 4294967248  ;;  %s6373_s15 = scalar_lea.vmem [#allocation21], %s4483_s1  ;;  %s1345_s3 = scalar_lea.sflag [#allocation23], %s6319_s24 }
 0x165   : > { %5752 = dma.done.wait (%p6017_p7), %s1345_s3, 32  }
 0x166   : > { %5754 = vsyncadd (%p6017_p7), %s1345_s3, 4294967264  ;;  %s1361_s9 = scalar_lea.sflag [#allocation26], %s6319_s24 }
 0x167   : > { %5756 = dma.done.wait (%p6017_p7), %s1361_s9, 1040  }
 0x168   : > { %5758 = vsyncadd (%p6017_p7), %s1361_s9, 4294966256  ;;  %s6389_s1 = scalar_lea.vmem [#allocation27], %s6322_s27  ;;  %s1378_s5 = scalar_lea.sflag [#allocation29], %s6307_s18 }
 0x169   : > { %5760 = dma.done.wait (%p6017_p7), %s1378_s5, 16  }
 0x16a   : > { %5762 = vsyncadd (%p6017_p7), %s1378_s5, 4294967280  ;;  %s6995_s24 = sld [smem:[#allocation43_spill]]  ;;  %v5815_v0 = vmov 0   ;;  %v5816_v19 = vmov 0.0   ;;  %vm5817_vm0 = vmmov 0   ;;  %v1701_v20 = vlaneseq  ;;  %s5820_s3 = smov 32  }
 0x16b   : > { %s6996_s6 = sld [smem:[#allocation42_spill]]  ;;  %1876 = vmatprep.mubr.bf16.mxu0 %v5815_v0  ;;  %4749 = vmatprep.subr.bf16.mxu1 %v5816_v19  ;;  %v6455_v24 = vld [vmem:[%s6311_s30] sm:$0x7]  ;;  %vm1928_vm1 = vcmask 261120   ;;  %s5819_s30 = smov 96   ;;  %vm1977_vm3 = vcmask 64512  }
 0x16c   : > { %s6997_s21 = sld [smem:[#allocation54_spill]]  ;;  %4765 = vmatprep.mubr.msk.bf16.mxu1 %vm5817_vm0, %v5816_v19  ;;  %v6446_v21 = vshrl.u32 %v1701_v20, 7  ;;  %vm1993_vm4 = vcmask 1043456   ;;  %vm2389_vm5 = vcmask 523264   ;;  %vm2391_vm6 = vcmask 785408  }
 0x16d   : > { %s6998_s9 = sld [smem:[#allocation50_spill]] }
 0x16e   : > { %v6449_v22 = vsub.s32 1, %v6446_v21  ;;  %v6452_v23 = vsub.s32 0, %v6446_v21  ;;  %v1711_v61 = vsub.s32 2, %v6446_v21 }
 0x170   : > { %p1581_p6 = scmp.lt.s32.totalorder %s6995_s24, 1  ;;  %v1708_v25 = vrot.slane %v6455_v24, %v6449_v22  ;;  %v1704_v27 = vrot.slane %v6455_v24, %v6452_v23  ;;  %v1712_v62 = vrot.slane %v6455_v24, %v1711_v61 }
 0x171   : > { %p1583_p7 = scmp.lt.s32.totalorder %s6996_s6, 1 }
 0x172   : > { %s7031_s24 = smov (!%p1581_p6, %s6995_s24), 1 }
 0x173   : > { %s4948_s27 = smul.u32 192, %s7031_s24  ;;  %s7033_s6 = smov (!%p1583_p7, %s6996_s6), 1 }
 0x174   : > { %s4487_s29 = sshll.u32 %s7031_s24, 1 }
 0x175   : > { %s6406_s4 = scalar_lea.vmem %s6997_s21, %s4948_s27  ;;  %s1586_s21 = sadd.s32 %s4487_s29, %s7033_s6 }
 0x176   : > { %v5057_v1 = vld [vmem:[%s6406_s4 + $0xac] ss:$12 sps:$4 sm:$0xff]   ;;  %v5059_v2 = vld [vmem:[%s6406_s4 + $0xa8] ss:$12 sps:$4 sm:$0xff]   ;;  %v5062_v4 = vld [vmem:[%s6406_s4 + $0x90] ss:$12 sps:$4 sm:$0xff]  }
 0x177   : > { %1844 = vmatprep.subr.bf16.mxu0 %v5057_v1  ;;  %v5060_v3 = vld [vmem:[%s6406_s4 + $0x94] ss:$12 sps:$4 sm:$0xff]   ;;  %v5063_v5 = vld [vmem:[%s6406_s4 + $0x7c] ss:$12 sps:$4 sm:$0xff]   ;;  %v5065_v6 = vld [vmem:[%s6406_s4 + $0x78] ss:$12 sps:$4 sm:$0xff]  }
 0x178   : > { %1845 = vmatpush1.bf16.msra.mxu0 %v5059_v2  ;;  %v5066_v7 = vld [vmem:[%s6406_s4 + $0x64] ss:$12 sps:$4 sm:$0xff]   ;;  %v5068_v8 = vld [vmem:[%s6406_s4 + $0x60] ss:$12 sps:$4 sm:$0xff]   ;;  %s6422_s5 = sshll.u32 %s1586_s21, 3  ;;  %s5818_s21 = smov 64  }
 0x179   : > { %1846 = vmatprep.subr.bf16.mxu0 %v5060_v3  ;;  %v5069_v9 = vld [vmem:[%s6406_s4 + $0x4c] ss:$12 sps:$4 sm:$0xff]   ;;  %v5071_v10 = vld [vmem:[%s6406_s4 + $0x48] ss:$12 sps:$4 sm:$0xff]   ;;  %v5074_v12 = vld [vmem:[%s6406_s4 + $0x30] ss:$12 sps:$4 sm:$0xff]   ;;  %s1588_s29 = scalar_lea.vmem %s6998_s9, %s6422_s5 }
 0x17a   : > { %v5072_v11 = vld [vmem:[%s6406_s4 + $0x34] ss:$12 sps:$4 sm:$0xff]   ;;  %v5075_v13 = vld [vmem:[%s6406_s4 + $0x1c] ss:$12 sps:$4 sm:$0xff]   ;;  %v5077_v14 = vld [vmem:[%s6406_s4 + $0x18] ss:$12 sps:$4 sm:$0xff]  }
 0x17b   : > { %v5078_v15 = vld [vmem:[%s6406_s4 + $0x4] ss:$12 sps:$4 sm:$0xff]   ;;  %v5080_v16 = vld [vmem:[%s6406_s4] ss:$12 sps:$4 sm:$0xff]   ;;  %v5084_v39 = vld [vmem:[%s6406_s4 + $0x68] ss:$12 sps:$4 sm:$0xff]  }
 0x17c   : > { %1847 = vmatpush1.bf16.msra.mxu0 %v5062_v4  ;;  %v6436_v17 = vld [vmem:[%s1588_s29] sm:$0xff]  ;;  %v5081_v36 = vld [vmem:[%s6406_s4 + $0xb0] ss:$12 sps:$4 sm:$0xff]   ;;  %v5088_v43 = vld [vmem:[%s6406_s4 + $0x8] ss:$12 sps:$4 sm:$0xff]   ;;  %s6999_s29 = sld [smem:[#allocation52_spill]] }
 0x17d   : > { %1848 = vmatprep.subr.bf16.mxu0 %v5063_v5  ;;  %v1699_v18 = vpack.c.bf16 %v6436_v17, %v6436_v17  ;;  %4750 = vmatpush3.bf16.msra.mxu1 %v5081_v36  ;;  %v5082_v37 = vld [vmem:[%s6406_s4 + $0x98] ss:$12 sps:$4 sm:$0xff]   ;;  %v5083_v38 = vld [vmem:[%s6406_s4 + $0x80] ss:$12 sps:$4 sm:$0xff]   ;;  %v5085_v40 = vld [vmem:[%s6406_s4 + $0x50] ss:$12 sps:$4 sm:$0xff]  }
 0x17e   : > { %4751 = vmatprep.subr.bf16.mxu1 %v5816_v19  ;;  %v5086_v41 = vld [vmem:[%s6406_s4 + $0x38] ss:$12 sps:$4 sm:$0xff]   ;;  %v5087_v42 = vld [vmem:[%s6406_s4 + $0x20] ss:$12 sps:$4 sm:$0xff]   ;;  %s6926_s4 = sshll.u32 %s7033_s6, 3  ;;  %s7000_s9 = sld [smem:[#allocation62_spill]] }
 0x17f   : > { %s7001_s27 = sld [smem:[#allocation67_spill]] }
 0x180   : > { %1849 = vmatpush1.bf16.msra.mxu0 %v5065_v6 }
 0x181   : > { %1850 = vmatprep.subr.bf16.mxu0 %v5066_v7  ;;  %4752 = vmatpush3.bf16.msra.mxu1 %v5082_v37 }
 0x182   : > { %4753 = vmatprep.subr.bf16.mxu1 %v5816_v19  ;;  %s1600_s26 = scalar_lea.vmem %s6999_s29, %s6926_s4 }
 0x183   : > { %v1645_v53 = vld [vmem:[%s1600_s26] sm:$0xff] }
 0x184   : > { %1851 = vmatpush1.bf16.msra.mxu0 %v5068_v8  ;;  %vm1646_vm2 = vcmp.gt.f32.partialorder %v1645_v53, 0.0 }
 0x185   : > { %1852 = vmatprep.subr.bf16.mxu0 %v5069_v9  ;;  %4754 = vmatpush3.bf16.msra.mxu1 %v5083_v38 }
 0x186   : > { %4755 = vmatprep.subr.bf16.mxu1 %v5816_v19 }
 0x188   : > { %1853 = vmatpush1.bf16.msra.mxu0 %v5071_v10 }
 0x189   : > { %1854 = vmatprep.subr.bf16.mxu0 %v5072_v11  ;;  %4756 = vmatpush3.bf16.msra.mxu1 %v5084_v39 }
 0x18a   : > { %4757 = vmatprep.subr.bf16.mxu1 %v5816_v19 }
 0x18c   : > { %1855 = vmatpush1.bf16.msra.mxu0 %v5074_v12 }
 0x18d   : > { %1856 = vmatprep.subr.bf16.mxu0 %v5075_v13  ;;  %4758 = vmatpush3.bf16.msra.mxu1 %v5085_v40 }
 0x18e   : > { %4759 = vmatprep.subr.bf16.mxu1 %v5816_v19 }
 0x190   : > { %1857 = vmatpush1.bf16.msra.mxu0 %v5077_v14 }
 0x191   : > { %1858 = vmatprep.subr.bf16.mxu0 %v5078_v15  ;;  %4760 = vmatpush3.bf16.msra.mxu1 %v5086_v41 }
 0x192   : > { %4761 = vmatprep.subr.bf16.mxu1 %v5816_v19 }
 0x194   : > { %1859 = vmatpush1.bf16.msra.mxu0 %v5080_v16 }
 0x195   : > { %4769 = vmatprep.subr.bf16.mxu0 %v5816_v19  ;;  %4762 = vmatpush3.bf16.msra.mxu1 %v5087_v42 }
 0x196   : > { %4763 = vmatprep.subr.bf16.mxu1 %v5816_v19 }
 0x197   : > { %1877 = vmatmul.mubr.bf16.vlgmr.msra.gmra.mxu0 %v1699_v18 }
 0x198   : > { %4771 = vmatprep.mubr.msk.bf16.mxu0 %vm5817_vm0, %v5816_v19 }
 0x199   : > { %4764 = vmatpush3.bf16.msra.mxu1 %v5088_v43 }
 0x19a   : > { %4775 = vmatprep.subr.bf16.mxu1 %v5816_v19 }
 0x19c   : > { %4766 = vmatmul.mubr.bf16.vlgmr.msra.gmra.mxu1 %v1699_v18 }
 0x19d   : > { %4777 = vmatprep.mubr.msk.bf16.mxu1 %vm5817_vm0, %v5816_v19 }
 0x257   : > { %v1878_v26 = vpop.f32.mrf.mxu0 }
 0x258   : > { %v1879_v31 = vadd.f32 %v1878_v26, %v1704_v27 }
 0x259   : > { %v1880_v28 = vpop.f32.mrf.mxu0 }
 0x25a   : > { %v1881_v29 = vadd.f32 %v1880_v28, %v1708_v25  ;;  %v1925_v35 = vpack.c.bf16 %v1879_v31, %v1879_v31 }
 0x25b   : > { %v1882_v30 = vpop.f32.mrf.mxu0 }
 0x25c   : > { %v1926_v32 = vpack.c.bf16 %v1881_v29, %v1881_v29  ;;  %v1919_v63 = vpop.f32.mrf.mxu1 }
 0x25d   : > { %v1883_v33 = vpop.f32.mrf.mxu0  ;;  %v1920_v1 = vadd.f32 %v1919_v63, %v1712_v62 }
 0x25e   : > { %2154 = vrot.lane.b32.xlu1 %v1926_v32, %s5818_s21  ;;  %2041 = vrot.lane.b32.xlu0 %v1926_v32, %s5819_s30  ;;  %v1933_v34 = vsel %vm1928_vm1, %v1926_v32, 0  ;;  %v4767_v2 = vpop.f32.mrf.mxu1 }
 0x25f   : > { %4770 = vmatpush3.bf16.xpose.msra.mxu0 %v1933_v34  ;;  %v6515_v3 = vpack.c.bf16 %v1920_v1, %v1920_v1 }
 0x260   : > { %4781 = vmatprep.subr.bf16.mxu0 %v5816_v19  ;;  %v1922_v4 = vpop.f32.mrf.mxu1 }
 0x261   : > { %v1995_v5 = vsel %vm1993_vm4, %v6515_v3, 0 }
 0x262   : > { %2152 = vrot.lane.b32.xlu1 %v1925_v35, %s5818_s21  ;;  %2038 = vrot.lane.b32.xlu0 %v1925_v35, %s5819_s30  ;;  %v4768_v6 = vpop.f32.mrf.mxu1 }
 0x263   : > { %4776 = vmatpush3.bf16.msra.mxu1 %v1995_v5 }
 0x264   : > { %4787 = vmatprep.subr.bf16.mxu1 %v5816_v19 }
 0x266   : > { %2264 = vrot.lane.b32.xlu1 %v1925_v35, %s5820_s3  ;;  %2266 = vrot.lane.b32.xlu0 %v1926_v32, %s5820_s3 }
 0x267   : > { %4772 = vmatmul.mubr.msk.bf16.vlgmr.msra.gmra.mxu0 %vm1928_vm1, %v1925_v35 }
 0x268   : > { %4783 = vmatprep.mubr.msk.bf16.mxu0 %vm5817_vm0, %v5816_v19 }
 0x2d0   : > { %v2042_v44 = vpop.permute.xlu0 %2041  ;;  %v2155_v46 = vpop.permute.xlu1 %2154 }
 0x2d1   : > { %v2047_v45 = vsel %vm1928_vm1, %v2042_v44, 0  ;;  %v2160_v48 = vsel %vm1928_vm1, %v2155_v46, 0 }
 0x2d2   : > { %4782 = vmatpush3.bf16.xpose.msra.mxu0 %v2047_v45 }
 0x2d3   : > { %4793 = vmatprep.subr.bf16.mxu0 %v5816_v19 }
 0x2d4   : > { %v2039_v47 = vpop.permute.xlu0 %2038  ;;  %v2153_v50 = vpop.permute.xlu1 %2152 }
 0x2d8   : > { %v2267_v49 = vpop.permute.xlu0 %2266  ;;  %v2265_v52 = vpop.permute.xlu1 %2264 }
 0x2d9   : > { %4784 = vmatmul.mubr.msk.bf16.vlgmr.msra.gmra.mxu0 %vm1928_vm1, %v2039_v47  ;;  %v2272_v51 = vsel %vm1928_vm1, %v2267_v49, 0 }
 0x2da   : > { %4794 = vmatpush3.bf16.xpose.msra.mxu0 %v2160_v48  ;;  %4795 = vmatprep.mubr.msk.bf16.mxu0 %vm5817_vm0, %v5816_v19 }
 0x2db   : > { %4805 = vmatprep.subr.bf16.mxu0 %v5816_v19 }
 0x2e1   : > { %4796 = vmatmul.mubr.msk.bf16.vlgmr.msra.gmra.mxu0 %vm1928_vm1, %v2153_v50 }
 0x2e2   : > { %4806 = vmatpush3.bf16.xpose.msra.mxu0 %v2272_v51  ;;  %4807 = vmatprep.mubr.msk.bf16.mxu0 %vm5817_vm0, %v5816_v19 }
 0x2e3   : > { %4817 = vmatprep.subr.bf16.mxu0 %v5816_v19 }
 0x2e9   : > { %4808 = vmatmul.mubr.msk.bf16.vlgmr.msra.gmra.mxu0 %vm1928_vm1, %v2265_v52 }
 0x2ea   : > { %4833 = vmatprep.mubr.msk.bf16.mxu0 %vm5817_vm0, %v5816_v19 }
 0x327   : > { %v1969_v54 = vpop.f32.mrf.mxu0 }
 0x328   : > { %v1975_v55 = vmul.f32 0.17677669, %v1969_v54 }
 0x329   : > { %v4773_v56 = vpop.f32.mrf.mxu0 }
 0x32a   : > { %v1976_v57 = vsel %vm1646_vm2, %v1975_v55, -1e+10 }
 0x32b   : > { %v1972_v58 = vpop.f32.mrf.mxu0  ;;  %v1978_v59 = vsel %vm1977_vm3, %v1976_v57, -inf }
 0x32c   : > { %1979 = vmax.xlane.f32.xlu0 %v1978_v59 }
 0x32d   : > { %v4774_v60 = vpop.f32.mrf.mxu0 }
 0x399   : > { %v2083_v7 = vpop.f32.mrf.mxu0 }
 0x39a   : > { %v2089_v8 = vmul.f32 0.17677669, %v2083_v7 }
 0x39b   : > { %v4785_v9 = vpop.f32.mrf.mxu0 }
 0x39c   : > { %v2090_v10 = vsel %vm1646_vm2, %v2089_v8, -1e+10 }
 0x39d   : > { %v2086_v11 = vpop.f32.mrf.mxu0  ;;  %v2091_v12 = vsel %vm1977_vm3, %v2090_v10, -inf }
 0x39e   : > { %2092 = vmax.xlane.f32.xlu1 %v2091_v12 }
 0x39f   : > { %v4786_v13 = vpop.f32.mrf.mxu0 }
 0x3a1   : > { %v2196_v14 = vpop.f32.mrf.mxu0 }
 0x3a2   : > { %v2202_v15 = vmul.f32 0.17677669, %v2196_v14 }
 0x3a3   : > { %v4797_v16 = vpop.f32.mrf.mxu0 }
 0x3a4   : > { %v2203_v18 = vsel %vm1646_vm2, %v2202_v15, -1e+10  ;;  %v5089_v15 = vld [vmem:[%s6326_s22 + $0x38] sm:$0xff]   ;;  %v5090_v16 = vld [vmem:[%s6326_s22 + $0x30] sm:$0xff]  }
 0x3a5   : > { %v2199_v20 = vpop.f32.mrf.mxu0  ;;  %v2204_v21 = vsel %vm1977_vm3, %v2203_v18, -inf  ;;  %4818 = vmatpush3.bf16.msra.mxu0 %v5089_v15 }
 0x3a6   : > { %2205 = vmax.xlane.f32.xlu0 %v2204_v21  ;;  %4819 = vmatprep.subr.bf16.mxu0 %v5816_v19  ;;  %v5092_v20 = vld [vmem:[%s6326_s22 + $0x20] sm:$0xff]   ;;  %v5093_v21 = vld [vmem:[%s6326_s22 + $0x18] sm:$0xff]  }
 0x3a7   : > { %v4798_v24 = vpop.f32.mrf.mxu0 }
 0x3a8   : > { %v5094_v24 = vld [vmem:[%s6326_s22 + $0x10] sm:$0xff]  }
 0x3a9   : > { %v2308_v25 = vpop.f32.mrf.mxu0  ;;  %4820 = vmatpush3.bf16.msra.mxu0 %v5090_v16  ;;  %v5126_v16 = vld [vmem:[%s6342_s10 + $0x10] sm:$0xff]  }
 0x3aa   : > { %v2314_v26 = vmul.f32 0.17677669, %v2308_v25  ;;  %4821 = vmatprep.subr.bf16.mxu0 %v5816_v19  ;;  %v5095_v25 = vld [vmem:[%s6326_s22 + $0x8] sm:$0xff]  }
 0x3ab   : > { %v4809_v27 = vpop.f32.mrf.mxu0 }
 0x3ac   : > { %v2315_v28 = vsel %vm1646_vm2, %v2314_v26, -1e+10 }
 0x3ad   : > { %v2311_v29 = vpop.f32.mrf.mxu0  ;;  %v2316_v30 = vsel %vm1977_vm3, %v2315_v28, -inf }
 0x3ae   : > { %2317 = vmax.xlane.f32.xlu0 %v2316_v30 }
 0x3af   : > { %v4810_v31 = vpop.f32.mrf.mxu0 }
 0x3b5   : > { %v1980_v32 = vpop.xlane.xlu0 %1979 }
 0x3b6   : > { %v1981_v33 = vsub.f32 %v1976_v57, %v1980_v32 }
 0x3b8   : > { %v1982_v34 = vmul.f32 1.442695, %v1981_v33 }
 0x3ba   : > { %5185 = vpow2.f32 %v1982_v34 }
 0x3c7   : > { %v5186_v35 = vpop.eup %5185 }
 0x3c8   : > { %v1984_v36 = vsel %vm1977_vm3, %v5186_v35, 0.0 }
 0x3c9   : > { %1985 = vadd.xlane.f32.xlu1 %v1984_v36 }
 0x3da   : > { %2104 = vrot.lane.b32.xlu1 %v6515_v3, %s5819_s30 }
 0x427   : > { %v2093_v37 = vpop.xlane.xlu1 %2092 }
 0x428   : > { %v2094_v38 = vsub.f32 %v2090_v10, %v2093_v37 }
 0x42a   : > { %v2095_v39 = vmul.f32 1.442695, %v2094_v38 }
 0x42c   : > { %5187 = vpow2.f32 %v2095_v39 }
 0x42f   : > { %v2206_v40 = vpop.xlane.xlu0 %2205 }
 0x430   : > { %v2207_v41 = vsub.f32 %v2203_v18, %v2206_v40  ;;  %v5091_v18 = vld [vmem:[%s6326_s22 + $0x28] sm:$0xff]  }
 0x431   : > { %4822 = vmatpush3.bf16.msra.mxu0 %v5091_v18  ;;  %v5127_v18 = vld [vmem:[%s6342_s10 + $0x8] sm:$0xff]  }
 0x432   : > { %v2208_v42 = vmul.f32 1.442695, %v2207_v41  ;;  %4823 = vmatprep.subr.bf16.mxu0 %v5816_v19 }
 0x434   : > { %5189 = vpow2.f32 %v2208_v42 }
 0x435   : > { %4824 = vmatpush3.bf16.msra.mxu0 %v5092_v20  ;;  %v5128_v20 = vld [vmem:[%s6342_s10] sm:$0xff]  }
 0x436   : > { %4825 = vmatprep.subr.bf16.mxu0 %v5816_v19 }
 0x437   : > { %v2318_v43 = vpop.xlane.xlu0 %2317 }
 0x438   : > { %v2319_v44 = vsub.f32 %v2315_v28, %v2318_v43  ;;  %v5096_v28 = vld [vmem:[%s6326_s22] sm:$0xff]   ;;  %s6580_s22 = sshll.u32 %s7031_s24, 7 }
 0x439   : > { %v5188_v45 = vpop.eup %5187  ;;  %4826 = vmatpush3.bf16.msra.mxu0 %v5093_v21  ;;  %s6587_s29 = scalar_lea.vmem %s7000_s9, %s6580_s22  ;;  %s6602_s9 = scalar_lea.vmem %s7001_s27, %s6580_s22 }
 0x43a   : > { %v2320_v46 = vmul.f32 1.442695, %v2319_v44  ;;  %v2097_v47 = vsel %vm1977_vm3, %v5188_v45, 0.0  ;;  %4827 = vmatprep.subr.bf16.mxu0 %v5816_v19  ;;  %s7002_s27 = sld [smem:[#allocation51_spill]] }
 0x43b   : > { %2098 = vadd.xlane.f32.xlu0 %v2097_v47 }
 0x43c   : > { %5191 = vpow2.f32 %v2320_v46  ;;  %v4537_v46 = vld [vmem:[%s1255_s8] ss:$0 sm:$0xff] }
 0x43d   : > { %4828 = vmatpush3.bf16.msra.mxu0 %v5094_v24 }
 0x43e   : > { %4829 = vmatprep.subr.bf16.mxu0 %v5816_v19 }
 0x440   : > { %s1596_s4 = scalar_lea.vmem %s7002_s27, %s6422_s5 }
 0x441   : > { %v5190_v48 = vpop.eup %5189  ;;  %4830 = vmatpush3.bf16.msra.mxu0 %v5095_v25 }
 0x442   : > { %v2210_v49 = vsel %vm1977_vm3, %v5190_v48, 0.0  ;;  %4831 = vmatprep.subr.bf16.mxu0 %v5816_v19 }
 0x443   : > { %2211 = vadd.xlane.f32.xlu1 %v2210_v49 }
 0x445   : > { %4832 = vmatpush3.bf16.msra.mxu0 %v5096_v28 }
 0x449   : > { %v5192_v50 = vpop.eup %5191 }
 0x44a   : > { %v2322_v51 = vsel %vm1977_vm3, %v5192_v50, 0.0 }
 0x44b   : > { %2323 = vadd.xlane.f32.xlu0 %v2322_v51 }
 0x452   : > { %v1986_v52 = vpop.xlane.xlu1 %1985 }
 0x453   : > { %5193 = vrcp.f32 %v1986_v52 }
 0x454   : > { %2328 = vrot.lane.b32.xlu1 %v6515_v3, %s5820_s3 }
 0x456   : > { %v2105_v54 = vpop.permute.xlu1 %2104 }
 0x457   : > { %v2110_v57 = vsel %vm1993_vm4, %v2105_v54, 0  ;;  %v5097_v54 = vld [vmem:[%s6587_s29 + $0x70] ss:$8 sps:$4 sm:$0xff]  }
 0x460   : > { %v5194_v53 = vpop.eup %5193 }
 0x461   : > { %2216 = vrot.lane.b32.xlu0 %v6515_v3, %s5818_s21  ;;  %v1988_v55 = vmul.f32 %v5194_v53, %v5186_v35  ;;  %v5109_v53 = vld [vmem:[%s6342_s10 + $0x38] sm:$0xff]  }
 0x463   : > { %v1989_v56 = vpack.c.bf16 %v1988_v55, %v1988_v55  ;;  %v5099_v55 = vld [vmem:[%s6587_s29 + $0x74] ss:$8 sps:$4 sm:$0xff]  }
 0x464   : > { %2755 = vmatprep.subr.bf16.mxu0 %v5099_v55 }
 0x465   : > { %4778 = vmatmul.mubr.msk.bf16.vlgmr.msra.gmra.mxu1 %vm1977_vm3, %v1989_v56  ;;  %v5102_v56 = vld [vmem:[%s6587_s29 + $0x64] ss:$8 sps:$4 sm:$0xff]  }
 0x466   : > { %4788 = vmatpush3.bf16.msra.mxu1 %v2110_v57  ;;  %4789 = vmatprep.mubr.msk.bf16.mxu1 %vm5817_vm0, %v5816_v19  ;;  %v5100_v57 = vld [vmem:[%s6587_s29 + $0x60] ss:$8 sps:$4 sm:$0xff]  }
 0x467   : > { %4799 = vmatprep.subr.bf16.mxu1 %v5816_v19 }
 0x4c4   : > { %v2099_v58 = vpop.xlane.xlu0 %2098 }
 0x4c5   : > { %5195 = vrcp.f32 %v2099_v58  ;;  %v5105_v58 = vld [vmem:[%s6587_s29 + $0x54] ss:$8 sps:$4 sm:$0xff]  }
 0x4cc   : > { %v2212_v59 = vpop.xlane.xlu1 %2211 }
 0x4cd   : > { %5197 = vrcp.f32 %v2212_v59  ;;  %v5103_v59 = vld [vmem:[%s6587_s29 + $0x50] ss:$8 sps:$4 sm:$0xff]  }
 0x4d0   : > { %v2329_v5 = vpop.permute.xlu1 %2328 }
 0x4d1   : > { %v2334_v7 = vsel %vm1993_vm4, %v2329_v5, 0  ;;  %v5116_v5 = vld [vmem:[%s6587_s29 + $0x24] ss:$8 sps:$4 sm:$0xff]  }
 0x4d2   : > { %v5196_v60 = vpop.eup %5195 }
 0x4d3   : > { %v2101_v61 = vmul.f32 %v5196_v60, %v5188_v45  ;;  %v5108_v60 = vld [vmem:[%s6587_s29 + $0x44] ss:$8 sps:$4 sm:$0xff]  }
 0x4d4   : > { %v2324_v62 = vpop.xlane.xlu0 %2323 }
 0x4d5   : > { %5199 = vrcp.f32 %v2324_v62  ;;  %v2102_v63 = vpack.c.bf16 %v2101_v61, %v2101_v61  ;;  %v5106_v61 = vld [vmem:[%s6587_s29 + $0x40] ss:$8 sps:$4 sm:$0xff]   ;;  %v5112_v62 = vld [vmem:[%s6587_s29 + $0x34] ss:$8 sps:$4 sm:$0xff]  }
 0x4d7   : > { %4790 = vmatmul.mubr.msk.bf16.vlgmr.msra.gmra.mxu1 %vm1977_vm3, %v2102_v63  ;;  %v5110_v63 = vld [vmem:[%s6587_s29 + $0x30] ss:$8 sps:$4 sm:$0xff]  }
 0x4d8   : > { %v2217_v1 = vpop.permute.xlu0 %2216  ;;  %4801 = vmatprep.mubr.msk.bf16.mxu1 %vm5817_vm0, %v5816_v19 }
 0x4d9   : > { %v2222_v2 = vsel %vm1993_vm4, %v2217_v1, 0 }
 0x4da   : > { %v5198_v3 = vpop.eup %5197  ;;  %4800 = vmatpush3.bf16.msra.mxu1 %v2222_v2 }
 0x4db   : > { %4811 = vmatprep.subr.bf16.mxu1 %v5816_v19  ;;  %v2214_v4 = vmul.f32 %v5198_v3, %v5190_v48 }
 0x4dd   : > { %v2215_v6 = vpack.c.bf16 %v2214_v4, %v2214_v4 }
 0x4df   : > { %4802 = vmatmul.mubr.msk.bf16.vlgmr.msra.gmra.mxu1 %vm1977_vm3, %v2215_v6  ;;  %v5114_v6 = vld [vmem:[%s6587_s29 + $0x20] ss:$8 sps:$4 sm:$0xff]  }
 0x4e0   : > { %4812 = vmatpush3.bf16.msra.mxu1 %v2334_v7  ;;  %4813 = vmatprep.mubr.msk.bf16.mxu1 %vm5817_vm0, %v5816_v19  ;;  %v5117_v7 = vld [vmem:[%s6342_s10 + $0x28] sm:$0xff]  }
 0x4e1   : > { %4837 = vmatprep.subr.bf16.mxu1 %v5816_v19 }
 0x4e2   : > { %v5200_v8 = vpop.eup %5199 }
 0x4e3   : > { %v2326_v9 = vmul.f32 %v5200_v8, %v5192_v50  ;;  %v5120_v8 = vld [vmem:[%s6587_s29 + $0x14] ss:$8 sps:$4 sm:$0xff]  }
 0x4e5   : > { %v2327_v10 = vpack.c.bf16 %v2326_v9, %v2326_v9  ;;  %v5118_v9 = vld [vmem:[%s6587_s29 + $0x10] ss:$8 sps:$4 sm:$0xff]  }
 0x4e7   : > { %4814 = vmatmul.mubr.msk.bf16.vlgmr.msra.gmra.mxu1 %vm1977_vm3, %v2327_v10  ;;  %v5121_v10 = vld [vmem:[%s6342_s10 + $0x20] sm:$0xff]  }
 0x4e8   : > { %4853 = vmatprep.mubr.msk.bf16.mxu1 %vm5817_vm0, %v5816_v19  ;;  %4838 = vmatpush3.bf16.msra.mxu1 %v5109_v53 }
 0x4e9   : > { %4839 = vmatprep.subr.bf16.mxu1 %v5816_v19 }
 0x525   : > { %v2031_v11 = vpop.f32.mrf.mxu1 }
 0x527   : > { %v4779_v12 = vpop.f32.mrf.mxu1 }
 0x528   : > { %v5122_v12 = vld [vmem:[%s6587_s29] ss:$8 sps:$4 sm:$0xff]  }
 0x529   : > { %v2034_v13 = vpop.f32.mrf.mxu1 }
 0x52a   : > { %v1644_v13 = vld [vmem:[%s1596_s4] sm:$0xff]  ;;  %s4502_s4 = sshll.u32 %s7033_s6, 2 }
 0x52b   : > { %v4780_v14 = vpop.f32.mrf.mxu1  ;;  %v2663_v15 = vpack.c.bf16 %v1644_v13, %v1644_v13 }
 0x52c   : > { %v5125_v14 = vld [vmem:[%s6342_s10 + $0x18] sm:$0xff]  }
 0x597   : > { %v2146_v26 = vpop.f32.mrf.mxu1 }
 0x598   : > { %2377 = vrot.lane.b32.xlu1 %v2146_v26, %s5820_s3 }
 0x599   : > { %v4791_v27 = vpop.f32.mrf.mxu1 }
 0x59a   : > { %v4546_v27 = vld [vmem:[%s1263_s17] ss:$0 sm:$0xff]  ;;  %s7003_s17 = sshll.u32 %s7033_s6, 3 }
 0x59b   : > { %v2149_v29 = vpop.f32.mrf.mxu1 }
 0x59c   : > { %v4547_v29 = vld [vmem:[%s1271_s0] ss:$0 sm:$0xff]  ;;  %s7005_s0 = sld [smem:[#allocation73_spill]] }
 0x59d   : > { %v4792_v30 = vpop.f32.mrf.mxu1 }
 0x59f   : > { %v2258_v31 = vpop.f32.mrf.mxu1 }
 0x5a0   : > { %2381 = vrot.lane.b32.xlu0 %v2258_v31, %s5818_s21 }
 0x5a1   : > { %v4803_v32 = vpop.f32.mrf.mxu1 }
 0x5a3   : > { %v2261_v33 = vpop.f32.mrf.mxu1 }
 0x5a4   : > { %v2550_v33 = vld [vmem:[%s6351_s20] sm:$0x3] }
 0x5a5   : > { %v4804_v34 = vpop.f32.mrf.mxu1 }
 0x5a6   : > { %v2668_v34 = vrot.slane %v2550_v33, %v6452_v23 }
 0x5a7   : > { %v2370_v35 = vpop.f32.mrf.mxu1 }
 0x5a8   : > { %2385 = vrot.lane.b32.xlu1 %v2370_v35, %s5819_s30  ;;  %v2672_v35 = vrot.slane %v2550_v33, %v6449_v22 }
 0x5a9   : > { %v4815_v36 = vpop.f32.mrf.mxu1 }
 0x5ab   : > { %v2373_v37 = vpop.f32.mrf.mxu1 }
 0x5ad   : > { %v4816_v38 = vpop.f32.mrf.mxu1 }
 0x60a   : > { %v2378_v39 = vpop.permute.xlu1 %2377 }
 0x60b   : > { %v2388_v41 = vsel %vm1928_vm1, %v2031_v11, %v2378_v39  ;;  %v5124_v11 = vld [vmem:[%s6587_s29 + $0x4] ss:$8 sps:$4 sm:$0xff]   ;;  %s4503_s29 = sshll.u32 %s7031_s24, 3 }
 0x60c   : > { %s1639_s8 = sadd.s32 %s4503_s29, %s4502_s4  ;;  %s7014_s29 = sld [smem:[#allocation72_spill]] }
 0x60d   : > { %s4504_s26 = sshll.u32 %s1639_s8, 3 }
 0x612   : > { %v2382_v40 = vpop.permute.xlu0 %2381  ;;  %s1632_s8 = scalar_lea.vmem %s7014_s29, %s6422_s5 }
 0x613   : > { %v2390_v42 = vsel %vm2389_vm5, %v2388_v41, %v2382_v40 }
 0x61a   : > { %v2386_v43 = vpop.permute.xlu1 %2385 }
 0x61b   : > { %v2392_v44 = vsel %vm2391_vm6, %v2390_v42, %v2386_v43 }
 0x61c   : > { %v2393_v45 = vpack.c.bf16 %v2392_v44, %v2392_v44 }
 0x61e   : > { %4834 = vmatmul.mubr.bf16.vlgmr.msra.gmra.mxu0 %v2393_v45 }
 0x61f   : > { %2787 = vmatprep.mubr.bf16.mxu0 %v5815_v0  ;;  %2756 = vmatpush1.bf16.msra.mxu0 %v5097_v54 }
 0x620   : > { %2757 = vmatprep.subr.bf16.mxu0 %v5102_v56 }
 0x623   : > { %2758 = vmatpush1.bf16.msra.mxu0 %v5100_v57 }
 0x624   : > { %2759 = vmatprep.subr.bf16.mxu0 %v5105_v58 }
 0x627   : > { %2760 = vmatpush1.bf16.msra.mxu0 %v5103_v59 }
 0x628   : > { %2761 = vmatprep.subr.bf16.mxu0 %v5108_v60 }
 0x62b   : > { %2762 = vmatpush1.bf16.msra.mxu0 %v5106_v61 }
 0x62c   : > { %2763 = vmatprep.subr.bf16.mxu0 %v5112_v62 }
 0x62f   : > { %2764 = vmatpush1.bf16.msra.mxu0 %v5110_v63 }
 0x630   : > { %2765 = vmatprep.subr.bf16.mxu0 %v5116_v5 }
 0x633   : > { %2766 = vmatpush1.bf16.msra.mxu0 %v5114_v6 }
 0x634   : > { %2767 = vmatprep.subr.bf16.mxu0 %v5120_v8 }
 0x637   : > { %2768 = vmatpush1.bf16.msra.mxu0 %v5118_v9 }
 0x638   : > { %2769 = vmatprep.subr.bf16.mxu0 %v5124_v11 }
 0x63b   : > { %2770 = vmatpush1.bf16.msra.mxu0 %v5122_v12 }
 0x63c   : > { %4881 = vmatprep.subr.bf16.mxu0 %v5816_v19 }
 0x63e   : > { %2788 = vmatmul.mubr.bf16.vlgmr.msra.gmra.mxu0 %v2663_v15 }
 0x63f   : > { %4883 = vmatprep.mubr.msk.bf16.mxu0 %vm5817_vm0, %v5816_v19 }
 0x6de   : > { %v2482_v47 = vpop.f32.mrf.mxu0 }
 0x6df   : > { %v2483_v48 = vadd.f32 %v4537_v46, %v2482_v47  ;;  %v4548_v47 = vld [vmem:[%s1288_s2] ss:$0 sm:$0xff]  ;;  %s7004_s2 = sld [smem:[#allocation53_spill]] }
 0x6e0   : > { %v4835_v49 = vpop.f32.mrf.mxu0 }
 0x6e1   : > { %v2488_v50 = vadd.f32 %v2483_v48, %v6436_v17  ;;  %v5113_v17 = vld [vmem:[%s6342_s10 + $0x30] sm:$0xff]   ;;  %s6698_s10 = scalar_lea.vmem %s7005_s0, %s4504_s26 }
 0x6e2   : > { %v2485_v51 = vpop.f32.mrf.mxu0  ;;  %4840 = vmatpush3.bf16.msra.mxu1 %v5113_v17 }
 0x6e3   : > { %2491 = vadd.xlane.f32.xlu0 %v2488_v50  ;;  %4841 = vmatprep.subr.bf16.mxu1 %v5816_v19 }
 0x6e4   : > { %v4836_v52 = vpop.f32.mrf.mxu0 }
 0x6e5   : > { %s1604_s20 = scalar_lea.vmem %s7004_s2, %s7003_s17  ;;  %s7012_s2 = scalar_lea.vmem [#allocation25], %s6307_s18 }
 0x6e6   : > { %4842 = vmatpush3.bf16.msra.mxu1 %v5117_v7  ;;  %v6674_v56 = vld [vmem:[%s1604_s20] sm:$0xff]  ;;  %s7013_s20 = scalar_lea.vmem [#allocation28], %s6307_s18 }
 0x6e7   : > { %4843 = vmatprep.subr.bf16.mxu1 %v5816_v19  ;;  %vm1648_vm7 = vcmp.gt.f32.partialorder %v6674_v56, 0.0 }
 0x6ea   : > { %4844 = vmatpush3.bf16.msra.mxu1 %v5121_v10 }
 0x6eb   : > { %4845 = vmatprep.subr.bf16.mxu1 %v5816_v19 }
 0x6ee   : > { %4846 = vmatpush3.bf16.msra.mxu1 %v5125_v14 }
 0x6ef   : > { %4847 = vmatprep.subr.bf16.mxu1 %v5816_v19 }
 0x6f2   : > { %4848 = vmatpush3.bf16.msra.mxu1 %v5126_v16 }
 0x6f3   : > { %4849 = vmatprep.subr.bf16.mxu1 %v5816_v19 }
 0x6f6   : > { %4850 = vmatpush3.bf16.msra.mxu1 %v5127_v18 }
 0x6f7   : > { %4851 = vmatprep.subr.bf16.mxu1 %v5816_v19 }
 0x6fa   : > { %4852 = vmatpush3.bf16.msra.mxu1 %v5128_v20 }
 0x6fb   : > { %4857 = vmatprep.subr.bf16.mxu1 %v5816_v19 }
 0x6fe   : > { %v2789_v36 = vpop.f32.mrf.mxu0 }
 0x6ff   : > { %v2790_v37 = vadd.f32 %v2789_v36, %v2668_v34 }
 0x700   : > { %v2791_v38 = vpop.f32.mrf.mxu0 }
 0x701   : > { %v2797_v39 = vpack.c.bf16 %v2790_v37, %v2790_v37  ;;  %v2792_v40 = vadd.f32 %v2791_v38, %v2672_v35 }
 0x702   : > { %v2793_v41 = vpop.f32.mrf.mxu0 }
 0x703   : > { %v2803_v42 = vsel %vm1928_vm1, %v2797_v39, 0  ;;  %v6656_v49 = vpack.c.bf16 %v2792_v40, %v2792_v40 }
 0x704   : > { %v2794_v43 = vpop.f32.mrf.mxu0 }
 0x705   : > { %v2863_v17 = vsel %vm1993_vm4, %v6656_v49, 0 }
 0x76c   : > { %v2492_v1 = vpop.xlane.xlu0 %2491 }
 0x76d   : > { %v2494_v2 = vmul.f32 0.0078125, %v2492_v1 }
 0x76f   : > { %v2495_v3 = vsub.f32 %v2488_v50, %v2494_v2 }
 0x771   : > { %v2496_v4 = vmul.f32 %v2495_v3, %v2495_v3 }
 0x773   : > { %2497 = vadd.xlane.f32.xlu1 %v2496_v4 }
 0x784   : > { %2909 = vrot.lane.b32.xlu1 %v2797_v39, %s5819_s30 }
 0x788   : > { %3022 = vrot.lane.b32.xlu1 %v2797_v39, %s5818_s21 }
 0x7fc   : > { %v2498_v21 = vpop.xlane.xlu1 %2497 }
 0x7fd   : > { %v2499_v24 = vmul.f32 0.0078125, %v2498_v21 }
 0x7ff   : > { %v2500_v25 = vadd.f32 1e-05, %v2499_v24 }
 0x800   : > { %v6650_v44 = vpop.permute.xlu1 %2909 }
 0x801   : > { %5201 = vrsqrt.f32 %v2500_v25 }
 0x804   : > { %v3023_v45 = vpop.permute.xlu1 %3022 }
 0x805   : > { %v3028_v46 = vsel %vm1928_vm1, %v3023_v45, 0 }
 0x806   : > { %4882 = vmatpush3.bf16.xpose.msra.mxu0 %v3028_v46 }
 0x807   : > { %4893 = vmatprep.subr.bf16.mxu0 %v5816_v19 }
 0x80e   : > { %v5202_v26 = vpop.eup %5201 }
 0x80f   : > { %v2502_v28 = vmul.f32 %v5202_v26, %v2495_v3 }
 0x811   : > { %v2509_v30 = vmul.f32 %v4546_v27, %v2502_v28 }
 0x813   : > { %v6637_v31 = vadd.f32 %v4547_v29, %v2509_v30  ;;  %v2915_v30 = vsel %vm1928_vm1, %v6650_v44, 0 }
 0x815   : > { %v2568_v32 = vpack.c.bf16 %v6637_v31, %v6637_v31 }
 0x817   : > { %4854 = vmatmul.mubr.bf16.vlgmr.msra.gmra.mxu1 %v2568_v32 }
 0x818   : > { %4859 = vmatprep.mubr.msk.bf16.mxu1 %vm5817_vm0, %v5816_v19  ;;  %4858 = vmatpush3.bf16.xpose.msra.mxu1 %v2803_v42 }
 0x819   : > { %4863 = vmatprep.subr.bf16.mxu1 %v5816_v19 }
 0x8d7   : > { %v2657_v48 = vpop.f32.mrf.mxu1 }
 0x8d8   : > { %v2658_v50 = vadd.f32 %v4548_v47, %v2657_v48 }
 0x8d9   : > { %v4855_v51 = vpop.f32.mrf.mxu1 }
 0x8da   : > { %v2796_v52 = vpack.c.bf16 %v2658_v50, %v2658_v50 }
 0x8db   : > { %v2660_v53 = vpop.f32.mrf.mxu1 }
 0x8dc   : > { %3020 = vrot.lane.b32.xlu1 %v2796_v52, %s5818_s21  ;;  %4860 = vmatmul.mubr.msk.bf16.vlgmr.msra.gmra.mxu1 %vm1928_vm1, %v2796_v52 }
 0x8dd   : > { %4864 = vmatpush3.bf16.msra.mxu1 %v2863_v17  ;;  %v4856_v54 = vpop.f32.mrf.mxu1  ;;  %4865 = vmatprep.mubr.msk.bf16.mxu1 %vm5817_vm0, %v5816_v19 }
 0x8de   : > { %4869 = vmatprep.subr.bf16.mxu1 %v5816_v19 }
 0x8e0   : > { %3132 = vrot.lane.b32.xlu1 %v2796_v52, %s5820_s3 }
 0x94e   : > { %v3021_v55 = vpop.permute.xlu1 %3020 }
 0x94f   : > { %4884 = vmatmul.mubr.msk.bf16.vlgmr.msra.gmra.mxu0 %vm1928_vm1, %v3021_v55 }
 0x950   : > { %4895 = vmatprep.mubr.msk.bf16.mxu0 %vm5817_vm0, %v5816_v19 }
 0x952   : > { %v3133_v13 = vpop.permute.xlu1 %3132 }
 0x99c   : > { %v2839_v57 = vpop.f32.mrf.mxu1 }
 0x99d   : > { %v2845_v58 = vmul.f32 0.17677669, %v2839_v57 }
 0x99e   : > { %v4861_v59 = vpop.f32.mrf.mxu1 }
 0x99f   : > { %v2846_v60 = vsel %vm1648_vm7, %v2845_v58, -1e+10 }
 0x9a0   : > { %v2842_v61 = vpop.f32.mrf.mxu1  ;;  %v2847_v62 = vsel %vm1977_vm3, %v2846_v60, -inf }
 0x9a1   : > { %2848 = vmax.xlane.f32.xlu0 %v2847_v62 }
 0x9a2   : > { %v4862_v63 = vpop.f32.mrf.mxu1 }
 0xa0f   : > { %v3064_v1 = vpop.f32.mrf.mxu0 }
 0xa10   : > { %v3070_v2 = vmul.f32 0.17677669, %v3064_v1 }
 0xa11   : > { %v4885_v3 = vpop.f32.mrf.mxu0 }
 0xa12   : > { %v3071_v4 = vsel %vm1648_vm7, %v3070_v2, -1e+10 }
 0xa13   : > { %v3067_v5 = vpop.f32.mrf.mxu0  ;;  %v3072_v6 = vsel %vm1977_vm3, %v3071_v4, -inf }
 0xa14   : > { %3073 = vmax.xlane.f32.xlu1 %v3072_v6 }
 0xa15   : > { %v4886_v7 = vpop.f32.mrf.mxu0 }
 0xa2a   : > { %v2849_v8 = vpop.xlane.xlu0 %2848 }
 0xa2b   : > { %v2850_v9 = vsub.f32 %v2846_v60, %v2849_v8 }
 0xa2d   : > { %v2851_v10 = vmul.f32 1.442695, %v2850_v9 }
 0xa2f   : > { %5203 = vpow2.f32 %v2851_v10 }
 0xa3c   : > { %v5204_v11 = vpop.eup %5203 }
 0xa3d   : > { %v2853_v12 = vsel %vm1977_vm3, %v5204_v11, 0.0 }
 0xa3e   : > { %2854 = vadd.xlane.f32.xlu0 %v2853_v12 }
 0xa54   : > { %2906 = vrot.lane.b32.xlu0 %v2796_v52, %s5819_s30 }
 0xa58   : > { %3134 = vrot.lane.b32.xlu0 %v2797_v39, %s5820_s3 }
 0xa9d   : > { %v3074_v14 = vpop.xlane.xlu1 %3073 }
 0xa9e   : > { %v3075_v15 = vsub.f32 %v3071_v4, %v3074_v14  ;;  %v5129_v14 = vld [vmem:[%s6358_s7 + $0x38] sm:$0xff]  }
 0xaa0   : > { %v3076_v16 = vmul.f32 1.442695, %v3075_v15  ;;  %v5130_v15 = vld [vmem:[%s6358_s7 + $0x30] sm:$0xff]  }
 0xaa2   : > { %5205 = vpow2.f32 %v3076_v16  ;;  %v5131_v16 = vld [vmem:[%s6358_s7 + $0x28] sm:$0xff]  }
 0xaaf   : > { %v5206_v18 = vpop.eup %5205 }
 0xab0   : > { %v3078_v20 = vsel %vm1977_vm3, %v5206_v18, 0.0 }
 0xab1   : > { %3079 = vadd.xlane.f32.xlu1 %v3078_v20  ;;  %v5133_v20 = vld [vmem:[%s6358_s7 + $0x18] sm:$0xff]  }
 0xac2   : > { %2972 = vrot.lane.b32.xlu1 %v6656_v49, %s5819_s30 }
 0xac6   : > { %3196 = vrot.lane.b32.xlu1 %v6656_v49, %s5820_s3 }
 0xac7   : > { %v2855_v21 = vpop.xlane.xlu0 %2854 }
 0xac8   : > { %5207 = vrcp.f32 %v2855_v21  ;;  %v5135_v21 = vld [vmem:[%s6358_s7 + $0x8] sm:$0xff]  }
 0xacb   : > { %v2907_v24 = vpop.permute.xlu0 %2906 }
 0xacf   : > { %v3135_v25 = vpop.permute.xlu0 %3134 }
 0xad0   : > { %v3140_v26 = vsel %vm1928_vm1, %v3135_v25, 0 }
 0xad1   : > { %4894 = vmatpush3.bf16.xpose.msra.mxu0 %v3140_v26  ;;  %v5136_v26 = vld [vmem:[%s6358_s7] sm:$0xff]  }
 0xad2   : > { %4905 = vmatprep.subr.bf16.mxu0 %v5816_v19 }
 0xad5   : > { %v5208_v27 = vpop.eup %5207 }
 0xad6   : > { %v2857_v28 = vmul.f32 %v5208_v27, %v5204_v11 }
 0xad8   : > { %4896 = vmatmul.mubr.msk.bf16.vlgmr.msra.gmra.mxu0 %vm1928_vm1, %v3133_v13  ;;  %v2858_v29 = vpack.c.bf16 %v2857_v28, %v2857_v28  ;;  %3852 = vst.msk [vmem:[%s6698_s10] sm:$0xff] %vm1977_vm3, %v2857_v28 }
 0xad9   : > { %4921 = vmatprep.mubr.msk.bf16.mxu0 %vm5817_vm0, %v5816_v19  ;;  %4906 = vmatpush3.bf16.msra.mxu0 %v5129_v14  ;;  %v5168_v14 = vld [vmem:[%s6602_s9 + $0x20] sm:$0xff]  }
 0xada   : > { %4866 = vmatmul.mubr.msk.bf16.vlgmr.msra.gmra.mxu1 %vm1977_vm3, %v2858_v29  ;;  %4907 = vmatprep.subr.bf16.mxu0 %v5816_v19 }
 0xadb   : > { %4870 = vmatpush3.bf16.xpose.msra.mxu1 %v2915_v30  ;;  %4871 = vmatprep.mubr.msk.bf16.mxu1 %vm5817_vm0, %v5816_v19 }
 0xadc   : > { %4875 = vmatprep.subr.bf16.mxu1 %v5816_v19 }
 0xadd   : > { %4908 = vmatpush3.bf16.msra.mxu0 %v5130_v15  ;;  %v5169_v15 = vld [vmem:[%s6602_s9 + $0x58] sm:$0xff]  }
 0xade   : > { %4909 = vmatprep.subr.bf16.mxu0 %v5816_v19 }
 0xae1   : > { %4910 = vmatpush3.bf16.msra.mxu0 %v5131_v16  ;;  %v5170_v16 = vld [vmem:[%s6602_s9 + $0x18] sm:$0xff]  }
 0xae2   : > { %4872 = vmatmul.mubr.msk.bf16.vlgmr.msra.gmra.mxu1 %vm1928_vm1, %v2907_v24  ;;  %4911 = vmatprep.subr.bf16.mxu0 %v5816_v19 }
 0xae3   : > { %4877 = vmatprep.mubr.msk.bf16.mxu1 %vm5817_vm0, %v5816_v19 }
 0xb3a   : > { %v3080_v32 = vpop.xlane.xlu1 %3079 }
 0xb3b   : > { %5209 = vrcp.f32 %v3080_v32 }
 0xb3e   : > { %v2973_v33 = vpop.permute.xlu1 %2972 }
 0xb3f   : > { %v2978_v34 = vsel %vm1993_vm4, %v2973_v33, 0 }
 0xb40   : > { %4876 = vmatpush3.bf16.msra.mxu1 %v2978_v34 }
 0xb41   : > { %4887 = vmatprep.subr.bf16.mxu1 %v5816_v19 }
 0xb48   : > { %v5210_v35 = vpop.eup %5209 }
 0xb49   : > { %v3082_v36 = vmul.f32 %v5210_v35, %v5206_v18  ;;  %v5132_v18 = vld [vmem:[%s6358_s7 + $0x20] sm:$0xff]  }
 0xb4a   : > { %4912 = vmatpush3.bf16.msra.mxu0 %v5132_v18  ;;  %v5171_v18 = vld [vmem:[%s6602_s9 + $0x50] sm:$0xff]  }
 0xb4b   : > { %4637 = vst.msk [vmem:[%s6698_s10 + $0x10] sm:$0xff] %vm1977_vm3, %v3082_v36  ;;  %v3083_v11 = vpack.c.bf16 %v3082_v36, %v3082_v36  ;;  %4913 = vmatprep.subr.bf16.mxu0 %v5816_v19 }
 0xb4e   : > { %4914 = vmatpush3.bf16.msra.mxu0 %v5133_v20  ;;  %v5172_v20 = vld [vmem:[%s6602_s9 + $0x10] sm:$0xff]  }
 0xb4f   : > { %4915 = vmatprep.subr.bf16.mxu0 %v5816_v19 }
 0xb98   : > { %v3176_v37 = vpop.f32.mrf.mxu0 }
 0xb99   : > { %v3182_v46 = vmul.f32 0.17677669, %v3176_v37 }
 0xb9a   : > { %v6718_v38 = vpop.f32.mrf.mxu1  ;;  %v4897_v39 = vpop.f32.mrf.mxu0 }
 0xb9b   : > { %v3183_v53 = vsel %vm1648_vm7, %v3182_v46, -1e+10 }
 0xb9c   : > { %v4867_v40 = vpop.f32.mrf.mxu1  ;;  %v3179_v41 = vpop.f32.mrf.mxu0  ;;  %v3184_v54 = vsel %vm1977_vm3, %v3183_v53, -inf }
 0xb9e   : > { %v2902_v42 = vpop.f32.mrf.mxu1  ;;  %v4898_v43 = vpop.f32.mrf.mxu0 }
 0xba0   : > { %v4868_v44 = vpop.f32.mrf.mxu1 }
 0xba2   : > { %v2951_v45 = vpop.f32.mrf.mxu1 }
 0xba3   : > { %v2957_v47 = vmul.f32 0.17677669, %v2951_v45 }
 0xba4   : > { %v4873_v48 = vpop.f32.mrf.mxu1 }
 0xba5   : > { %v2958_v50 = vsel %vm1648_vm7, %v2957_v47, -1e+10 }
 0xba6   : > { %v2954_v51 = vpop.f32.mrf.mxu1  ;;  %v2959_v52 = vsel %vm1977_vm3, %v2958_v50, -inf }
 0xba7   : > { %2960 = vmax.xlane.f32.xlu0 %v2959_v52 }
 0xba8   : > { %v4874_v17 = vpop.f32.mrf.mxu1 }
 0xbab   : > { %3185 = vmax.xlane.f32.xlu0 %v3184_v54 }
 0xc30   : > { %v2961_v55 = vpop.xlane.xlu0 %2960 }
 0xc31   : > { %v2962_v57 = vsub.f32 %v2958_v50, %v2961_v55 }
 0xc33   : > { %v2963_v58 = vmul.f32 1.442695, %v2962_v57 }
 0xc34   : > { %v3186_v59 = vpop.xlane.xlu0 %3185 }
 0xc35   : > { %5211 = vpow2.f32 %v2963_v58  ;;  %v3187_v60 = vsub.f32 %v3183_v53, %v3186_v59 }
 0xc37   : > { %v3188_v61 = vmul.f32 1.442695, %v3187_v60 }
 0xc39   : > { %5213 = vpow2.f32 %v3188_v61 }
 0xc42   : > { %v5212_v62 = vpop.eup %5211 }
 0xc43   : > { %v2965_v63 = vsel %vm1977_vm3, %v5212_v62, 0.0 }
 0xc44   : > { %2966 = vadd.xlane.f32.xlu0 %v2965_v63 }
 0xc46   : > { %v5214_v1 = vpop.eup %5213 }
 0xc47   : > { %v3190_v56 = vsel %vm1977_vm3, %v5214_v1, 0.0 }
 0xc48   : > { %3191 = vadd.xlane.f32.xlu0 %v3190_v56 }
 0xc5e   : > { %3084 = vrot.lane.b32.xlu0 %v6656_v49, %s5818_s21  ;;  %v3197_v49 = vpop.permute.xlu1 %3196 }
 0xc5f   : > { %v3202_v12 = vsel %vm1993_vm4, %v3197_v49, 0  ;;  %v5164_v49 = vld [vmem:[%s6602_s9 + $0x30] sm:$0xff]  }
 0xccd   : > { %v2967_v2 = vpop.xlane.xlu0 %2966 }
 0xcce   : > { %5215 = vrcp.f32 %v2967_v2 }
 0xcd1   : > { %v3192_v3 = vpop.xlane.xlu0 %3191 }
 0xcd2   : > { %5217 = vrcp.f32 %v3192_v3 }
 0xcd5   : > { %v3085_v6 = vpop.permute.xlu0 %3084 }
 0xcd6   : > { %v3090_v9 = vsel %vm1993_vm4, %v3085_v6, 0 }
 0xcdb   : > { %v5216_v4 = vpop.eup %5215 }
 0xcdc   : > { %v2969_v5 = vmul.f32 %v5216_v4, %v5212_v62 }
 0xcde   : > { %v2970_v7 = vpack.c.bf16 %v2969_v5, %v2969_v5  ;;  %4636 = vst.msk [vmem:[%s6698_s10 + $0x8] sm:$0xff] %vm1977_vm3, %v2969_v5 }
 0xcdf   : > { %v5218_v8 = vpop.eup %5217 }
 0xce0   : > { %4878 = vmatmul.mubr.msk.bf16.vlgmr.msra.gmra.mxu1 %vm1977_vm3, %v2970_v7  ;;  %v3194_v10 = vmul.f32 %v5218_v8, %v5214_v1  ;;  %v5161_v8 = vld [vmem:[%s6602_s9 + $0x78] sm:$0xff]  }
 0xce1   : > { %4888 = vmatpush3.bf16.msra.mxu1 %v3090_v9  ;;  %4889 = vmatprep.mubr.msk.bf16.mxu1 %vm5817_vm0, %v5816_v19  ;;  %v5162_v9 = vld [vmem:[%s6602_s9 + $0x38] sm:$0xff]  }
 0xce2   : > { %4899 = vmatprep.subr.bf16.mxu1 %v5816_v19  ;;  %4638 = vst.msk [vmem:[%s6698_s10 + $0x18] sm:$0xff] %vm1977_vm3, %v3194_v10  ;;  %v3195_v13 = vpack.c.bf16 %v3194_v10, %v3194_v10  ;;  %v5163_v10 = vld [vmem:[%s6602_s9 + $0x70] sm:$0xff]  }
 0xce8   : > { %4890 = vmatmul.mubr.msk.bf16.vlgmr.msra.gmra.mxu1 %vm1977_vm3, %v3083_v11  ;;  %v5165_v11 = vld [vmem:[%s6602_s9 + $0x68] sm:$0xff]  }
 0xce9   : > { %4900 = vmatpush3.bf16.msra.mxu1 %v3202_v12  ;;  %4901 = vmatprep.mubr.msk.bf16.mxu1 %vm5817_vm0, %v5816_v19  ;;  %v5166_v12 = vld [vmem:[%s6602_s9 + $0x28] sm:$0xff]  }
 0xcf0   : > { %4902 = vmatmul.mubr.msk.bf16.vlgmr.msra.gmra.mxu1 %vm1977_vm3, %v3195_v13  ;;  %v5167_v13 = vld [vmem:[%s6602_s9 + $0x60] sm:$0xff]  }
 0xcf1   : > { %3556 = vmatprep.mubr.bf16.mxu1 %v5815_v0  ;;  %v5134_v0 = vld [vmem:[%s6358_s7 + $0x10] sm:$0xff]   ;;  %s7006_s7 = scalar_lea.vmem [#allocation16], %s6307_s18 }
 0xcf2   : > { %4916 = vmatpush3.bf16.msra.mxu0 %v5134_v0  ;;  %v4581_v46 = vld [vmem:[%s7006_s7] ss:$0 sm:$0xff] }
 0xcf3   : > { %4917 = vmatprep.subr.bf16.mxu0 %v5816_v19 }
 0xcf6   : > { %4918 = vmatpush3.bf16.msra.mxu0 %v5135_v21 }
 0xcf7   : > { %4919 = vmatprep.subr.bf16.mxu0 %v5816_v19 }
 0xcfa   : > { %4920 = vmatpush3.bf16.msra.mxu0 %v5136_v26 }
 0xcfb   : > { %4718 = vmatprep.subr.bf16.mxu0 %v5161_v8 }
 0xda0   : > { %v3014_v24 = vpop.f32.mrf.mxu1 }
 0xda1   : > { %3245 = vrot.lane.b32.xlu1 %v3014_v24, %s5820_s3  ;;  %s7008_s3 = scalar_lea.vmem [#allocation18], %s6307_s18 }
 0xda2   : > { %v4879_v25 = vpop.f32.mrf.mxu1  ;;  %v4590_v26 = vld [vmem:[%s7008_s3] ss:$0 sm:$0xff] }
 0xda4   : > { %v3017_v27 = vpop.f32.mrf.mxu1 }
 0xda6   : > { %v4880_v28 = vpop.f32.mrf.mxu1 }
 0xda8   : > { %v3126_v29 = vpop.f32.mrf.mxu1 }
 0xda9   : > { %3249 = vrot.lane.b32.xlu0 %v3126_v29, %s5818_s21  ;;  %s7007_s21 = sld [smem:[#allocation66_spill]] }
 0xdaa   : > { %v4891_v30 = vpop.f32.mrf.mxu1 }
 0xdac   : > { %v3129_v32 = vpop.f32.mrf.mxu1 }
 0xdae   : > { %v4892_v33 = vpop.f32.mrf.mxu1 }
 0xdaf   : > { %v5173_v33 = vld [vmem:[%s6602_s9 + $0x48] sm:$0xff]  }
 0xdb0   : > { %v3238_v34 = vpop.f32.mrf.mxu1 }
 0xdb1   : > { %3253 = vrot.lane.b32.xlu1 %v3238_v34, %s5819_s30  ;;  %s6774_s30 = scalar_lea.vmem %s7007_s21, %s6580_s22  ;;  %s7009_s22 = scalar_lea.vmem [#allocation19], %s6307_s18  ;;  %v5174_v34 = vld [vmem:[%s6602_s9 + $0x8] sm:$0xff]  }
 0xdb2   : > { %v4903_v35 = vpop.f32.mrf.mxu1  ;;  %v5139_v17 = vld [vmem:[%s6774_s30 + $0x74] ss:$8 sps:$4 sm:$0xff]   ;;  %v5140_v54 = vld [vmem:[%s6774_s30 + $0x60] ss:$8 sps:$4 sm:$0xff]   ;;  %v5143_v61 = vld [vmem:[%s6774_s30 + $0x50] ss:$8 sps:$4 sm:$0xff]  }
 0xdb3   : > { %3524 = vmatprep.subr.bf16.mxu1 %v5139_v17  ;;  %v5145_v60 = vld [vmem:[%s6774_s30 + $0x54] ss:$8 sps:$4 sm:$0xff]   ;;  %v5146_v62 = vld [vmem:[%s6774_s30 + $0x40] ss:$8 sps:$4 sm:$0xff]   ;;  %v5148_v63 = vld [vmem:[%s6774_s30 + $0x44] ss:$8 sps:$4 sm:$0xff]  }
 0xdb4   : > { %v3241_v36 = vpop.f32.mrf.mxu1  ;;  %v5151_v1 = vld [vmem:[%s6774_s30 + $0x34] ss:$8 sps:$4 sm:$0xff]   ;;  %v5149_v56 = vld [vmem:[%s6774_s30 + $0x30] ss:$8 sps:$4 sm:$0xff]   ;;  %v5154_v2 = vld [vmem:[%s6774_s30 + $0x24] ss:$8 sps:$4 sm:$0xff]  }
 0xdb5   : > { %v5152_v3 = vld [vmem:[%s6774_s30 + $0x20] ss:$8 sps:$4 sm:$0xff]   ;;  %v5157_v4 = vld [vmem:[%s6774_s30 + $0x14] ss:$8 sps:$4 sm:$0xff]   ;;  %v5155_v5 = vld [vmem:[%s6774_s30 + $0x10] ss:$8 sps:$4 sm:$0xff]  }
 0xdb6   : > { %v4904_v37 = vpop.f32.mrf.mxu1  ;;  %v5160_v6 = vld [vmem:[%s6774_s30 + $0x4] ss:$8 sps:$4 sm:$0xff]   ;;  %v5158_v7 = vld [vmem:[%s6774_s30] ss:$8 sps:$4 sm:$0xff]  }
 0xdb7   : > { %v4591_v28 = vld [vmem:[%s7009_s22] ss:$0 sm:$0xff]  ;;  %v3398_v37 = vld [vmem:[%s6373_s15] sm:$0x3]  ;;  %s7010_s15 = scalar_lea.vmem [#allocation22], %s6307_s18 }
 0xdb8   : > { %v5175_v35 = vld [vmem:[%s6602_s9 + $0x40] sm:$0xff]  }
 0xdb9   : > { %v5176_v36 = vld [vmem:[%s6602_s9] sm:$0xff]   ;;  %s7011_s9 = scalar_lea.vmem [#allocation24], %s6307_s18 }
 0xdba   : > { %v4625_v8 = vld [vmem:[%s7011_s9] ss:$0 sm:$0xff] }
 0xe13   : > { %v3246_v39 = vpop.permute.xlu1 %3245 }
 0xe14   : > { %v3256_v41 = vsel %vm1928_vm1, %v6718_v38, %v3246_v39  ;;  %v5137_v38 = vld [vmem:[%s6774_s30 + $0x70] ss:$8 sps:$4 sm:$0xff]   ;;  %v3437_v39 = vrot.slane %v3398_v37, %v6452_v23 }
 0xe15   : > { %3525 = vmatpush1.bf16.msra.mxu1 %v5137_v38 }
 0xe1b   : > { %v3250_v40 = vpop.permute.xlu0 %3249 }
 0xe1c   : > { %v3257_v42 = vsel %vm2389_vm5, %v3256_v41, %v3250_v40  ;;  %v3441_v40 = vrot.slane %v3398_v37, %v6449_v22 }
 0xe23   : > { %v3254_v43 = vpop.permute.xlu1 %3253 }
 0xe24   : > { %v3258_v44 = vsel %vm2391_vm6, %v3257_v42, %v3254_v43 }
 0xe25   : > { %v3259_v45 = vpack.c.bf16 %v3258_v44, %v3258_v44 }
 0xe27   : > { %4922 = vmatmul.mubr.bf16.vlgmr.msra.gmra.mxu0 %v3259_v45 }
 0xe28   : > { %4719 = vmatpush3.bf16.msra.mxu0 %v5162_v9 }
 0xe29   : > { %4720 = vmatprep.subr.bf16.mxu0 %v5163_v10  ;;  %v4626_v10 = vld [vmem:[%s7012_s2] ss:$0 sm:$0xff] }
 0xe2c   : > { %4721 = vmatpush3.bf16.msra.mxu0 %v5164_v49 }
 0xe2d   : > { %4722 = vmatprep.subr.bf16.mxu0 %v5165_v11 }
 0xe30   : > { %4723 = vmatpush3.bf16.msra.mxu0 %v5166_v12 }
 0xe31   : > { %4724 = vmatprep.subr.bf16.mxu0 %v5167_v13  ;;  %v4627_v13 = vld [vmem:[%s7013_s20] ss:$0 sm:$0xff] }
 0xe34   : > { %4725 = vmatpush3.bf16.msra.mxu0 %v5168_v14 }
 0xe35   : > { %4726 = vmatprep.subr.bf16.mxu0 %v5169_v15 }
 0xe38   : > { %4727 = vmatpush3.bf16.msra.mxu0 %v5170_v16 }
 0xe39   : > { %4728 = vmatprep.subr.bf16.mxu0 %v5171_v18 }
 0xe3c   : > { %4729 = vmatpush3.bf16.msra.mxu0 %v5172_v20 }
 0xe3d   : > { %4730 = vmatprep.subr.bf16.mxu0 %v5173_v33 }
 0xe40   : > { %4731 = vmatpush3.bf16.msra.mxu0 %v5174_v34 }
 0xe41   : > { %4732 = vmatprep.subr.bf16.mxu0 %v5175_v35 }
 0xe44   : > { %4733 = vmatpush3.bf16.msra.mxu0 %v5176_v36 }
 0xee7   : > { %v3348_v47 = vpop.f32.mrf.mxu0 }
 0xee8   : > { %v3349_v48 = vadd.f32 %v4581_v46, %v3348_v47 }
 0xee9   : > { %v4923_v50 = vpop.f32.mrf.mxu0 }
 0xeea   : > { %v3354_v51 = vadd.f32 %v3349_v48, %v6637_v31  ;;  %v5142_v31 = vld [vmem:[%s6774_s30 + $0x64] ss:$8 sps:$4 sm:$0xff]  }
 0xeeb   : > { %v3351_v52 = vpop.f32.mrf.mxu0  ;;  %3526 = vmatprep.subr.bf16.mxu1 %v5142_v31 }
 0xeec   : > { %3357 = vadd.xlane.f32.xlu0 %v3354_v51  ;;  %3527 = vmatpush1.bf16.msra.mxu1 %v5140_v54 }
 0xeed   : > { %v4924_v53 = vpop.f32.mrf.mxu0  ;;  %3528 = vmatprep.subr.bf16.mxu1 %v5145_v60 }
 0xeee   : > { %v4608_v53 = vld [vmem:[%s7010_s15] ss:$0 sm:$0xff] }
 0xef0   : > { %3529 = vmatpush1.bf16.msra.mxu1 %v5143_v61 }
 0xef1   : > { %3530 = vmatprep.subr.bf16.mxu1 %v5148_v63  ;;  %v5180_v63 = vld [vmem:[%s6389_s1 + $0x20] sm:$0xff]  }
 0xef4   : > { %3531 = vmatpush1.bf16.msra.mxu1 %v5146_v62  ;;  %v5179_v62 = vld [vmem:[%s6389_s1 + $0x28] sm:$0xff]  }
 0xef5   : > { %3532 = vmatprep.subr.bf16.mxu1 %v5151_v1  ;;  %v5181_v1 = vld [vmem:[%s6389_s1 + $0x18] sm:$0xff]  }
 0xef8   : > { %3533 = vmatpush1.bf16.msra.mxu1 %v5149_v56  ;;  %v5182_v56 = vld [vmem:[%s6389_s1 + $0x10] sm:$0xff]  }
 0xef9   : > { %3534 = vmatprep.subr.bf16.mxu1 %v5154_v2  ;;  %v5183_v2 = vld [vmem:[%s6389_s1 + $0x8] sm:$0xff]  }
 0xefc   : > { %3535 = vmatpush1.bf16.msra.mxu1 %v5152_v3  ;;  %v5184_v3 = vld [vmem:[%s6389_s1] sm:$0xff]  }
 0xefd   : > { %3536 = vmatprep.subr.bf16.mxu1 %v5157_v4 }
 0xf00   : > { %3537 = vmatpush1.bf16.msra.mxu1 %v5155_v5 }
 0xf01   : > { %3538 = vmatprep.subr.bf16.mxu1 %v5160_v6 }
 0xf04   : > { %3539 = vmatpush1.bf16.msra.mxu1 %v5158_v7 }
 0xf05   : > { %4925 = vmatprep.subr.bf16.mxu1 %v5816_v19 }
 0xf75   : > { %v3358_v55 = vpop.xlane.xlu0 %3357 }
 0xf76   : > { %v3359_v57 = vmul.f32 0.0078125, %v3358_v55  ;;  %v5177_v55 = vld [vmem:[%s6389_s1 + $0x38] sm:$0xff]  }
 0xf78   : > { %v3360_v58 = vsub.f32 %v3354_v51, %v3359_v57  ;;  %v5178_v57 = vld [vmem:[%s6389_s1 + $0x30] sm:$0xff]  }
 0xf7a   : > { %v3361_v59 = vmul.f32 %v3360_v58, %v3360_v58 }
 0xf7c   : > { %3362 = vadd.xlane.f32.xlu1 %v3361_v59 }
0x1005   : > { %v3363_v0 = vpop.xlane.xlu1 %3362 }
0x1006   : > { %v3364_v21 = vmul.f32 0.0078125, %v3363_v0 }
0x1008   : > { %v3365_v24 = vadd.f32 1e-05, %v3364_v21 }
0x100a   : > { %5219 = vrsqrt.f32 %v3365_v24 }
0x1017   : > { %v5220_v25 = vpop.eup %5219 }
0x1018   : > { %v3367_v27 = vmul.f32 %v5220_v25, %v3360_v58 }
0x101a   : > { %v3374_v29 = vmul.f32 %v4590_v26, %v3367_v27 }
0x101c   : > { %v3381_v30 = vadd.f32 %v4591_v28, %v3374_v29 }
0x101e   : > { %v3432_v32 = vpack.c.bf16 %v3381_v30, %v3381_v30 }
0x1020   : > { %3557 = vmatmul.mubr.bf16.vlgmr.msra.gmra.mxu1 %v3432_v32 }
0x1021   : > { %4941 = vmatprep.mubr.msk.bf16.mxu1 %vm5817_vm0, %v5816_v19  ;;  %4926 = vmatpush3.bf16.msra.mxu1 %v5177_v55 }
0x1022   : > { %4927 = vmatprep.subr.bf16.mxu1 %v5816_v19 }
0x1025   : > { %4928 = vmatpush3.bf16.msra.mxu1 %v5178_v57 }
0x1026   : > { %4929 = vmatprep.subr.bf16.mxu1 %v5816_v19 }
0x1029   : > { %4930 = vmatpush3.bf16.msra.mxu1 %v5179_v62 }
0x102a   : > { %4931 = vmatprep.subr.bf16.mxu1 %v5816_v19 }
0x102d   : > { %4932 = vmatpush3.bf16.msra.mxu1 %v5180_v63 }
0x102e   : > { %4933 = vmatprep.subr.bf16.mxu1 %v5816_v19 }
0x1031   : > { %4934 = vmatpush3.bf16.msra.mxu1 %v5181_v1 }
0x1032   : > { %4935 = vmatprep.subr.bf16.mxu1 %v5816_v19 }
0x1035   : > { %4936 = vmatpush3.bf16.msra.mxu1 %v5182_v56 }
0x1036   : > { %4937 = vmatprep.subr.bf16.mxu1 %v5816_v19 }
0x1039   : > { %4938 = vmatpush3.bf16.msra.mxu1 %v5183_v2 }
0x103a   : > { %4939 = vmatprep.subr.bf16.mxu1 %v5816_v19 }
0x103d   : > { %4940 = vmatpush3.bf16.msra.mxu1 %v5184_v3 }
0x10e0   : > { %v3558_v41 = vpop.f32.mrf.mxu1 }
0x10e1   : > { %v3559_v42 = vadd.f32 %v3558_v41, %v3437_v39 }
0x10e2   : > { %v3560_v43 = vpop.f32.mrf.mxu1 }
0x10e3   : > { %v3561_v44 = vadd.f32 %v3560_v43, %v3441_v40  ;;  %v3565_v45 = vmax.f32 %v3559_v42, 0.0 }
0x10e4   : > { %v3562_v46 = vpop.f32.mrf.mxu1 }
0x10e5   : > { %v3566_v47 = vmax.f32 %v3561_v44, 0.0  ;;  %v3567_v51 = vpack.c.bf16 %v3565_v45, %v3565_v45 }
0x10e6   : > { %v3563_v48 = vpop.f32.mrf.mxu1 }
0x10e7   : > { %v3568_v50 = vpack.c.bf16 %v3566_v47, %v3566_v47 }
0x10e9   : > { %3703 = vmatprep.mubr.bf16.mxu0 %v3568_v50 }
0x10ea   : > { %3704 = vmatmul.mubr.bf16.vlgmr.msra.gmra.mxu0 %v3567_v51 }
0x11aa   : > { %v4734_v52 = vpop.f32.mrf.mxu0 }
0x11ac   : > { %v4735_v23 = vpop.f32.mrf.mxu0 }
0x11ad   : > { %v4736_v38 = vadd.f32 %v4735_v23, %v4734_v52 }
0x11ae   : > { %v4737_v22 = vpop.f32.mrf.mxu0 }
0x11af   : > { %v3706_v17 = vadd.f32 %v4736_v38, %v4608_v53 }
0x11b0   : > { %v4738_v54 = vpop.f32.mrf.mxu0 }
0x11b1   : > { %v3711_v31 = vadd.f32 %v3706_v17, %v3381_v30 }
0x11b3   : > { %3714 = vadd.xlane.f32.xlu0 %v3711_v31 }
0x123c   : > { %v3715_v58 = vpop.xlane.xlu0 %3714 }
0x123d   : > { %v3716_v59 = vmul.f32 0.0078125, %v3715_v58 }
0x123f   : > { %v3717_v60 = vsub.f32 %v3711_v31, %v3716_v59 }
0x1241   : > { %v3718_v61 = vmul.f32 %v3717_v60, %v3717_v60 }
0x1243   : > { %3719 = vadd.xlane.f32.xlu0 %v3718_v61 }
0x12cc   : > { %v3720_v4 = vpop.xlane.xlu0 %3719 }
0x12cd   : > { %v3721_v5 = vmul.f32 0.0078125, %v3720_v4 }
0x12cf   : > { %v3722_v6 = vadd.f32 1e-05, %v3721_v5 }
0x12d1   : > { %5221 = vrsqrt.f32 %v3722_v6 }
0x12de   : > { %v5222_v7 = vpop.eup %5221 }
0x12df   : > { %v3724_v9 = vmul.f32 %v5222_v7, %v3717_v60 }
0x12e1   : > { %v3731_v49 = vmul.f32 %v4625_v8, %v3724_v9 }
0x12e3   : > { %v3738_v11 = vadd.f32 %v4626_v10, %v3731_v49 }
0x12e5   : > { %v3755_v12 = vpack.c.bf16 %v3738_v11, %v3738_v11 }
0x12e7   : > { %4942 = vmatmul.mubr.bf16.vlgmr.msra.gmra.mxu1 %v3755_v12 }
0x13a7   : > { %v3845_v19 = vpop.f32.mrf.mxu1 }
0x13a8   : > { %v3846_v14 = vadd.f32 %v4627_v13, %v3845_v19 }
0x13a9   : > { %v4943_v15 = vpop.f32.mrf.mxu1 }
0x13aa   : > { %3851 = vst [vmem:[%s1632_s8] sm:$0xff] %v3846_v14 }
0x13ab   : > { %v3848_v16 = vpop.f32.mrf.mxu1 }
0x13ad   : > { %v4944_v18 = vpop.f32.mrf.mxu1 }
0x13ae PF: > { %s7015_s26 = sld [smem:[#allocation45_spill]]  ;;  %s7022_s9 = smov %s5789_s28 }
0x13af   : > { %s7016_s7 = sld [smem:[#allocation40_spill]] }
0x13b0   : > { %s7017_s4 = sld [smem:[#allocation41_spill]] }
0x13b1   : > { %s7018_s8 = sld [smem:[#allocation49_spill]] }
0x13b2   : > { %s7019_s30 = sld [smem:[#allocation44_spill]] }
0x13b3   : > { %s7020_s5 = sld [smem:[#allocation46_spill]] }
0x13b4   : > { %s68_s0 = sadd.s32 1, %s7015_s26   ;;  %s7021_s18 = sld [smem:[#allocation47_spill]] }
0x13b5   : > { %p65_p5 = scmp.ge.s32.totalorder %s68_s0, 6  }
0x13b7   :  { %67 = sbr.rel (!%p65_p5) target bundleno = 48 (0x30), region = 408 }
0x13ba   : > { %s7023_s28 = smov %s7021_s18 }
0x13bc   :  { %3910 = vsyncpa [#allocation3], 1 }
0x13bd   :  { %3912 = vsyncpa [#allocation3 + $0x1], 1 }
0x13be   :  { %3913 = vsyncpa [#allocation5], 1 }
0x13bf   :  { %3915 = vsyncpa [#allocation5 + $0x1], 1 }
0x13c0   :  { %3916 = vsyncpa [#allocation8], 1 }
0x13c1   :  { %3918 = vsyncpa [#allocation8 + $0x1], 1 }
0x13c2   :  { %3919 = vsyncpa [#allocation11], 1 }
0x13c3   :  { %3921 = vsyncpa [#allocation11 + $0x1], 1 }
0x13c4   :  { %3922 = vsyncpa [#allocation14], 1 }
0x13c5   :  { %3924 = vsyncpa [#allocation14 + $0x1], 1 }
0x13c6   :  { %3925 = vsyncpa [#allocation17], 1 }
0x13c7   :  { %3927 = vsyncpa [#allocation17 + $0x1], 1 }
0x13c8   :  { %3928 = vsyncpa [#allocation20], 1 }
0x13c9   :  { %3930 = vsyncpa [#allocation20 + $0x1], 1 }
0x13ca   :  { %3931 = vsyncpa [#allocation23], 1 }
0x13cb   :  { %3933 = vsyncpa [#allocation23 + $0x1], 1 }
0x13cc   :  { %3934 = vsyncpa [#allocation26], 1 }
0x13cd   :  { %3936 = vsyncpa [#allocation26 + $0x1], 1 }
0x13ce   :  { %3937 = vsyncpa [#allocation29], 1 }
0x13cf   :  { %3939 = vsyncpa [#allocation29 + $0x1], 1 }

</bundles_post_ra>
